<compile_context>
chip_gen: v5e
topology: v5e:2x2
jax: 0.10.0
libtpu: 0.0.40
codegen_flags: <defaults>
</compile_context>

<pallas_src>
import functools

import jax
import jax.numpy as jnp
from jax import lax
from jax.experimental import pallas as pl
from jax.experimental.pallas import tpu as pltpu

CPAD = 16  # all UNet conv layers padded to 16 output channels


def _round_up(a, m):
    return ((a + m - 1) // m) * m


# ---------------------------------------------------------------------------
# Data-consistency kernels (complex math on split re/im float32 planes).
# All spatial data is presented lane-dense as (..., H*W).
# ---------------------------------------------------------------------------
def _coil_expand_kernel(x_ref, sr_ref, si_ref, or_ref, oi_ref):
    # coil_ims[b, c] = x[b] * sMaps[c]   (complex multiply), one b per step
    xr = x_ref[0, 0:1, :]                  # (1, P)
    xi = x_ref[0, 1:2, :]
    sr = sr_ref[...]                       # (C, P)
    si = si_ref[...]
    or_ref[0] = xr * sr - xi * si
    oi_ref[0] = xr * si + xi * sr


def _mask_blend_kernel(kr_ref, ki_ref, br_ref, bi_ref, m_ref, or_ref, oi_ref):
    # kSpace = kSpace * (1 - mask) + b * mask
    m = m_ref[...]                         # (1, P)
    nm = 1.0 - m
    or_ref[0] = kr_ref[0] * nm + br_ref[...] * m
    oi_ref[0] = ki_ref[0] * nm + bi_ref[...] * m


def _coil_combine_kernel(cr_ref, ci_ref, sr_ref, si_ref, o_ref):
    # out[b] = sum_c conj(sMaps[c]) * coil_ims[b, c]   (roemer combine)
    cr = cr_ref[0]                         # (C, P)
    ci = ci_ref[0]
    sr = sr_ref[...]
    si = si_ref[...]
    re = jnp.sum(sr * cr + si * ci, axis=0, keepdims=True)   # (1, P)
    im = jnp.sum(sr * ci - si * cr, axis=0, keepdims=True)
    o_ref[0] = jnp.concatenate([re, im], axis=0)


def coil_expand(x_flat, s_r, s_i):
    B, _, P = x_flat.shape
    C = s_r.shape[0]
    out = [jax.ShapeDtypeStruct((B, C, P), jnp.float32)] * 2
    return pl.pallas_call(
        _coil_expand_kernel,
        grid=(B,),
        in_specs=[pl.BlockSpec((1, 2, P), lambda b: (b, 0, 0)),
                  pl.BlockSpec((C, P), lambda b: (0, 0)),
                  pl.BlockSpec((C, P), lambda b: (0, 0))],
        out_specs=[pl.BlockSpec((1, C, P), lambda b: (b, 0, 0))] * 2,
        out_shape=out,
        compiler_params=pltpu.CompilerParams(dimension_semantics=("parallel",)),
    )(x_flat, s_r, s_i)


def mask_blend(k_r, k_i, b_r, b_i, mask_flat):
    B, C, P = k_r.shape
    out = [jax.ShapeDtypeStruct((B, C, P), jnp.float32)] * 2
    return pl.pallas_call(
        _mask_blend_kernel,
        grid=(B,),
        in_specs=[pl.BlockSpec((1, C, P), lambda b: (b, 0, 0)),
                  pl.BlockSpec((1, C, P), lambda b: (b, 0, 0)),
                  pl.BlockSpec((C, P), lambda b: (0, 0)),
                  pl.BlockSpec((C, P), lambda b: (0, 0)),
                  pl.BlockSpec((1, P), lambda b: (0, 0))],
        out_specs=[pl.BlockSpec((1, C, P), lambda b: (b, 0, 0))] * 2,
        out_shape=out,
        compiler_params=pltpu.CompilerParams(dimension_semantics=("parallel",)),
    )(k_r, k_i, b_r, b_i, mask_flat)


def coil_combine(c_r, c_i, s_r, s_i):
    B, C, P = c_r.shape
    return pl.pallas_call(
        _coil_combine_kernel,
        grid=(B,),
        in_specs=[pl.BlockSpec((1, C, P), lambda b: (b, 0, 0)),
                  pl.BlockSpec((1, C, P), lambda b: (b, 0, 0)),
                  pl.BlockSpec((C, P), lambda b: (0, 0)),
                  pl.BlockSpec((C, P), lambda b: (0, 0))],
        out_specs=pl.BlockSpec((1, 2, P), lambda b: (b, 0, 0)),
        out_shape=jax.ShapeDtypeStruct((B, 2, P), jnp.float32),
        compiler_params=pltpu.CompilerParams(dimension_semantics=("parallel",)),
    )(c_r, c_i, s_r, s_i)


# ---------------------------------------------------------------------------
# Centered ortho 2-D FFT glue (no Pallas FFT primitive -> XLA jnp.fft).
# TODO(synk): FFTs have no clean Pallas TPU equivalent; they stay in XLA.
# ---------------------------------------------------------------------------
def _fft2c(x):
    return jnp.fft.fftshift(
        jnp.fft.fftn(jnp.fft.ifftshift(x, axes=(-2, -1)), axes=(-2, -1),
                     norm='ortho'), axes=(-2, -1))


def _ifft2c(x):
    return jnp.fft.fftshift(
        jnp.fft.ifftn(jnp.fft.ifftshift(x, axes=(-2, -1)), axes=(-2, -1),
                      norm='ortho'), axes=(-2, -1))


def apply_dc(x_ch, mask_flat, b_r, b_i, s_r, s_i, H, W):
    """Sensitivity expand -> FFT -> masked data replace -> iFFT -> coil combine."""
    B = x_ch.shape[0]
    P = H * W
    x_flat = x_ch.reshape(B, 2, P)
    cr, ci = coil_expand(x_flat, s_r, s_i)                      # (B, C, P) x2
    k = _fft2c(lax.complex(cr, ci).reshape(B, -1, H, W))
    kr, ki = mask_blend(jnp.real(k).reshape(B, -1, P),
                        jnp.imag(k).reshape(B, -1, P), b_r, b_i, mask_flat)
    img = _ifft2c(lax.complex(kr, ki).reshape(B, -1, H, W))
    out = coil_combine(jnp.real(img).reshape(B, -1, P),
                       jnp.imag(img).reshape(B, -1, P), s_r, s_i)
    return out.reshape(B, 2, H, W)


# ---------------------------------------------------------------------------
# Fused UNet stand-in: 3x (conv3x3 + bias [+ ReLU]) + norm-preserving rescale,
# all inside ONE pallas_call per batch element.
# ---------------------------------------------------------------------------
def _unet_fused_kernel(x_ref, lm_ref, w1_ref, b1_ref, w2_ref, b2_ref,
                       w3_ref, b3_ref, o_ref, in_buf, buf_a, buf_b,
                       *, H, W, Wpad, R):
    f32 = jnp.float32
    L = (H + 2) * Wpad                    # flattened length (zero halo row top/bottom)
    N = R * Wpad                          # lanes per row-block (multiple of 128)
    nblk = H // R
    dn = (((1,), (0,)), ((), ()))
    lane_mask = lm_ref[...]               # (1, N): 1 on valid w < W, 0 on pad lanes

    # ---------------- input staging + in_norm --------------------------------
    xv = x_ref[0]                         # (2, H, W) re/im channels
    in_norm = jnp.sqrt(jnp.sum(xv * xv))  # ||x||_F of the complex image

    zrow2 = jnp.zeros((2, Wpad), f32)
    in_buf[2:4, 0:Wpad] = zrow2                                   # top halo row
    in_buf[2:4, (H + 1) * Wpad:(H + 2) * Wpad] = zrow2            # bottom halo row
    pad_tail = jnp.zeros((2, Wpad - W), f32)
    for h in range(H):                                            # lane-aligned full-Wpad stores
        in_buf[2:4, (h + 1) * Wpad:(h + 2) * Wpad] = jnp.concatenate(
            [xv[:, h, :], pad_tail], axis=1)
    centre2 = in_buf[2:4, :]
    zcol2 = jnp.zeros((2, 1), f32)
    # kw=0 copy provides a[.., w-1];  kw=2 copy provides a[.., w+1]
    in_buf[0:2, :] = jnp.concatenate([zcol2, centre2[:, :L - 1]], axis=1)
    in_buf[4:6, :] = jnp.concatenate([centre2[:, 1:], zcol2], axis=1)

    # ---------------- generic conv layer (row-blocked matmuls) ---------------
    def conv_layer(src, w_ref, b_ref, relu, store):
        w0, w1, w2 = w_ref[0], w_ref[1], w_ref[2]          # (16, 3*cin) each
        bb = jnp.broadcast_to(b_ref[...], (CPAD, N))       # hoisted bias broadcast
        for blk in range(nblk):                            # fully unrolled, static offsets
            off = blk * N
            acc = lax.dot_general(w0, src[:, off:off + N], dn,
                                  preferred_element_type=f32)
            acc = acc + lax.dot_general(w1, src[:, off + Wpad:off + Wpad + N], dn,
                                        preferred_element_type=f32)
            acc = acc + lax.dot_general(
                w2, src[:, off + 2 * Wpad:off + 2 * Wpad + N], dn,
                preferred_element_type=f32)
            acc = acc + bb
            if relu:
                acc = jnp.maximum(acc, 0.0)
            store(blk, acc)

    zrow16 = jnp.zeros((CPAD, Wpad), f32)
    zcol16 = jnp.zeros((CPAD, 1), f32)

    def mid_store(dst):
        def _st(blk, acc):
            base = (blk * R + 1) * Wpad                    # 128-aligned lane offset
            dst[CPAD:2 * CPAD, base:base + N] = acc * lane_mask  # zero pad lanes
        return _st

    def finalize_mid(dst):
        # zero the centre halo rows, then build the two +-1-lane shifted copies
        dst[CPAD:2 * CPAD, 0:Wpad] = zrow16
        dst[CPAD:2 * CPAD, (H + 1) * Wpad:(H + 2) * Wpad] = zrow16
        c = dst[CPAD:2 * CPAD, :]
        dst[0:CPAD, :] = jnp.concatenate([zcol16, c[:, :L - 1]], axis=1)   # kw=0
        dst[2 * CPAD:3 * CPAD, :] = jnp.concatenate([c[:, 1:], zcol16], axis=1)  # kw=2

    def out_store(blk, acc):
        # only the 2 real output channels; per-row (2, W) stores
        for r in range(R):
            o_ref[0, :, blk * R + r, :] = acc[0:2, r * Wpad:r * Wpad + W]

    conv_layer(in_buf, w1_ref, b1_ref, True, mid_store(buf_a))   # 2  -> 16
    finalize_mid(buf_a)
    conv_layer(buf_a, w2_ref, b2_ref, True, mid_store(buf_b))    # 16 -> 16
    finalize_mid(buf_b)
    conv_layer(buf_b, w3_ref, b3_ref, False, out_store)          # 16 -> 2

    # rescale epilogue: y * in_norm / (||y|| + 1e-8)  (norms never touch HBM)
    y = o_ref[...]                                               # (1, 2, H, W)
    out_norm = jnp.sqrt(jnp.sum(y * y))
    o_ref[...] = y * (in_norm / (out_norm + 1e-8))


def _pack_conv_weight(w):
    # (3, 3, cin, cout) -> (3, 16, 3*cin): out[kh, co, kw*cin + ci] = w[kh, kw, ci, co]
    _, _, cin, cout = w.shape
    wt = jnp.transpose(w, (0, 3, 1, 2)).reshape(3, cout, 3 * cin)
    if cout < CPAD:
        wt = jnp.concatenate(
            [wt, jnp.zeros((3, CPAD - cout, 3 * cin), w.dtype)], axis=1)
    return wt


def _pack_bias(b):
    return jnp.zeros((CPAD, 1), b.dtype).at[:b.shape[0], 0].set(b)


# TODO(synk): build_unet_smaller is not defined in the provided source; this is a
# deterministic 3-layer conv stand-in (2->16->16->2, 3x3 'same', ReLU, ReLU, none).
def unet_fused(x_ch, p):
    B, _, H, W = x_ch.shape
    Wpad = _round_up(W + 1, 128)                   # >=1 zero lane between rows
    R = next(r for r in (8, 4, 2, 1) if H % r == 0)
    N = R * Wpad
    L = (H + 2) * Wpad

    w1, b1 = _pack_conv_weight(p['w1']), _pack_bias(p['b1'])
    w2, b2 = _pack_conv_weight(p['w2']), _pack_bias(p['b2'])
    w3, b3 = _pack_conv_weight(p['w3']), _pack_bias(p['b3'])
    lane_mask = jnp.tile(jnp.arange(Wpad) < W, R).astype(jnp.float32).reshape(1, N)

    kern = functools.partial(_unet_fused_kernel, H=H, W=W, Wpad=Wpad, R=R)

    def full(shp):
        return pl.BlockSpec(shp, lambda b, _s=shp: (0,) * len(_s))

    return pl.pallas_call(
        kern,
        grid=(B,),
        in_specs=[pl.BlockSpec((1, 2, H, W), lambda b: (b, 0, 0, 0)),
                  full(lane_mask.shape),
                  full(w1.shape), full(b1.shape),
                  full(w2.shape), full(b2.shape),
                  full(w3.shape), full(b3.shape)],
        out_specs=pl.BlockSpec((1, 2, H, W), lambda b: (b, 0, 0, 0)),
        out_shape=jax.ShapeDtypeStruct((B, 2, H, W), jnp.float32),
        scratch_shapes=[pltpu.VMEM((6, L), jnp.float32),            # layer-1 input (+shifts)
                        pltpu.VMEM((3 * CPAD, L), jnp.float32),      # layer-2 input (+shifts)
                        pltpu.VMEM((3 * CPAD, L), jnp.float32)],     # layer-3 input (+shifts)
        compiler_params=pltpu.CompilerParams(
            dimension_semantics=("parallel",)),   # batch split across TCs on v7x
    )(x_ch, lane_mask, w1, b1, w2, b2, w3, b3)


# ---------------------------------------------------------------------------
# Full forward pass
# ---------------------------------------------------------------------------
@functools.partial(jax.jit, static_argnames=("n", "dc"))
def supervised_net_forward(x, mask, b, sMaps, params_list, n=1, dc=True):
    """x: (B,H,W) complex64; mask: (H,W) {0,1}; b, sMaps: (1,H,W,C) complex64
    (coil-last, as used by x.unsqueeze(-1)*sMaps).  Returns (B,H,W) complex64."""
    B, H, W = x.shape
    P = H * W
    s = jnp.transpose(sMaps[0], (2, 0, 1)).reshape(-1, P)    # (C, H*W) lane-dense
    bm = jnp.transpose(b[0], (2, 0, 1)).reshape(-1, P)
    s_r, s_i = jnp.real(s), jnp.imag(s)
    b_r, b_i = jnp.real(bm), jnp.imag(bm)
    mask_flat = mask.astype(jnp.float32).reshape(1, P)
    x_ch = jnp.stack([jnp.real(x), jnp.imag(x)], axis=1)     # (B, 2, H, W)

    # TODO(synk): grad / wavelet branches are skipped (module defaults grad=False,
    #             wavelets=False); only the dc + unet path is implemented.
    for it in range(n):
        if dc:
            x_ch = apply_dc(x_ch, mask_flat, b_r, b_i, s_r, s_i, H, W)
        x_ch = unet_fused(x_ch, params_list[it])             # convs + norm rescale fused
    if dc:
        x_ch = apply_dc(x_ch, mask_flat, b_r, b_i, s_r, s_i, H, W)
    return lax.complex(x_ch[:, 0], x_ch[:, 1])


def init_unet_params(key):
    k1, k2, k3 = jax.random.split(key, 3)
    return {
        'w1': 0.1 * jax.random.normal(k1, (3, 3, 2, 16), jnp.float32),
        'b1': jnp.zeros((16,), jnp.float32),
        'w2': 0.1 * jax.random.normal(k2, (3, 3, 16, 16), jnp.float32),
        'b2': jnp.zeros((16,), jnp.float32),
        'w3': 0.1 * jax.random.normal(k3, (3, 3, 16, 2), jnp.float32),
        'b3': jnp.zeros((2,), jnp.float32),
    }


if __name__ == "__main__":
    key = jax.random.PRNGKey(0)
    ks = jax.random.split(key, 8)
    B, H, W, C = 2, 16, 16, 4

    # complex image x [B, H, W]
    x = lax.complex(jax.random.normal(ks[0], (B, H, W), jnp.float32),
                    jax.random.normal(ks[1], (B, H, W), jnp.float32))
    # sensitivity maps [1, H, W, C] complex (coil-last)
    sMaps = lax.complex(jax.random.normal(ks[2], (1, H, W, C), jnp.float32),
                        jax.random.normal(ks[3], (1, H, W, C), jnp.float32))
    # measured k-space b [1, H, W, C] complex
    b = lax.complex(jax.random.normal(ks[4], (1, H, W, C), jnp.float32),
                    jax.random.normal(ks[5], (1, H, W, C), jnp.float32))
    # undersampling mask [H, W] of {0,1}
    mask = (jax.random.uniform(ks[6], (H, W)) < 0.5).astype(jnp.float32)

    n = 1
    params_list = [init_unet_params(k) for k in jax.random.split(ks[7], n)]

    out = supervised_net_forward(x, mask, b, sMaps, params_list, n=n, dc=True)
    out = jax.block_until_ready(out)
    assert out.shape == (B, H, W) and out.dtype == jnp.complex64
    print("KERNEL_OK")
</pallas_src>

<mosaic_0001>
module attributes {stable_mosaic.version = 11 : i64} {
  func.func @_coil_expand_kernel(%arg0: i32, %arg1: memref<1x2x256xf32, #tpu.memory_space<vmem>>, %arg2: memref<4x256xf32, #tpu.memory_space<vmem>>, %arg3: memref<4x256xf32, #tpu.memory_space<vmem>>, %arg4: memref<1x4x256xf32, #tpu.memory_space<vmem>>, %arg5: memref<1x4x256xf32, #tpu.memory_space<vmem>>) attributes {dimension_semantics = [#tpu.dimension_semantics<parallel>], iteration_bounds = array<i64: 2>, scalar_prefetch = 0 : i64, scratch_operands = 0 : i64, tpu.core_type = #tpu.core_type<tc>, window_params = [{transform_indices = @transform_0, window_bounds = array<i64: 1, 2, 256>}, {pipeline_mode = #tpu.pipeline_mode<synchronous>, transform_indices = @transform_1, window_bounds = array<i64: 4, 256>}, {pipeline_mode = #tpu.pipeline_mode<synchronous>, transform_indices = @transform_2, window_bounds = array<i64: 4, 256>}, {transform_indices = @transform_3, window_bounds = array<i64: 1, 4, 256>}, {transform_indices = @transform_4, window_bounds = array<i64: 1, 4, 256>}]} {
    %c0 = arith.constant 0 : index
    %c0_0 = arith.constant 0 : index
    %c0_1 = arith.constant 0 : index
    %0 = vector.load %arg1[%c0, %c0_0, %c0_1] : memref<1x2x256xf32, #tpu.memory_space<vmem>>, vector<1x1x256xf32>
    %1 = vector.shape_cast %0 : vector<1x1x256xf32> to vector<1x256xf32>
    %c0_2 = arith.constant 0 : index
    %c1 = arith.constant 1 : index
    %c0_3 = arith.constant 0 : index
    %2 = vector.load %arg1[%c0_2, %c1, %c0_3] : memref<1x2x256xf32, #tpu.memory_space<vmem>>, vector<1x1x256xf32>
    %3 = vector.shape_cast %2 : vector<1x1x256xf32> to vector<1x256xf32>
    %c0_4 = arith.constant 0 : index
    %c0_5 = arith.constant 0 : index
    %4 = vector.load %arg2[%c0_4, %c0_5] : memref<4x256xf32, #tpu.memory_space<vmem>>, vector<4x256xf32>
    %c0_6 = arith.constant 0 : index
    %c0_7 = arith.constant 0 : index
    %5 = vector.load %arg3[%c0_6, %c0_7] : memref<4x256xf32, #tpu.memory_space<vmem>>, vector<4x256xf32>
    %6 = vector.broadcast %1 : vector<1x256xf32> to vector<4x256xf32>
    %7 = arith.mulf %6, %4 : vector<4x256xf32>
    %8 = vector.broadcast %3 : vector<1x256xf32> to vector<4x256xf32>
    %9 = arith.mulf %8, %5 : vector<4x256xf32>
    %10 = arith.subf %7, %9 : vector<4x256xf32>
    %c0_8 = arith.constant 0 : index
    %c0_9 = arith.constant 0 : index
    %c0_10 = arith.constant 0 : index
    %11 = vector.load %arg4[%c0_8, %c0_9, %c0_10] : memref<1x4x256xf32, #tpu.memory_space<vmem>>, vector<1x4x256xf32>
    %12 = vector.shape_cast %11 : vector<1x4x256xf32> to vector<4x256xf32>
    %13 = vector.shape_cast %10 : vector<4x256xf32> to vector<1x4x256xf32>
    tpu.vector_store %arg4[%c0_8, %c0_9, %c0_10], %13 {strides = array<i32>} : memref<1x4x256xf32, #tpu.memory_space<vmem>>, vector<1x4x256xf32>,
    %14 = vector.broadcast %1 : vector<1x256xf32> to vector<4x256xf32>
    %15 = arith.mulf %14, %5 : vector<4x256xf32>
    %16 = vector.broadcast %3 : vector<1x256xf32> to vector<4x256xf32>
    %17 = arith.mulf %16, %4 : vector<4x256xf32>
    %18 = arith.addf %15, %17 : vector<4x256xf32>
    %c0_11 = arith.constant 0 : index
    %c0_12 = arith.constant 0 : index
    %c0_13 = arith.constant 0 : index
    %19 = vector.load %arg5[%c0_11, %c0_12, %c0_13] : memref<1x4x256xf32, #tpu.memory_space<vmem>>, vector<1x4x256xf32>
    %20 = vector.shape_cast %19 : vector<1x4x256xf32> to vector<4x256xf32>
    %21 = vector.shape_cast %18 : vector<4x256xf32> to vector<1x4x256xf32>
    tpu.vector_store %arg5[%c0_11, %c0_12, %c0_13], %21 {strides = array<i32>} : memref<1x4x256xf32, #tpu.memory_space<vmem>>, vector<1x4x256xf32>,
    return
  }
  func.func @transform_0(%arg0: i32) -> (i32, i32, i32) {
    %c0_i32 = arith.constant 0 : i32
    %c0_i32_0 = arith.constant 0 : i32
    %c0_i32_1 = arith.constant 0 : i32
    return %arg0, %c0_i32, %c0_i32_0 : i32, i32, i32
  }
  func.func @transform_1(%arg0: i32) -> (i32, i32) {
    %c0_i32 = arith.constant 0 : i32
    %c0_i32_0 = arith.constant 0 : i32
    %c0_i32_1 = arith.constant 0 : i32
    return %c0_i32, %c0_i32_0 : i32, i32
  }
  func.func @transform_2(%arg0: i32) -> (i32, i32) {
    %c0_i32 = arith.constant 0 : i32
    %c0_i32_0 = arith.constant 0 : i32
    %c0_i32_1 = arith.constant 0 : i32
    return %c0_i32, %c0_i32_0 : i32, i32
  }
  func.func @transform_3(%arg0: i32) -> (i32, i32, i32) {
    %c0_i32 = arith.constant 0 : i32
    %c0_i32_0 = arith.constant 0 : i32
    %c0_i32_1 = arith.constant 0 : i32
    return %arg0, %c0_i32, %c0_i32_0 : i32, i32, i32
  }
  func.func @transform_4(%arg0: i32) -> (i32, i32, i32) {
    %c0_i32 = arith.constant 0 : i32
    %c0_i32_0 = arith.constant 0 : i32
    %c0_i32_1 = arith.constant 0 : i32
    return %arg0, %c0_i32, %c0_i32_0 : i32, i32, i32
  }
}

module attributes {stable_mosaic.version = 11 : i64} {
  func.func @_mask_blend_kernel(%arg0: i32, %arg1: memref<1x4x256xf32, #tpu.memory_space<vmem>>, %arg2: memref<1x4x256xf32, #tpu.memory_space<vmem>>, %arg3: memref<4x256xf32, #tpu.memory_space<vmem>>, %arg4: memref<4x256xf32, #tpu.memory_space<vmem>>, %arg5: memref<1x256xf32, #tpu.memory_space<vmem>>, %arg6: memref<1x4x256xf32, #tpu.memory_space<vmem>>, %arg7: memref<1x4x256xf32, #tpu.memory_space<vmem>>) attributes {dimension_semantics = [#tpu.dimension_semantics<parallel>], iteration_bounds = array<i64: 2>, scalar_prefetch = 0 : i64, scratch_operands = 0 : i64, tpu.core_type = #tpu.core_type<tc>, window_params = [{transform_indices = @transform_0, window_bounds = array<i64: 1, 4, 256>}, {transform_indices = @transform_1, window_bounds = array<i64: 1, 4, 256>}, {pipeline_mode = #tpu.pipeline_mode<synchronous>, transform_indices = @transform_2, window_bounds = array<i64: 4, 256>}, {pipeline_mode = #tpu.pipeline_mode<synchronous>, transform_indices = @transform_3, window_bounds = array<i64: 4, 256>}, {pipeline_mode = #tpu.pipeline_mode<synchronous>, transform_indices = @transform_4, window_bounds = array<i64: 1, 256>}, {transform_indices = @transform_5, window_bounds = array<i64: 1, 4, 256>}, {transform_indices = @transform_6, window_bounds = array<i64: 1, 4, 256>}]} {
    %c0 = arith.constant 0 : index
    %c0_0 = arith.constant 0 : index
    %0 = vector.load %arg5[%c0, %c0_0] : memref<1x256xf32, #tpu.memory_space<vmem>>, vector<1x256xf32>
    %cst = arith.constant 1.000000e+00 : f32
    %1 = vector.broadcast %cst : f32 to vector<1x256xf32>
    %2 = arith.subf %1, %0 : vector<1x256xf32>
    %c0_1 = arith.constant 0 : index
    %c0_2 = arith.constant 0 : index
    %c0_3 = arith.constant 0 : index
    %3 = vector.load %arg1[%c0_1, %c0_2, %c0_3] : memref<1x4x256xf32, #tpu.memory_space<vmem>>, vector<1x4x256xf32>
    %4 = vector.shape_cast %3 : vector<1x4x256xf32> to vector<4x256xf32>
    %5 = vector.broadcast %2 : vector<1x256xf32> to vector<4x256xf32>
    %6 = arith.mulf %4, %5 : vector<4x256xf32>
    %c0_4 = arith.constant 0 : index
    %c0_5 = arith.constant 0 : index
    %7 = vector.load %arg3[%c0_4, %c0_5] : memref<4x256xf32, #tpu.memory_space<vmem>>, vector<4x256xf32>
    %8 = vector.broadcast %0 : vector<1x256xf32> to vector<4x256xf32>
    %9 = arith.mulf %7, %8 : vector<4x256xf32>
    %10 = arith.addf %6, %9 : vector<4x256xf32>
    %c0_6 = arith.constant 0 : index
    %c0_7 = arith.constant 0 : index
    %c0_8 = arith.constant 0 : index
    %11 = vector.load %arg6[%c0_6, %c0_7, %c0_8] : memref<1x4x256xf32, #tpu.memory_space<vmem>>, vector<1x4x256xf32>
    %12 = vector.shape_cast %11 : vector<1x4x256xf32> to vector<4x256xf32>
    %13 = vector.shape_cast %10 : vector<4x256xf32> to vector<1x4x256xf32>
    tpu.vector_store %arg6[%c0_6, %c0_7, %c0_8], %13 {strides = array<i32>} : memref<1x4x256xf32, #tpu.memory_space<vmem>>, vector<1x4x256xf32>,
    %c0_9 = arith.constant 0 : index
    %c0_10 = arith.constant 0 : index
    %c0_11 = arith.constant 0 : index
    %14 = vector.load %arg2[%c0_9, %c0_10, %c0_11] : memref<1x4x256xf32, #tpu.memory_space<vmem>>, vector<1x4x256xf32>
    %15 = vector.shape_cast %14 : vector<1x4x256xf32> to vector<4x256xf32>
    %16 = vector.broadcast %2 : vector<1x256xf32> to vector<4x256xf32>
    %17 = arith.mulf %15, %16 : vector<4x256xf32>
    %c0_12 = arith.constant 0 : index
    %c0_13 = arith.constant 0 : index
    %18 = vector.load %arg4[%c0_12, %c0_13] : memref<4x256xf32, #tpu.memory_space<vmem>>, vector<4x256xf32>
    %19 = vector.broadcast %0 : vector<1x256xf32> to vector<4x256xf32>
    %20 = arith.mulf %18, %19 : vector<4x256xf32>
    %21 = arith.addf %17, %20 : vector<4x256xf32>
    %c0_14 = arith.constant 0 : index
    %c0_15 = arith.constant 0 : index
    %c0_16 = arith.constant 0 : index
    %22 = vector.load %arg7[%c0_14, %c0_15, %c0_16] : memref<1x4x256xf32, #tpu.memory_space<vmem>>, vector<1x4x256xf32>
    %23 = vector.shape_cast %22 : vector<1x4x256xf32> to vector<4x256xf32>
    %24 = vector.shape_cast %21 : vector<4x256xf32> to vector<1x4x256xf32>
    tpu.vector_store %arg7[%c0_14, %c0_15, %c0_16], %24 {strides = array<i32>} : memref<1x4x256xf32, #tpu.memory_space<vmem>>, vector<1x4x256xf32>,
    return
  }
  func.func @transform_0(%arg0: i32) -> (i32, i32, i32) {
    %c0_i32 = arith.constant 0 : i32
    %c0_i32_0 = arith.constant 0 : i32
    %c0_i32_1 = arith.constant 0 : i32
    return %arg0, %c0_i32, %c0_i32_0 : i32, i32, i32
  }
  func.func @transform_1(%arg0: i32) -> (i32, i32, i32) {
    %c0_i32 = arith.constant 0 : i32
    %c0_i32_0 = arith.constant 0 : i32
    %c0_i32_1 = arith.constant 0 : i32
    return %arg0, %c0_i32, %c0_i32_0 : i32, i32, i32
  }
  func.func @transform_2(%arg0: i32) -> (i32, i32) {
    %c0_i32 = arith.constant 0 : i32
    %c0_i32_0 = arith.constant 0 : i32
    %c0_i32_1 = arith.constant 0 : i32
    return %c0_i32, %c0_i32_0 : i32, i32
  }
  func.func @transform_3(%arg0: i32) -> (i32, i32) {
    %c0_i32 = arith.constant 0 : i32
    %c0_i32_0 = arith.constant 0 : i32
    %c0_i32_1 = arith.constant 0 : i32
    return %c0_i32, %c0_i32_0 : i32, i32
  }
  func.func @transform_4(%arg0: i32) -> (i32, i32) {
    %c0_i32 = arith.constant 0 : i32
    %c0_i32_0 = arith.constant 0 : i32
    %c0_i32_1 = arith.constant 0 : i32
    return %c0_i32, %c0_i32_0 : i32, i32
  }
  func.func @transform_5(%arg0: i32) -> (i32, i32, i32) {
    %c0_i32 = arith.constant 0 : i32
    %c0_i32_0 = arith.constant 0 : i32
    %c0_i32_1 = arith.constant 0 : i32
    return %arg0, %c0_i32, %c0_i32_0 : i32, i32, i32
  }
  func.func @transform_6(%arg0: i32) -> (i32, i32, i32) {
    %c0_i32 = arith.constant 0 : i32
    %c0_i32_0 = arith.constant 0 : i32
    %c0_i32_1 = arith.constant 0 : i32
    return %arg0, %c0_i32, %c0_i32_0 : i32, i32, i32
  }
}

module attributes {stable_mosaic.version = 11 : i64} {
  func.func @_coil_combine_kernel(%arg0: i32, %arg1: memref<1x4x256xf32, #tpu.memory_space<vmem>>, %arg2: memref<1x4x256xf32, #tpu.memory_space<vmem>>, %arg3: memref<4x256xf32, #tpu.memory_space<vmem>>, %arg4: memref<4x256xf32, #tpu.memory_space<vmem>>, %arg5: memref<1x2x256xf32, #tpu.memory_space<vmem>>) attributes {dimension_semantics = [#tpu.dimension_semantics<parallel>], iteration_bounds = array<i64: 2>, scalar_prefetch = 0 : i64, scratch_operands = 0 : i64, tpu.core_type = #tpu.core_type<tc>, window_params = [{transform_indices = @transform_0, window_bounds = array<i64: 1, 4, 256>}, {transform_indices = @transform_1, window_bounds = array<i64: 1, 4, 256>}, {pipeline_mode = #tpu.pipeline_mode<synchronous>, transform_indices = @transform_2, window_bounds = array<i64: 4, 256>}, {pipeline_mode = #tpu.pipeline_mode<synchronous>, transform_indices = @transform_3, window_bounds = array<i64: 4, 256>}, {transform_indices = @transform_4, window_bounds = array<i64: 1, 2, 256>}]} {
    %c0 = arith.constant 0 : index
    %c0_0 = arith.constant 0 : index
    %c0_1 = arith.constant 0 : index
    %0 = vector.load %arg1[%c0, %c0_0, %c0_1] : memref<1x4x256xf32, #tpu.memory_space<vmem>>, vector<1x4x256xf32>
    %1 = vector.shape_cast %0 : vector<1x4x256xf32> to vector<4x256xf32>
    %c0_2 = arith.constant 0 : index
    %c0_3 = arith.constant 0 : index
    %c0_4 = arith.constant 0 : index
    %2 = vector.load %arg2[%c0_2, %c0_3, %c0_4] : memref<1x4x256xf32, #tpu.memory_space<vmem>>, vector<1x4x256xf32>
    %3 = vector.shape_cast %2 : vector<1x4x256xf32> to vector<4x256xf32>
    %c0_5 = arith.constant 0 : index
    %c0_6 = arith.constant 0 : index
    %4 = vector.load %arg3[%c0_5, %c0_6] : memref<4x256xf32, #tpu.memory_space<vmem>>, vector<4x256xf32>
    %c0_7 = arith.constant 0 : index
    %c0_8 = arith.constant 0 : index
    %5 = vector.load %arg4[%c0_7, %c0_8] : memref<4x256xf32, #tpu.memory_space<vmem>>, vector<4x256xf32>
    %6 = arith.mulf %4, %1 : vector<4x256xf32>
    %7 = arith.mulf %5, %3 : vector<4x256xf32>
    %8 = arith.addf %6, %7 : vector<4x256xf32>
    %cst = arith.constant dense<0.000000e+00> : vector<256xf32>
    %9 = vector.multi_reduction <add>, %8, %cst [0] : vector<4x256xf32> to vector<256xf32>
    %10 = vector.shape_cast %9 : vector<256xf32> to vector<1x256xf32>
    %11 = arith.mulf %4, %3 : vector<4x256xf32>
    %12 = arith.mulf %5, %1 : vector<4x256xf32>
    %13 = arith.subf %11, %12 : vector<4x256xf32>
    %cst_9 = arith.constant dense<0.000000e+00> : vector<256xf32>
    %14 = vector.multi_reduction <add>, %13, %cst_9 [0] : vector<4x256xf32> to vector<256xf32>
    %15 = vector.shape_cast %14 : vector<256xf32> to vector<1x256xf32>
    %16 = tpu.concatenate %10, %15 in 0 : vector<1x256xf32>, vector<1x256xf32> -> vector<2x256xf32>
    %c0_10 = arith.constant 0 : index
    %c0_11 = arith.constant 0 : index
    %c0_12 = arith.constant 0 : index
    %17 = vector.load %arg5[%c0_10, %c0_11, %c0_12] : memref<1x2x256xf32, #tpu.memory_space<vmem>>, vector<1x2x256xf32>
    %18 = vector.shape_cast %17 : vector<1x2x256xf32> to vector<2x256xf32>
    %19 = vector.shape_cast %16 : vector<2x256xf32> to vector<1x2x256xf32>
    tpu.vector_store %arg5[%c0_10, %c0_11, %c0_12], %19 {strides = array<i32>} : memref<1x2x256xf32, #tpu.memory_space<vmem>>, vector<1x2x256xf32>,
    return
  }
  func.func @transform_0(%arg0: i32) -> (i32, i32, i32) {
    %c0_i32 = arith.constant 0 : i32
    %c0_i32_0 = arith.constant 0 : i32
    %c0_i32_1 = arith.constant 0 : i32
    return %arg0, %c0_i32, %c0_i32_0 : i32, i32, i32
  }
  func.func @transform_1(%arg0: i32) -> (i32, i32, i32) {
    %c0_i32 = arith.constant 0 : i32
    %c0_i32_0 = arith.constant 0 : i32
    %c0_i32_1 = arith.constant 0 : i32
    return %arg0, %c0_i32, %c0_i32_0 : i32, i32, i32
  }
  func.func @transform_2(%arg0: i32) -> (i32, i32) {
    %c0_i32 = arith.constant 0 : i32
    %c0_i32_0 = arith.constant 0 : i32
    %c0_i32_1 = arith.constant 0 : i32
    return %c0_i32, %c0_i32_0 : i32, i32
  }
  func.func @transform_3(%arg0: i32) -> (i32, i32) {
    %c0_i32 = arith.constant 0 : i32
    %c0_i32_0 = arith.constant 0 : i32
    %c0_i32_1 = arith.constant 0 : i32
    return %c0_i32, %c0_i32_0 : i32, i32
  }
  func.func @transform_4(%arg0: i32) -> (i32, i32, i32) {
    %c0_i32 = arith.constant 0 : i32
    %c0_i32_0 = arith.constant 0 : i32
    %c0_i32_1 = arith.constant 0 : i32
    return %arg0, %c0_i32, %c0_i32_0 : i32, i32, i32
  }
}

module attributes {stable_mosaic.version = 11 : i64} {
  func.func @_unet_fused_kernel(%arg0: i32, %arg1: memref<1x2x16x16xf32, #tpu.memory_space<vmem>>, %arg2: memref<1x1024xf32, #tpu.memory_space<vmem>>, %arg3: memref<3x16x6xf32, #tpu.memory_space<vmem>>, %arg4: memref<16x1xf32, #tpu.memory_space<vmem>>, %arg5: memref<3x16x48xf32, #tpu.memory_space<vmem>>, %arg6: memref<16x1xf32, #tpu.memory_space<vmem>>, %arg7: memref<3x16x48xf32, #tpu.memory_space<vmem>>, %arg8: memref<16x1xf32, #tpu.memory_space<vmem>>, %arg9: memref<1x2x16x16xf32, #tpu.memory_space<vmem>>, %arg10: memref<6x2304xf32, #tpu.memory_space<vmem>>, %arg11: memref<48x2304xf32, #tpu.memory_space<vmem>>, %arg12: memref<48x2304xf32, #tpu.memory_space<vmem>>) attributes {dimension_semantics = [#tpu.dimension_semantics<parallel>], iteration_bounds = array<i64: 2>, scalar_prefetch = 0 : i64, scratch_operands = 3 : i64, tpu.core_type = #tpu.core_type<tc>, window_params = [{transform_indices = @transform_0, window_bounds = array<i64: 1, 2, 16, 16>}, {pipeline_mode = #tpu.pipeline_mode<synchronous>, transform_indices = @transform_1, window_bounds = array<i64: 1, 1024>}, {pipeline_mode = #tpu.pipeline_mode<synchronous>, transform_indices = @transform_2, window_bounds = array<i64: 3, 16, 6>}, {pipeline_mode = #tpu.pipeline_mode<synchronous>, transform_indices = @transform_3, window_bounds = array<i64: 16, 1>}, {pipeline_mode = #tpu.pipeline_mode<synchronous>, transform_indices = @transform_4, window_bounds = array<i64: 3, 16, 48>}, {pipeline_mode = #tpu.pipeline_mode<synchronous>, transform_indices = @transform_5, window_bounds = array<i64: 16, 1>}, {pipeline_mode = #tpu.pipeline_mode<synchronous>, transform_indices = @transform_6, window_bounds = array<i64: 3, 16, 48>}, {pipeline_mode = #tpu.pipeline_mode<synchronous>, transform_indices = @transform_7, window_bounds = array<i64: 16, 1>}, {transform_indices = @transform_8, window_bounds = array<i64: 1, 2, 16, 16>}]} {
    %c0 = arith.constant 0 : index
    %c0_0 = arith.constant 0 : index
    %0 = vector.load %arg2[%c0, %c0_0] : memref<1x1024xf32, #tpu.memory_space<vmem>>, vector<1x1024xf32>
    %c0_1 = arith.constant 0 : index
    %c0_2 = arith.constant 0 : index
    %c0_3 = arith.constant 0 : index
    %c0_4 = arith.constant 0 : index
    %1 = vector.load %arg1[%c0_1, %c0_2, %c0_3, %c0_4] : memref<1x2x16x16xf32, #tpu.memory_space<vmem>>, vector<1x2x16x16xf32>
    %2 = vector.shape_cast %1 : vector<1x2x16x16xf32> to vector<2x16x16xf32>
    %3 = arith.mulf %2, %2 : vector<2x16x16xf32>
    %4 = vector.shape_cast %3 : vector<2x16x16xf32> to vector<1x2x16x16xf32>
    %cst = arith.constant dense<0.000000e+00> : vector<1xf32>
    %5 = vector.multi_reduction <add>, %4, %cst [1, 2, 3] : vector<1x2x16x16xf32> to vector<1xf32>
    %6 = vector.shape_cast %5 : vector<1xf32> to vector<1x1x1x1xf32>
    %7 = vector.extract %6[0, 0, 0, 0] : f32 from vector<1x1x1x1xf32>
    %8 = math.sqrt %7 : f32
    %cst_5 = arith.constant 0.000000e+00 : f32
    %9 = vector.broadcast %cst_5 : f32 to vector<2x128xf32>
    %c2 = arith.constant 2 : index
    %c0_6 = arith.constant 0 : index
    %10 = vector.load %arg10[%c2, %c0_6] : memref<6x2304xf32, #tpu.memory_space<vmem>>, vector<2x128xf32>
    tpu.vector_store %arg10[%c2, %c0_6], %9 {strides = array<i32>} : memref<6x2304xf32, #tpu.memory_space<vmem>>, vector<2x128xf32>,
    %c2_7 = arith.constant 2 : index
    %c2176 = arith.constant 2176 : index
    %11 = vector.load %arg10[%c2_7, %c2176] : memref<6x2304xf32, #tpu.memory_space<vmem>>, vector<2x128xf32>
    tpu.vector_store %arg10[%c2_7, %c2176], %9 {strides = array<i32>} : memref<6x2304xf32, #tpu.memory_space<vmem>>, vector<2x128xf32>,
    %cst_8 = arith.constant 0.000000e+00 : f32
    %12 = vector.broadcast %cst_8 : f32 to vector<2x112xf32>
    %13 = vector.extract_strided_slice %2 {offsets = [0, 0, 0], sizes = [2, 1, 16], strides = [1, 1, 1]} : vector<2x16x16xf32> to vector<2x1x16xf32>
    %14 = vector.shape_cast %13 : vector<2x1x16xf32> to vector<2x16xf32>
    %15 = tpu.concatenate %14, %12 in 1 : vector<2x16xf32>, vector<2x112xf32> -> vector<2x128xf32>
    %c2_9 = arith.constant 2 : index
    %c128 = arith.constant 128 : index
    %16 = vector.load %arg10[%c2_9, %c128] : memref<6x2304xf32, #tpu.memory_space<vmem>>, vector<2x128xf32>
    tpu.vector_store %arg10[%c2_9, %c128], %15 {strides = array<i32>} : memref<6x2304xf32, #tpu.memory_space<vmem>>, vector<2x128xf32>,
    %17 = vector.extract_strided_slice %2 {offsets = [0, 1, 0], sizes = [2, 1, 16], strides = [1, 1, 1]} : vector<2x16x16xf32> to vector<2x1x16xf32>
    %18 = vector.shape_cast %17 : vector<2x1x16xf32> to vector<2x16xf32>
    %19 = tpu.concatenate %18, %12 in 1 : vector<2x16xf32>, vector<2x112xf32> -> vector<2x128xf32>
    %c2_10 = arith.constant 2 : index
    %c256 = arith.constant 256 : index
    %20 = vector.load %arg10[%c2_10, %c256] : memref<6x2304xf32, #tpu.memory_space<vmem>>, vector<2x128xf32>
    tpu.vector_store %arg10[%c2_10, %c256], %19 {strides = array<i32>} : memref<6x2304xf32, #tpu.memory_space<vmem>>, vector<2x128xf32>,
    %21 = vector.extract_strided_slice %2 {offsets = [0, 2, 0], sizes = [2, 1, 16], strides = [1, 1, 1]} : vector<2x16x16xf32> to vector<2x1x16xf32>
    %22 = vector.shape_cast %21 : vector<2x1x16xf32> to vector<2x16xf32>
    %23 = tpu.concatenate %22, %12 in 1 : vector<2x16xf32>, vector<2x112xf32> -> vector<2x128xf32>
    %c2_11 = arith.constant 2 : index
    %c384 = arith.constant 384 : index
    %24 = vector.load %arg10[%c2_11, %c384] : memref<6x2304xf32, #tpu.memory_space<vmem>>, vector<2x128xf32>
    tpu.vector_store %arg10[%c2_11, %c384], %23 {strides = array<i32>} : memref<6x2304xf32, #tpu.memory_space<vmem>>, vector<2x128xf32>,
    %25 = vector.extract_strided_slice %2 {offsets = [0, 3, 0], sizes = [2, 1, 16], strides = [1, 1, 1]} : vector<2x16x16xf32> to vector<2x1x16xf32>
    %26 = vector.shape_cast %25 : vector<2x1x16xf32> to vector<2x16xf32>
    %27 = tpu.concatenate %26, %12 in 1 : vector<2x16xf32>, vector<2x112xf32> -> vector<2x128xf32>
    %c2_12 = arith.constant 2 : index
    %c512 = arith.constant 512 : index
    %28 = vector.load %arg10[%c2_12, %c512] : memref<6x2304xf32, #tpu.memory_space<vmem>>, vector<2x128xf32>
    tpu.vector_store %arg10[%c2_12, %c512], %27 {strides = array<i32>} : memref<6x2304xf32, #tpu.memory_space<vmem>>, vector<2x128xf32>,
    %29 = vector.extract_strided_slice %2 {offsets = [0, 4, 0], sizes = [2, 1, 16], strides = [1, 1, 1]} : vector<2x16x16xf32> to vector<2x1x16xf32>
    %30 = vector.shape_cast %29 : vector<2x1x16xf32> to vector<2x16xf32>
    %31 = tpu.concatenate %30, %12 in 1 : vector<2x16xf32>, vector<2x112xf32> -> vector<2x128xf32>
    %c2_13 = arith.constant 2 : index
    %c640 = arith.constant 640 : index
    %32 = vector.load %arg10[%c2_13, %c640] : memref<6x2304xf32, #tpu.memory_space<vmem>>, vector<2x128xf32>
    tpu.vector_store %arg10[%c2_13, %c640], %31 {strides = array<i32>} : memref<6x2304xf32, #tpu.memory_space<vmem>>, vector<2x128xf32>,
    %33 = vector.extract_strided_slice %2 {offsets = [0, 5, 0], sizes = [2, 1, 16], strides = [1, 1, 1]} : vector<2x16x16xf32> to vector<2x1x16xf32>
    %34 = vector.shape_cast %33 : vector<2x1x16xf32> to vector<2x16xf32>
    %35 = tpu.concatenate %34, %12 in 1 : vector<2x16xf32>, vector<2x112xf32> -> vector<2x128xf32>
    %c2_14 = arith.constant 2 : index
    %c768 = arith.constant 768 : index
    %36 = vector.load %arg10[%c2_14, %c768] : memref<6x2304xf32, #tpu.memory_space<vmem>>, vector<2x128xf32>
    tpu.vector_store %arg10[%c2_14, %c768], %35 {strides = array<i32>} : memref<6x2304xf32, #tpu.memory_space<vmem>>, vector<2x128xf32>,
    %37 = vector.extract_strided_slice %2 {offsets = [0, 6, 0], sizes = [2, 1, 16], strides = [1, 1, 1]} : vector<2x16x16xf32> to vector<2x1x16xf32>
    %38 = vector.shape_cast %37 : vector<2x1x16xf32> to vector<2x16xf32>
    %39 = tpu.concatenate %38, %12 in 1 : vector<2x16xf32>, vector<2x112xf32> -> vector<2x128xf32>
    %c2_15 = arith.constant 2 : index
    %c896 = arith.constant 896 : index
    %40 = vector.load %arg10[%c2_15, %c896] : memref<6x2304xf32, #tpu.memory_space<vmem>>, vector<2x128xf32>
    tpu.vector_store %arg10[%c2_15, %c896], %39 {strides = array<i32>} : memref<6x2304xf32, #tpu.memory_space<vmem>>, vector<2x128xf32>,
    %41 = vector.extract_strided_slice %2 {offsets = [0, 7, 0], sizes = [2, 1, 16], strides = [1, 1, 1]} : vector<2x16x16xf32> to vector<2x1x16xf32>
    %42 = vector.shape_cast %41 : vector<2x1x16xf32> to vector<2x16xf32>
    %43 = tpu.concatenate %42, %12 in 1 : vector<2x16xf32>, vector<2x112xf32> -> vector<2x128xf32>
    %c2_16 = arith.constant 2 : index
    %c1024 = arith.constant 1024 : index
    %44 = vector.load %arg10[%c2_16, %c1024] : memref<6x2304xf32, #tpu.memory_space<vmem>>, vector<2x128xf32>
    tpu.vector_store %arg10[%c2_16, %c1024], %43 {strides = array<i32>} : memref<6x2304xf32, #tpu.memory_space<vmem>>, vector<2x128xf32>,
    %45 = vector.extract_strided_slice %2 {offsets = [0, 8, 0], sizes = [2, 1, 16], strides = [1, 1, 1]} : vector<2x16x16xf32> to vector<2x1x16xf32>
    %46 = vector.shape_cast %45 : vector<2x1x16xf32> to vector<2x16xf32>
    %47 = tpu.concatenate %46, %12 in 1 : vector<2x16xf32>, vector<2x112xf32> -> vector<2x128xf32>
    %c2_17 = arith.constant 2 : index
    %c1152 = arith.constant 1152 : index
    %48 = vector.load %arg10[%c2_17, %c1152] : memref<6x2304xf32, #tpu.memory_space<vmem>>, vector<2x128xf32>
    tpu.vector_store %arg10[%c2_17, %c1152], %47 {strides = array<i32>} : memref<6x2304xf32, #tpu.memory_space<vmem>>, vector<2x128xf32>,
    %49 = vector.extract_strided_slice %2 {offsets = [0, 9, 0], sizes = [2, 1, 16], strides = [1, 1, 1]} : vector<2x16x16xf32> to vector<2x1x16xf32>
    %50 = vector.shape_cast %49 : vector<2x1x16xf32> to vector<2x16xf32>
    %51 = tpu.concatenate %50, %12 in 1 : vector<2x16xf32>, vector<2x112xf32> -> vector<2x128xf32>
    %c2_18 = arith.constant 2 : index
    %c1280 = arith.constant 1280 : index
    %52 = vector.load %arg10[%c2_18, %c1280] : memref<6x2304xf32, #tpu.memory_space<vmem>>, vector<2x128xf32>
    tpu.vector_store %arg10[%c2_18, %c1280], %51 {strides = array<i32>} : memref<6x2304xf32, #tpu.memory_space<vmem>>, vector<2x128xf32>,
    %53 = vector.extract_strided_slice %2 {offsets = [0, 10, 0], sizes = [2, 1, 16], strides = [1, 1, 1]} : vector<2x16x16xf32> to vector<2x1x16xf32>
    %54 = vector.shape_cast %53 : vector<2x1x16xf32> to vector<2x16xf32>
    %55 = tpu.concatenate %54, %12 in 1 : vector<2x16xf32>, vector<2x112xf32> -> vector<2x128xf32>
    %c2_19 = arith.constant 2 : index
    %c1408 = arith.constant 1408 : index
    %56 = vector.load %arg10[%c2_19, %c1408] : memref<6x2304xf32, #tpu.memory_space<vmem>>, vector<2x128xf32>
    tpu.vector_store %arg10[%c2_19, %c1408], %55 {strides = array<i32>} : memref<6x2304xf32, #tpu.memory_space<vmem>>, vector<2x128xf32>,
    %57 = vector.extract_strided_slice %2 {offsets = [0, 11, 0], sizes = [2, 1, 16], strides = [1, 1, 1]} : vector<2x16x16xf32> to vector<2x1x16xf32>
    %58 = vector.shape_cast %57 : vector<2x1x16xf32> to vector<2x16xf32>
    %59 = tpu.concatenate %58, %12 in 1 : vector<2x16xf32>, vector<2x112xf32> -> vector<2x128xf32>
    %c2_20 = arith.constant 2 : index
    %c1536 = arith.constant 1536 : index
    %60 = vector.load %arg10[%c2_20, %c1536] : memref<6x2304xf32, #tpu.memory_space<vmem>>, vector<2x128xf32>
    tpu.vector_store %arg10[%c2_20, %c1536], %59 {strides = array<i32>} : memref<6x2304xf32, #tpu.memory_space<vmem>>, vector<2x128xf32>,
    %61 = vector.extract_strided_slice %2 {offsets = [0, 12, 0], sizes = [2, 1, 16], strides = [1, 1, 1]} : vector<2x16x16xf32> to vector<2x1x16xf32>
    %62 = vector.shape_cast %61 : vector<2x1x16xf32> to vector<2x16xf32>
    %63 = tpu.concatenate %62, %12 in 1 : vector<2x16xf32>, vector<2x112xf32> -> vector<2x128xf32>
    %c2_21 = arith.constant 2 : index
    %c1664 = arith.constant 1664 : index
    %64 = vector.load %arg10[%c2_21, %c1664] : memref<6x2304xf32, #tpu.memory_space<vmem>>, vector<2x128xf32>
    tpu.vector_store %arg10[%c2_21, %c1664], %63 {strides = array<i32>} : memref<6x2304xf32, #tpu.memory_space<vmem>>, vector<2x128xf32>,
    %65 = vector.extract_strided_slice %2 {offsets = [0, 13, 0], sizes = [2, 1, 16], strides = [1, 1, 1]} : vector<2x16x16xf32> to vector<2x1x16xf32>
    %66 = vector.shape_cast %65 : vector<2x1x16xf32> to vector<2x16xf32>
    %67 = tpu.concatenate %66, %12 in 1 : vector<2x16xf32>, vector<2x112xf32> -> vector<2x128xf32>
    %c2_22 = arith.constant 2 : index
    %c1792 = arith.constant 1792 : index
    %68 = vector.load %arg10[%c2_22, %c1792] : memref<6x2304xf32, #tpu.memory_space<vmem>>, vector<2x128xf32>
    tpu.vector_store %arg10[%c2_22, %c1792], %67 {strides = array<i32>} : memref<6x2304xf32, #tpu.memory_space<vmem>>, vector<2x128xf32>,
    %69 = vector.extract_strided_slice %2 {offsets = [0, 14, 0], sizes = [2, 1, 16], strides = [1, 1, 1]} : vector<2x16x16xf32> to vector<2x1x16xf32>
    %70 = vector.shape_cast %69 : vector<2x1x16xf32> to vector<2x16xf32>
    %71 = tpu.concatenate %70, %12 in 1 : vector<2x16xf32>, vector<2x112xf32> -> vector<2x128xf32>
    %c2_23 = arith.constant 2 : index
    %c1920 = arith.constant 1920 : index
    %72 = vector.load %arg10[%c2_23, %c1920] : memref<6x2304xf32, #tpu.memory_space<vmem>>, vector<2x128xf32>
    tpu.vector_store %arg10[%c2_23, %c1920], %71 {strides = array<i32>} : memref<6x2304xf32, #tpu.memory_space<vmem>>, vector<2x128xf32>,
    %73 = vector.extract_strided_slice %2 {offsets = [0, 15, 0], sizes = [2, 1, 16], strides = [1, 1, 1]} : vector<2x16x16xf32> to vector<2x1x16xf32>
    %74 = vector.shape_cast %73 : vector<2x1x16xf32> to vector<2x16xf32>
    %75 = tpu.concatenate %74, %12 in 1 : vector<2x16xf32>, vector<2x112xf32> -> vector<2x128xf32>
    %c2_24 = arith.constant 2 : index
    %c2048 = arith.constant 2048 : index
    %76 = vector.load %arg10[%c2_24, %c2048] : memref<6x2304xf32, #tpu.memory_space<vmem>>, vector<2x128xf32>
    tpu.vector_store %arg10[%c2_24, %c2048], %75 {strides = array<i32>} : memref<6x2304xf32, #tpu.memory_space<vmem>>, vector<2x128xf32>,
    %c2_25 = arith.constant 2 : index
    %c0_26 = arith.constant 0 : index
    %77 = vector.load %arg10[%c2_25, %c0_26] : memref<6x2304xf32, #tpu.memory_space<vmem>>, vector<2x2304xf32>
    %cst_27 = arith.constant 0.000000e+00 : f32
    %78 = vector.broadcast %cst_27 : f32 to vector<2x1xf32>
    %79 = vector.extract_strided_slice %77 {offsets = [0, 0], sizes = [2, 2303], strides = [1, 1]} : vector<2x2304xf32> to vector<2x2303xf32>
    %80 = tpu.concatenate %78, %79 in 1 : vector<2x1xf32>, vector<2x2303xf32> -> vector<2x2304xf32>
    %c0_28 = arith.constant 0 : index
    %c0_29 = arith.constant 0 : index
    %81 = vector.load %arg10[%c0_28, %c0_29] : memref<6x2304xf32, #tpu.memory_space<vmem>>, vector<2x2304xf32>
    tpu.vector_store %arg10[%c0_28, %c0_29], %80 {strides = array<i32>} : memref<6x2304xf32, #tpu.memory_space<vmem>>, vector<2x2304xf32>,
    %82 = vector.extract_strided_slice %77 {offsets = [0, 1], sizes = [2, 2303], strides = [1, 1]} : vector<2x2304xf32> to vector<2x2303xf32>
    %83 = tpu.concatenate %82, %78 in 1 : vector<2x2303xf32>, vector<2x1xf32> -> vector<2x2304xf32>
    %c4 = arith.constant 4 : index
    %c0_30 = arith.constant 0 : index
    %84 = vector.load %arg10[%c4, %c0_30] : memref<6x2304xf32, #tpu.memory_space<vmem>>, vector<2x2304xf32>
    tpu.vector_store %arg10[%c4, %c0_30], %83 {strides = array<i32>} : memref<6x2304xf32, #tpu.memory_space<vmem>>, vector<2x2304xf32>,
    %cst_31 = arith.constant 0.000000e+00 : f32
    %85 = vector.broadcast %cst_31 : f32 to vector<16x128xf32>
    %cst_32 = arith.constant 0.000000e+00 : f32
    %86 = vector.broadcast %cst_32 : f32 to vector<16x1xf32>
    %c0_33 = arith.constant 0 : index
    %c0_34 = arith.constant 0 : index
    %c0_35 = arith.constant 0 : index
    %87 = vector.load %arg3[%c0_33, %c0_34, %c0_35] : memref<3x16x6xf32, #tpu.memory_space<vmem>>, vector<1x16x6xf32>
    %88 = vector.shape_cast %87 : vector<1x16x6xf32> to vector<16x6xf32>
    %c1 = arith.constant 1 : index
    %c0_36 = arith.constant 0 : index
    %c0_37 = arith.constant 0 : index
    %89 = vector.load %arg3[%c1, %c0_36, %c0_37] : memref<3x16x6xf32, #tpu.memory_space<vmem>>, vector<1x16x6xf32>
    %90 = vector.shape_cast %89 : vector<1x16x6xf32> to vector<16x6xf32>
    %c2_38 = arith.constant 2 : index
    %c0_39 = arith.constant 0 : index
    %c0_40 = arith.constant 0 : index
    %91 = vector.load %arg3[%c2_38, %c0_39, %c0_40] : memref<3x16x6xf32, #tpu.memory_space<vmem>>, vector<1x16x6xf32>
    %92 = vector.shape_cast %91 : vector<1x16x6xf32> to vector<16x6xf32>
    %c0_41 = arith.constant 0 : index
    %c0_42 = arith.constant 0 : index
    %93 = vector.load %arg4[%c0_41, %c0_42] : memref<16x1xf32, #tpu.memory_space<vmem>>, vector<16x1xf32>
    %94 = vector.shape_cast %93 : vector<16x1xf32> to vector<16x1xf32>
    %95 = vector.broadcast %94 : vector<16x1xf32> to vector<16x1024xf32>
    %c0_43 = arith.constant 0 : index
    %c0_44 = arith.constant 0 : index
    %96 = vector.load %arg10[%c0_43, %c0_44] : memref<6x2304xf32, #tpu.memory_space<vmem>>, vector<6x1024xf32>
    %cst_45 = arith.constant dense<0.000000e+00> : vector<16x1024xf32>
    %97 = tpu.matmul %88, %96, %cst_45 {dimension_numbers = #tpu.dot_dimension_numbers<[1], [0], [0], [1], [0, 0, 1, 1], [], []>} : vector<16x6xf32>, vector<6x1024xf32>, vector<16x1024xf32> -> vector<16x1024xf32>
    %c0_46 = arith.constant 0 : index
    %c128_47 = arith.constant 128 : index
    %98 = vector.load %arg10[%c0_46, %c128_47] : memref<6x2304xf32, #tpu.memory_space<vmem>>, vector<6x1024xf32>
    %cst_48 = arith.constant dense<0.000000e+00> : vector<16x1024xf32>
    %99 = tpu.matmul %90, %98, %cst_48 {dimension_numbers = #tpu.dot_dimension_numbers<[1], [0], [0], [1], [0, 0, 1, 1], [], []>} : vector<16x6xf32>, vector<6x1024xf32>, vector<16x1024xf32> -> vector<16x1024xf32>
    %100 = arith.addf %97, %99 : vector<16x1024xf32>
    %c0_49 = arith.constant 0 : index
    %c256_50 = arith.constant 256 : index
    %101 = vector.load %arg10[%c0_49, %c256_50] : memref<6x2304xf32, #tpu.memory_space<vmem>>, vector<6x1024xf32>
    %cst_51 = arith.constant dense<0.000000e+00> : vector<16x1024xf32>
    %102 = tpu.matmul %92, %101, %cst_51 {dimension_numbers = #tpu.dot_dimension_numbers<[1], [0], [0], [1], [0, 0, 1, 1], [], []>} : vector<16x6xf32>, vector<6x1024xf32>, vector<16x1024xf32> -> vector<16x1024xf32>
    %103 = arith.addf %100, %102 : vector<16x1024xf32>
    %104 = arith.addf %103, %95 : vector<16x1024xf32>
    %cst_52 = arith.constant 0.000000e+00 : f32
    %105 = vector.broadcast %cst_52 : f32 to vector<16x1024xf32>
    %106 = arith.maximumf %104, %105 : vector<16x1024xf32>
    %107 = vector.broadcast %0 : vector<1x1024xf32> to vector<16x1024xf32>
    %108 = arith.mulf %106, %107 : vector<16x1024xf32>
    %c16 = arith.constant 16 : index
    %c128_53 = arith.constant 128 : index
    %109 = vector.load %arg11[%c16, %c128_53] : memref<48x2304xf32, #tpu.memory_space<vmem>>, vector<16x1024xf32>
    tpu.vector_store %arg11[%c16, %c128_53], %108 {strides = array<i32>} : memref<48x2304xf32, #tpu.memory_space<vmem>>, vector<16x1024xf32>,
    %c0_54 = arith.constant 0 : index
    %c1024_55 = arith.constant 1024 : index
    %110 = vector.load %arg10[%c0_54, %c1024_55] : memref<6x2304xf32, #tpu.memory_space<vmem>>, vector<6x1024xf32>
    %cst_56 = arith.constant dense<0.000000e+00> : vector<16x1024xf32>
    %111 = tpu.matmul %88, %110, %cst_56 {dimension_numbers = #tpu.dot_dimension_numbers<[1], [0], [0], [1], [0, 0, 1, 1], [], []>} : vector<16x6xf32>, vector<6x1024xf32>, vector<16x1024xf32> -> vector<16x1024xf32>
    %c0_57 = arith.constant 0 : index
    %c1152_58 = arith.constant 1152 : index
    %112 = vector.load %arg10[%c0_57, %c1152_58] : memref<6x2304xf32, #tpu.memory_space<vmem>>, vector<6x1024xf32>
    %cst_59 = arith.constant dense<0.000000e+00> : vector<16x1024xf32>
    %113 = tpu.matmul %90, %112, %cst_59 {dimension_numbers = #tpu.dot_dimension_numbers<[1], [0], [0], [1], [0, 0, 1, 1], [], []>} : vector<16x6xf32>, vector<6x1024xf32>, vector<16x1024xf32> -> vector<16x1024xf32>
    %114 = arith.addf %111, %113 : vector<16x1024xf32>
    %c0_60 = arith.constant 0 : index
    %c1280_61 = arith.constant 1280 : index
    %115 = vector.load %arg10[%c0_60, %c1280_61] : memref<6x2304xf32, #tpu.memory_space<vmem>>, vector<6x1024xf32>
    %cst_62 = arith.constant dense<0.000000e+00> : vector<16x1024xf32>
    %116 = tpu.matmul %92, %115, %cst_62 {dimension_numbers = #tpu.dot_dimension_numbers<[1], [0], [0], [1], [0, 0, 1, 1], [], []>} : vector<16x6xf32>, vector<6x1024xf32>, vector<16x1024xf32> -> vector<16x1024xf32>
    %117 = arith.addf %114, %116 : vector<16x1024xf32>
    %118 = arith.addf %117, %95 : vector<16x1024xf32>
    %cst_63 = arith.constant 0.000000e+00 : f32
    %119 = vector.broadcast %cst_63 : f32 to vector<16x1024xf32>
    %120 = arith.maximumf %118, %119 : vector<16x1024xf32>
    %121 = vector.broadcast %0 : vector<1x1024xf32> to vector<16x1024xf32>
    %122 = arith.mulf %120, %121 : vector<16x1024xf32>
    %c16_64 = arith.constant 16 : index
    %c1152_65 = arith.constant 1152 : index
    %123 = vector.load %arg11[%c16_64, %c1152_65] : memref<48x2304xf32, #tpu.memory_space<vmem>>, vector<16x1024xf32>
    tpu.vector_store %arg11[%c16_64, %c1152_65], %122 {strides = array<i32>} : memref<48x2304xf32, #tpu.memory_space<vmem>>, vector<16x1024xf32>,
    %c16_66 = arith.constant 16 : index
    %c0_67 = arith.constant 0 : index
    %124 = vector.load %arg11[%c16_66, %c0_67] : memref<48x2304xf32, #tpu.memory_space<vmem>>, vector<16x128xf32>
    tpu.vector_store %arg11[%c16_66, %c0_67], %85 {strides = array<i32>} : memref<48x2304xf32, #tpu.memory_space<vmem>>, vector<16x128xf32>,
    %c16_68 = arith.constant 16 : index
    %c2176_69 = arith.constant 2176 : index
    %125 = vector.load %arg11[%c16_68, %c2176_69] : memref<48x2304xf32, #tpu.memory_space<vmem>>, vector<16x128xf32>
    tpu.vector_store %arg11[%c16_68, %c2176_69], %85 {strides = array<i32>} : memref<48x2304xf32, #tpu.memory_space<vmem>>, vector<16x128xf32>,
    %c16_70 = arith.constant 16 : index
    %c0_71 = arith.constant 0 : index
    %126 = vector.load %arg11[%c16_70, %c0_71] : memref<48x2304xf32, #tpu.memory_space<vmem>>, vector<16x2304xf32>
    %127 = vector.extract_strided_slice %126 {offsets = [0, 0], sizes = [16, 2303], strides = [1, 1]} : vector<16x2304xf32> to vector<16x2303xf32>
    %128 = tpu.concatenate %86, %127 in 1 : vector<16x1xf32>, vector<16x2303xf32> -> vector<16x2304xf32>
    %c0_72 = arith.constant 0 : index
    %c0_73 = arith.constant 0 : index
    %129 = vector.load %arg11[%c0_72, %c0_73] : memref<48x2304xf32, #tpu.memory_space<vmem>>, vector<16x2304xf32>
    tpu.vector_store %arg11[%c0_72, %c0_73], %128 {strides = array<i32>} : memref<48x2304xf32, #tpu.memory_space<vmem>>, vector<16x2304xf32>,
    %130 = vector.extract_strided_slice %126 {offsets = [0, 1], sizes = [16, 2303], strides = [1, 1]} : vector<16x2304xf32> to vector<16x2303xf32>
    %131 = tpu.concatenate %130, %86 in 1 : vector<16x2303xf32>, vector<16x1xf32> -> vector<16x2304xf32>
    %c32 = arith.constant 32 : index
    %c0_74 = arith.constant 0 : index
    %132 = vector.load %arg11[%c32, %c0_74] : memref<48x2304xf32, #tpu.memory_space<vmem>>, vector<16x2304xf32>
    tpu.vector_store %arg11[%c32, %c0_74], %131 {strides = array<i32>} : memref<48x2304xf32, #tpu.memory_space<vmem>>, vector<16x2304xf32>,
    %c0_75 = arith.constant 0 : index
    %c0_76 = arith.constant 0 : index
    %c0_77 = arith.constant 0 : index
    %133 = vector.load %arg5[%c0_75, %c0_76, %c0_77] : memref<3x16x48xf32, #tpu.memory_space<vmem>>, vector<1x16x48xf32>
    %134 = vector.shape_cast %133 : vector<1x16x48xf32> to vector<16x48xf32>
    %c1_78 = arith.constant 1 : index
    %c0_79 = arith.constant 0 : index
    %c0_80 = arith.constant 0 : index
    %135 = vector.load %arg5[%c1_78, %c0_79, %c0_80] : memref<3x16x48xf32, #tpu.memory_space<vmem>>, vector<1x16x48xf32>
    %136 = vector.shape_cast %135 : vector<1x16x48xf32> to vector<16x48xf32>
    %c2_81 = arith.constant 2 : index
    %c0_82 = arith.constant 0 : index
    %c0_83 = arith.constant 0 : index
    %137 = vector.load %arg5[%c2_81, %c0_82, %c0_83] : memref<3x16x48xf32, #tpu.memory_space<vmem>>, vector<1x16x48xf32>
    %138 = vector.shape_cast %137 : vector<1x16x48xf32> to vector<16x48xf32>
    %c0_84 = arith.constant 0 : index
    %c0_85 = arith.constant 0 : index
    %139 = vector.load %arg6[%c0_84, %c0_85] : memref<16x1xf32, #tpu.memory_space<vmem>>, vector<16x1xf32>
    %140 = vector.shape_cast %139 : vector<16x1xf32> to vector<16x1xf32>
    %141 = vector.broadcast %140 : vector<16x1xf32> to vector<16x1024xf32>
    %c0_86 = arith.constant 0 : index
    %c0_87 = arith.constant 0 : index
    %142 = vector.load %arg11[%c0_86, %c0_87] : memref<48x2304xf32, #tpu.memory_space<vmem>>, vector<48x1024xf32>
    %cst_88 = arith.constant dense<0.000000e+00> : vector<16x1024xf32>
    %143 = tpu.matmul %134, %142, %cst_88 {dimension_numbers = #tpu.dot_dimension_numbers<[1], [0], [0], [1], [0, 0, 1, 1], [], []>} : vector<16x48xf32>, vector<48x1024xf32>, vector<16x1024xf32> -> vector<16x1024xf32>
    %c0_89 = arith.constant 0 : index
    %c128_90 = arith.constant 128 : index
    %144 = vector.load %arg11[%c0_89, %c128_90] : memref<48x2304xf32, #tpu.memory_space<vmem>>, vector<48x1024xf32>
    %cst_91 = arith.constant dense<0.000000e+00> : vector<16x1024xf32>
    %145 = tpu.matmul %136, %144, %cst_91 {dimension_numbers = #tpu.dot_dimension_numbers<[1], [0], [0], [1], [0, 0, 1, 1], [], []>} : vector<16x48xf32>, vector<48x1024xf32>, vector<16x1024xf32> -> vector<16x1024xf32>
    %146 = arith.addf %143, %145 : vector<16x1024xf32>
    %c0_92 = arith.constant 0 : index
    %c256_93 = arith.constant 256 : index
    %147 = vector.load %arg11[%c0_92, %c256_93] : memref<48x2304xf32, #tpu.memory_space<vmem>>, vector<48x1024xf32>
    %cst_94 = arith.constant dense<0.000000e+00> : vector<16x1024xf32>
    %148 = tpu.matmul %138, %147, %cst_94 {dimension_numbers = #tpu.dot_dimension_numbers<[1], [0], [0], [1], [0, 0, 1, 1], [], []>} : vector<16x48xf32>, vector<48x1024xf32>, vector<16x1024xf32> -> vector<16x1024xf32>
    %149 = arith.addf %146, %148 : vector<16x1024xf32>
    %150 = arith.addf %149, %141 : vector<16x1024xf32>
    %cst_95 = arith.constant 0.000000e+00 : f32
    %151 = vector.broadcast %cst_95 : f32 to vector<16x1024xf32>
    %152 = arith.maximumf %150, %151 : vector<16x1024xf32>
    %153 = vector.broadcast %0 : vector<1x1024xf32> to vector<16x1024xf32>
    %154 = arith.mulf %152, %153 : vector<16x1024xf32>
    %c16_96 = arith.constant 16 : index
    %c128_97 = arith.constant 128 : index
    %155 = vector.load %arg12[%c16_96, %c128_97] : memref<48x2304xf32, #tpu.memory_space<vmem>>, vector<16x1024xf32>
    tpu.vector_store %arg12[%c16_96, %c128_97], %154 {strides = array<i32>} : memref<48x2304xf32, #tpu.memory_space<vmem>>, vector<16x1024xf32>,
    %c0_98 = arith.constant 0 : index
    %c1024_99 = arith.constant 1024 : index
    %156 = vector.load %arg11[%c0_98, %c1024_99] : memref<48x2304xf32, #tpu.memory_space<vmem>>, vector<48x1024xf32>
    %cst_100 = arith.constant dense<0.000000e+00> : vector<16x1024xf32>
    %157 = tpu.matmul %134, %156, %cst_100 {dimension_numbers = #tpu.dot_dimension_numbers<[1], [0], [0], [1], [0, 0, 1, 1], [], []>} : vector<16x48xf32>, vector<48x1024xf32>, vector<16x1024xf32> -> vector<16x1024xf32>
    %c0_101 = arith.constant 0 : index
    %c1152_102 = arith.constant 1152 : index
    %158 = vector.load %arg11[%c0_101, %c1152_102] : memref<48x2304xf32, #tpu.memory_space<vmem>>, vector<48x1024xf32>
    %cst_103 = arith.constant dense<0.000000e+00> : vector<16x1024xf32>
    %159 = tpu.matmul %136, %158, %cst_103 {dimension_numbers = #tpu.dot_dimension_numbers<[1], [0], [0], [1], [0, 0, 1, 1], [], []>} : vector<16x48xf32>, vector<48x1024xf32>, vector<16x1024xf32> -> vector<16x1024xf32>
    %160 = arith.addf %157, %159 : vector<16x1024xf32>
    %c0_104 = arith.constant 0 : index
    %c1280_105 = arith.constant 1280 : index
    %161 = vector.load %arg11[%c0_104, %c1280_105] : memref<48x2304xf32, #tpu.memory_space<vmem>>, vector<48x1024xf32>
    %cst_106 = arith.constant dense<0.000000e+00> : vector<16x1024xf32>
    %162 = tpu.matmul %138, %161, %cst_106 {dimension_numbers = #tpu.dot_dimension_numbers<[1], [0], [0], [1], [0, 0, 1, 1], [], []>} : vector<16x48xf32>, vector<48x1024xf32>, vector<16x1024xf32> -> vector<16x1024xf32>
    %163 = arith.addf %160, %162 : vector<16x1024xf32>
    %164 = arith.addf %163, %141 : vector<16x1024xf32>
    %cst_107 = arith.constant 0.000000e+00 : f32
    %165 = vector.broadcast %cst_107 : f32 to vector<16x1024xf32>
    %166 = arith.maximumf %164, %165 : vector<16x1024xf32>
    %167 = vector.broadcast %0 : vector<1x1024xf32> to vector<16x1024xf32>
    %168 = arith.mulf %166, %167 : vector<16x1024xf32>
    %c16_108 = arith.constant 16 : index
    %c1152_109 = arith.constant 1152 : index
    %169 = vector.load %arg12[%c16_108, %c1152_109] : memref<48x2304xf32, #tpu.memory_space<vmem>>, vector<16x1024xf32>
    tpu.vector_store %arg12[%c16_108, %c1152_109], %168 {strides = array<i32>} : memref<48x2304xf32, #tpu.memory_space<vmem>>, vector<16x1024xf32>,
    %c16_110 = arith.constant 16 : index
    %c0_111 = arith.constant 0 : index
    %170 = vector.load %arg12[%c16_110, %c0_111] : memref<48x2304xf32, #tpu.memory_space<vmem>>, vector<16x128xf32>
    tpu.vector_store %arg12[%c16_110, %c0_111], %85 {strides = array<i32>} : memref<48x2304xf32, #tpu.memory_space<vmem>>, vector<16x128xf32>,
    %c16_112 = arith.constant 16 : index
    %c2176_113 = arith.constant 2176 : index
    %171 = vector.load %arg12[%c16_112, %c2176_113] : memref<48x2304xf32, #tpu.memory_space<vmem>>, vector<16x128xf32>
    tpu.vector_store %arg12[%c16_112, %c2176_113], %85 {strides = array<i32>} : memref<48x2304xf32, #tpu.memory_space<vmem>>, vector<16x128xf32>,
    %c16_114 = arith.constant 16 : index
    %c0_115 = arith.constant 0 : index
    %172 = vector.load %arg12[%c16_114, %c0_115] : memref<48x2304xf32, #tpu.memory_space<vmem>>, vector<16x2304xf32>
    %173 = vector.extract_strided_slice %172 {offsets = [0, 0], sizes = [16, 2303], strides = [1, 1]} : vector<16x2304xf32> to vector<16x2303xf32>
    %174 = tpu.concatenate %86, %173 in 1 : vector<16x1xf32>, vector<16x2303xf32> -> vector<16x2304xf32>
    %c0_116 = arith.constant 0 : index
    %c0_117 = arith.constant 0 : index
    %175 = vector.load %arg12[%c0_116, %c0_117] : memref<48x2304xf32, #tpu.memory_space<vmem>>, vector<16x2304xf32>
    tpu.vector_store %arg12[%c0_116, %c0_117], %174 {strides = array<i32>} : memref<48x2304xf32, #tpu.memory_space<vmem>>, vector<16x2304xf32>,
    %176 = vector.extract_strided_slice %172 {offsets = [0, 1], sizes = [16, 2303], strides = [1, 1]} : vector<16x2304xf32> to vector<16x2303xf32>
    %177 = tpu.concatenate %176, %86 in 1 : vector<16x2303xf32>, vector<16x1xf32> -> vector<16x2304xf32>
    %c32_118 = arith.constant 32 : index
    %c0_119 = arith.constant 0 : index
    %178 = vector.load %arg12[%c32_118, %c0_119] : memref<48x2304xf32, #tpu.memory_space<vmem>>, vector<16x2304xf32>
    tpu.vector_store %arg12[%c32_118, %c0_119], %177 {strides = array<i32>} : memref<48x2304xf32, #tpu.memory_space<vmem>>, vector<16x2304xf32>,
    %c0_120 = arith.constant 0 : index
    %c0_121 = arith.constant 0 : index
    %c0_122 = arith.constant 0 : index
    %179 = vector.load %arg7[%c0_120, %c0_121, %c0_122] : memref<3x16x48xf32, #tpu.memory_space<vmem>>, vector<1x16x48xf32>
    %180 = vector.shape_cast %179 : vector<1x16x48xf32> to vector<16x48xf32>
    %c1_123 = arith.constant 1 : index
    %c0_124 = arith.constant 0 : index
    %c0_125 = arith.constant 0 : index
    %181 = vector.load %arg7[%c1_123, %c0_124, %c0_125] : memref<3x16x48xf32, #tpu.memory_space<vmem>>, vector<1x16x48xf32>
    %182 = vector.shape_cast %181 : vector<1x16x48xf32> to vector<16x48xf32>
    %c2_126 = arith.constant 2 : index
    %c0_127 = arith.constant 0 : index
    %c0_128 = arith.constant 0 : index
    %183 = vector.load %arg7[%c2_126, %c0_127, %c0_128] : memref<3x16x48xf32, #tpu.memory_space<vmem>>, vector<1x16x48xf32>
    %184 = vector.shape_cast %183 : vector<1x16x48xf32> to vector<16x48xf32>
    %c0_129 = arith.constant 0 : index
    %c0_130 = arith.constant 0 : index
    %185 = vector.load %arg8[%c0_129, %c0_130] : memref<16x1xf32, #tpu.memory_space<vmem>>, vector<16x1xf32>
    %186 = vector.shape_cast %185 : vector<16x1xf32> to vector<16x1xf32>
    %187 = vector.broadcast %186 : vector<16x1xf32> to vector<16x1024xf32>
    %c0_131 = arith.constant 0 : index
    %c0_132 = arith.constant 0 : index
    %188 = vector.load %arg12[%c0_131, %c0_132] : memref<48x2304xf32, #tpu.memory_space<vmem>>, vector<48x1024xf32>
    %cst_133 = arith.constant dense<0.000000e+00> : vector<16x1024xf32>
    %189 = tpu.matmul %180, %188, %cst_133 {dimension_numbers = #tpu.dot_dimension_numbers<[1], [0], [0], [1], [0, 0, 1, 1], [], []>} : vector<16x48xf32>, vector<48x1024xf32>, vector<16x1024xf32> -> vector<16x1024xf32>
    %c0_134 = arith.constant 0 : index
    %c128_135 = arith.constant 128 : index
    %190 = vector.load %arg12[%c0_134, %c128_135] : memref<48x2304xf32, #tpu.memory_space<vmem>>, vector<48x1024xf32>
    %cst_136 = arith.constant dense<0.000000e+00> : vector<16x1024xf32>
    %191 = tpu.matmul %182, %190, %cst_136 {dimension_numbers = #tpu.dot_dimension_numbers<[1], [0], [0], [1], [0, 0, 1, 1], [], []>} : vector<16x48xf32>, vector<48x1024xf32>, vector<16x1024xf32> -> vector<16x1024xf32>
    %192 = arith.addf %189, %191 : vector<16x1024xf32>
    %c0_137 = arith.constant 0 : index
    %c256_138 = arith.constant 256 : index
    %193 = vector.load %arg12[%c0_137, %c256_138] : memref<48x2304xf32, #tpu.memory_space<vmem>>, vector<48x1024xf32>
    %cst_139 = arith.constant dense<0.000000e+00> : vector<16x1024xf32>
    %194 = tpu.matmul %184, %193, %cst_139 {dimension_numbers = #tpu.dot_dimension_numbers<[1], [0], [0], [1], [0, 0, 1, 1], [], []>} : vector<16x48xf32>, vector<48x1024xf32>, vector<16x1024xf32> -> vector<16x1024xf32>
    %195 = arith.addf %192, %194 : vector<16x1024xf32>
    %196 = arith.addf %195, %187 : vector<16x1024xf32>
    %197 = vector.extract_strided_slice %196 {offsets = [0, 0], sizes = [2, 16], strides = [1, 1]} : vector<16x1024xf32> to vector<2x16xf32>
    %c0_140 = arith.constant 0 : index
    %c0_141 = arith.constant 0 : index
    %c0_142 = arith.constant 0 : index
    %c0_143 = arith.constant 0 : index
    %198 = vector.load %arg9[%c0_140, %c0_141, %c0_142, %c0_143] : memref<1x2x16x16xf32, #tpu.memory_space<vmem>>, vector<1x2x1x16xf32>
    %199 = vector.shape_cast %198 : vector<1x2x1x16xf32> to vector<2x16xf32>
    %200 = vector.shape_cast %197 : vector<2x16xf32> to vector<1x2x1x16xf32>
    tpu.vector_store %arg9[%c0_140, %c0_141, %c0_142, %c0_143], %200 {strides = array<i32>} : memref<1x2x16x16xf32, #tpu.memory_space<vmem>>, vector<1x2x1x16xf32>,
    %201 = vector.extract_strided_slice %196 {offsets = [0, 128], sizes = [2, 16], strides = [1, 1]} : vector<16x1024xf32> to vector<2x16xf32>
    %c0_144 = arith.constant 0 : index
    %c0_145 = arith.constant 0 : index
    %c1_146 = arith.constant 1 : index
    %c0_147 = arith.constant 0 : index
    %202 = vector.load %arg9[%c0_144, %c0_145, %c1_146, %c0_147] : memref<1x2x16x16xf32, #tpu.memory_space<vmem>>, vector<1x2x1x16xf32>
    %203 = vector.shape_cast %202 : vector<1x2x1x16xf32> to vector<2x16xf32>
    %204 = vector.shape_cast %201 : vector<2x16xf32> to vector<1x2x1x16xf32>
    tpu.vector_store %arg9[%c0_144, %c0_145, %c1_146, %c0_147], %204 {strides = array<i32>} : memref<1x2x16x16xf32, #tpu.memory_space<vmem>>, vector<1x2x1x16xf32>,
    %205 = vector.extract_strided_slice %196 {offsets = [0, 256], sizes = [2, 16], strides = [1, 1]} : vector<16x1024xf32> to vector<2x16xf32>
    %c0_148 = arith.constant 0 : index
    %c0_149 = arith.constant 0 : index
    %c2_150 = arith.constant 2 : index
    %c0_151 = arith.constant 0 : index
    %206 = vector.load %arg9[%c0_148, %c0_149, %c2_150, %c0_151] : memref<1x2x16x16xf32, #tpu.memory_space<vmem>>, vector<1x2x1x16xf32>
    %207 = vector.shape_cast %206 : vector<1x2x1x16xf32> to vector<2x16xf32>
    %208 = vector.shape_cast %205 : vector<2x16xf32> to vector<1x2x1x16xf32>
    tpu.vector_store %arg9[%c0_148, %c0_149, %c2_150, %c0_151], %208 {strides = array<i32>} : memref<1x2x16x16xf32, #tpu.memory_space<vmem>>, vector<1x2x1x16xf32>,
    %209 = vector.extract_strided_slice %196 {offsets = [0, 384], sizes = [2, 16], strides = [1, 1]} : vector<16x1024xf32> to vector<2x16xf32>
    %c0_152 = arith.constant 0 : index
    %c0_153 = arith.constant 0 : index
    %c3 = arith.constant 3 : index
    %c0_154 = arith.constant 0 : index
    %210 = vector.load %arg9[%c0_152, %c0_153, %c3, %c0_154] : memref<1x2x16x16xf32, #tpu.memory_space<vmem>>, vector<1x2x1x16xf32>
    %211 = vector.shape_cast %210 : vector<1x2x1x16xf32> to vector<2x16xf32>
    %212 = vector.shape_cast %209 : vector<2x16xf32> to vector<1x2x1x16xf32>
    tpu.vector_store %arg9[%c0_152, %c0_153, %c3, %c0_154], %212 {strides = array<i32>} : memref<1x2x16x16xf32, #tpu.memory_space<vmem>>, vector<1x2x1x16xf32>,
    %213 = vector.extract_strided_slice %196 {offsets = [0, 512], sizes = [2, 16], strides = [1, 1]} : vector<16x1024xf32> to vector<2x16xf32>
    %c0_155 = arith.constant 0 : index
    %c0_156 = arith.constant 0 : index
    %c4_157 = arith.constant 4 : index
    %c0_158 = arith.constant 0 : index
    %214 = vector.load %arg9[%c0_155, %c0_156, %c4_157, %c0_158] : memref<1x2x16x16xf32, #tpu.memory_space<vmem>>, vector<1x2x1x16xf32>
    %215 = vector.shape_cast %214 : vector<1x2x1x16xf32> to vector<2x16xf32>
    %216 = vector.shape_cast %213 : vector<2x16xf32> to vector<1x2x1x16xf32>
    tpu.vector_store %arg9[%c0_155, %c0_156, %c4_157, %c0_158], %216 {strides = array<i32>} : memref<1x2x16x16xf32, #tpu.memory_space<vmem>>, vector<1x2x1x16xf32>,
    %217 = vector.extract_strided_slice %196 {offsets = [0, 640], sizes = [2, 16], strides = [1, 1]} : vector<16x1024xf32> to vector<2x16xf32>
    %c0_159 = arith.constant 0 : index
    %c0_160 = arith.constant 0 : index
    %c5 = arith.constant 5 : index
    %c0_161 = arith.constant 0 : index
    %218 = vector.load %arg9[%c0_159, %c0_160, %c5, %c0_161] : memref<1x2x16x16xf32, #tpu.memory_space<vmem>>, vector<1x2x1x16xf32>
    %219 = vector.shape_cast %218 : vector<1x2x1x16xf32> to vector<2x16xf32>
    %220 = vector.shape_cast %217 : vector<2x16xf32> to vector<1x2x1x16xf32>
    tpu.vector_store %arg9[%c0_159, %c0_160, %c5, %c0_161], %220 {strides = array<i32>} : memref<1x2x16x16xf32, #tpu.memory_space<vmem>>, vector<1x2x1x16xf32>,
    %221 = vector.extract_strided_slice %196 {offsets = [0, 768], sizes = [2, 16], strides = [1, 1]} : vector<16x1024xf32> to vector<2x16xf32>
    %c0_162 = arith.constant 0 : index
    %c0_163 = arith.constant 0 : index
    %c6 = arith.constant 6 : index
    %c0_164 = arith.constant 0 : index
    %222 = vector.load %arg9[%c0_162, %c0_163, %c6, %c0_164] : memref<1x2x16x16xf32, #tpu.memory_space<vmem>>, vector<1x2x1x16xf32>
    %223 = vector.shape_cast %222 : vector<1x2x1x16xf32> to vector<2x16xf32>
    %224 = vector.shape_cast %221 : vector<2x16xf32> to vector<1x2x1x16xf32>
    tpu.vector_store %arg9[%c0_162, %c0_163, %c6, %c0_164], %224 {strides = array<i32>} : memref<1x2x16x16xf32, #tpu.memory_space<vmem>>, vector<1x2x1x16xf32>,
    %225 = vector.extract_strided_slice %196 {offsets = [0, 896], sizes = [2, 16], strides = [1, 1]} : vector<16x1024xf32> to vector<2x16xf32>
    %c0_165 = arith.constant 0 : index
    %c0_166 = arith.constant 0 : index
    %c7 = arith.constant 7 : index
    %c0_167 = arith.constant 0 : index
    %226 = vector.load %arg9[%c0_165, %c0_166, %c7, %c0_167] : memref<1x2x16x16xf32, #tpu.memory_space<vmem>>, vector<1x2x1x16xf32>
    %227 = vector.shape_cast %226 : vector<1x2x1x16xf32> to vector<2x16xf32>
    %228 = vector.shape_cast %225 : vector<2x16xf32> to vector<1x2x1x16xf32>
    tpu.vector_store %arg9[%c0_165, %c0_166, %c7, %c0_167], %228 {strides = array<i32>} : memref<1x2x16x16xf32, #tpu.memory_space<vmem>>, vector<1x2x1x16xf32>,
    %c0_168 = arith.constant 0 : index
    %c1024_169 = arith.constant 1024 : index
    %229 = vector.load %arg12[%c0_168, %c1024_169] : memref<48x2304xf32, #tpu.memory_space<vmem>>, vector<48x1024xf32>
    %cst_170 = arith.constant dense<0.000000e+00> : vector<16x1024xf32>
    %230 = tpu.matmul %180, %229, %cst_170 {dimension_numbers = #tpu.dot_dimension_numbers<[1], [0], [0], [1], [0, 0, 1, 1], [], []>} : vector<16x48xf32>, vector<48x1024xf32>, vector<16x1024xf32> -> vector<16x1024xf32>
    %c0_171 = arith.constant 0 : index
    %c1152_172 = arith.constant 1152 : index
    %231 = vector.load %arg12[%c0_171, %c1152_172] : memref<48x2304xf32, #tpu.memory_space<vmem>>, vector<48x1024xf32>
    %cst_173 = arith.constant dense<0.000000e+00> : vector<16x1024xf32>
    %232 = tpu.matmul %182, %231, %cst_173 {dimension_numbers = #tpu.dot_dimension_numbers<[1], [0], [0], [1], [0, 0, 1, 1], [], []>} : vector<16x48xf32>, vector<48x1024xf32>, vector<16x1024xf32> -> vector<16x1024xf32>
    %233 = arith.addf %230, %232 : vector<16x1024xf32>
    %c0_174 = arith.constant 0 : index
    %c1280_175 = arith.constant 1280 : index
    %234 = vector.load %arg12[%c0_174, %c1280_175] : memref<48x2304xf32, #tpu.memory_space<vmem>>, vector<48x1024xf32>
    %cst_176 = arith.constant dense<0.000000e+00> : vector<16x1024xf32>
    %235 = tpu.matmul %184, %234, %cst_176 {dimension_numbers = #tpu.dot_dimension_numbers<[1], [0], [0], [1], [0, 0, 1, 1], [], []>} : vector<16x48xf32>, vector<48x1024xf32>, vector<16x1024xf32> -> vector<16x1024xf32>
    %236 = arith.addf %233, %235 : vector<16x1024xf32>
    %237 = arith.addf %236, %187 : vector<16x1024xf32>
    %238 = vector.extract_strided_slice %237 {offsets = [0, 0], sizes = [2, 16], strides = [1, 1]} : vector<16x1024xf32> to vector<2x16xf32>
    %c0_177 = arith.constant 0 : index
    %c0_178 = arith.constant 0 : index
    %c8 = arith.constant 8 : index
    %c0_179 = arith.constant 0 : index
    %239 = vector.load %arg9[%c0_177, %c0_178, %c8, %c0_179] : memref<1x2x16x16xf32, #tpu.memory_space<vmem>>, vector<1x2x1x16xf32>
    %240 = vector.shape_cast %239 : vector<1x2x1x16xf32> to vector<2x16xf32>
    %241 = vector.shape_cast %238 : vector<2x16xf32> to vector<1x2x1x16xf32>
    tpu.vector_store %arg9[%c0_177, %c0_178, %c8, %c0_179], %241 {strides = array<i32>} : memref<1x2x16x16xf32, #tpu.memory_space<vmem>>, vector<1x2x1x16xf32>,
    %242 = vector.extract_strided_slice %237 {offsets = [0, 128], sizes = [2, 16], strides = [1, 1]} : vector<16x1024xf32> to vector<2x16xf32>
    %c0_180 = arith.constant 0 : index
    %c0_181 = arith.constant 0 : index
    %c9 = arith.constant 9 : index
    %c0_182 = arith.constant 0 : index
    %243 = vector.load %arg9[%c0_180, %c0_181, %c9, %c0_182] : memref<1x2x16x16xf32, #tpu.memory_space<vmem>>, vector<1x2x1x16xf32>
    %244 = vector.shape_cast %243 : vector<1x2x1x16xf32> to vector<2x16xf32>
    %245 = vector.shape_cast %242 : vector<2x16xf32> to vector<1x2x1x16xf32>
    tpu.vector_store %arg9[%c0_180, %c0_181, %c9, %c0_182], %245 {strides = array<i32>} : memref<1x2x16x16xf32, #tpu.memory_space<vmem>>, vector<1x2x1x16xf32>,
    %246 = vector.extract_strided_slice %237 {offsets = [0, 256], sizes = [2, 16], strides = [1, 1]} : vector<16x1024xf32> to vector<2x16xf32>
    %c0_183 = arith.constant 0 : index
    %c0_184 = arith.constant 0 : index
    %c10 = arith.constant 10 : index
    %c0_185 = arith.constant 0 : index
    %247 = vector.load %arg9[%c0_183, %c0_184, %c10, %c0_185] : memref<1x2x16x16xf32, #tpu.memory_space<vmem>>, vector<1x2x1x16xf32>
    %248 = vector.shape_cast %247 : vector<1x2x1x16xf32> to vector<2x16xf32>
    %249 = vector.shape_cast %246 : vector<2x16xf32> to vector<1x2x1x16xf32>
    tpu.vector_store %arg9[%c0_183, %c0_184, %c10, %c0_185], %249 {strides = array<i32>} : memref<1x2x16x16xf32, #tpu.memory_space<vmem>>, vector<1x2x1x16xf32>,
    %250 = vector.extract_strided_slice %237 {offsets = [0, 384], sizes = [2, 16], strides = [1, 1]} : vector<16x1024xf32> to vector<2x16xf32>
    %c0_186 = arith.constant 0 : index
    %c0_187 = arith.constant 0 : index
    %c11 = arith.constant 11 : index
    %c0_188 = arith.constant 0 : index
    %251 = vector.load %arg9[%c0_186, %c0_187, %c11, %c0_188] : memref<1x2x16x16xf32, #tpu.memory_space<vmem>>, vector<1x2x1x16xf32>
    %252 = vector.shape_cast %251 : vector<1x2x1x16xf32> to vector<2x16xf32>
    %253 = vector.shape_cast %250 : vector<2x16xf32> to vector<1x2x1x16xf32>
    tpu.vector_store %arg9[%c0_186, %c0_187, %c11, %c0_188], %253 {strides = array<i32>} : memref<1x2x16x16xf32, #tpu.memory_space<vmem>>, vector<1x2x1x16xf32>,
    %254 = vector.extract_strided_slice %237 {offsets = [0, 512], sizes = [2, 16], strides = [1, 1]} : vector<16x1024xf32> to vector<2x16xf32>
    %c0_189 = arith.constant 0 : index
    %c0_190 = arith.constant 0 : index
    %c12 = arith.constant 12 : index
    %c0_191 = arith.constant 0 : index
    %255 = vector.load %arg9[%c0_189, %c0_190, %c12, %c0_191] : memref<1x2x16x16xf32, #tpu.memory_space<vmem>>, vector<1x2x1x16xf32>
    %256 = vector.shape_cast %255 : vector<1x2x1x16xf32> to vector<2x16xf32>
    %257 = vector.shape_cast %254 : vector<2x16xf32> to vector<1x2x1x16xf32>
    tpu.vector_store %arg9[%c0_189, %c0_190, %c12, %c0_191], %257 {strides = array<i32>} : memref<1x2x16x16xf32, #tpu.memory_space<vmem>>, vector<1x2x1x16xf32>,
    %258 = vector.extract_strided_slice %237 {offsets = [0, 640], sizes = [2, 16], strides = [1, 1]} : vector<16x1024xf32> to vector<2x16xf32>
    %c0_192 = arith.constant 0 : index
    %c0_193 = arith.constant 0 : index
    %c13 = arith.constant 13 : index
    %c0_194 = arith.constant 0 : index
    %259 = vector.load %arg9[%c0_192, %c0_193, %c13, %c0_194] : memref<1x2x16x16xf32, #tpu.memory_space<vmem>>, vector<1x2x1x16xf32>
    %260 = vector.shape_cast %259 : vector<1x2x1x16xf32> to vector<2x16xf32>
    %261 = vector.shape_cast %258 : vector<2x16xf32> to vector<1x2x1x16xf32>
    tpu.vector_store %arg9[%c0_192, %c0_193, %c13, %c0_194], %261 {strides = array<i32>} : memref<1x2x16x16xf32, #tpu.memory_space<vmem>>, vector<1x2x1x16xf32>,
    %262 = vector.extract_strided_slice %237 {offsets = [0, 768], sizes = [2, 16], strides = [1, 1]} : vector<16x1024xf32> to vector<2x16xf32>
    %c0_195 = arith.constant 0 : index
    %c0_196 = arith.constant 0 : index
    %c14 = arith.constant 14 : index
    %c0_197 = arith.constant 0 : index
    %263 = vector.load %arg9[%c0_195, %c0_196, %c14, %c0_197] : memref<1x2x16x16xf32, #tpu.memory_space<vmem>>, vector<1x2x1x16xf32>
    %264 = vector.shape_cast %263 : vector<1x2x1x16xf32> to vector<2x16xf32>
    %265 = vector.shape_cast %262 : vector<2x16xf32> to vector<1x2x1x16xf32>
    tpu.vector_store %arg9[%c0_195, %c0_196, %c14, %c0_197], %265 {strides = array<i32>} : memref<1x2x16x16xf32, #tpu.memory_space<vmem>>, vector<1x2x1x16xf32>,
    %266 = vector.extract_strided_slice %237 {offsets = [0, 896], sizes = [2, 16], strides = [1, 1]} : vector<16x1024xf32> to vector<2x16xf32>
    %c0_198 = arith.constant 0 : index
    %c0_199 = arith.constant 0 : index
    %c15 = arith.constant 15 : index
    %c0_200 = arith.constant 0 : index
    %267 = vector.load %arg9[%c0_198, %c0_199, %c15, %c0_200] : memref<1x2x16x16xf32, #tpu.memory_space<vmem>>, vector<1x2x1x16xf32>
    %268 = vector.shape_cast %267 : vector<1x2x1x16xf32> to vector<2x16xf32>
    %269 = vector.shape_cast %266 : vector<2x16xf32> to vector<1x2x1x16xf32>
    tpu.vector_store %arg9[%c0_198, %c0_199, %c15, %c0_200], %269 {strides = array<i32>} : memref<1x2x16x16xf32, #tpu.memory_space<vmem>>, vector<1x2x1x16xf32>,
    %c0_201 = arith.constant 0 : index
    %c0_202 = arith.constant 0 : index
    %c0_203 = arith.constant 0 : index
    %c0_204 = arith.constant 0 : index
    %270 = vector.load %arg9[%c0_201, %c0_202, %c0_203, %c0_204] : memref<1x2x16x16xf32, #tpu.memory_space<vmem>>, vector<1x2x16x16xf32>
    %271 = arith.mulf %270, %270 : vector<1x2x16x16xf32>
    %272 = vector.shape_cast %271 : vector<1x2x16x16xf32> to vector<1x1x2x16x16xf32>
    %cst_205 = arith.constant dense<0.000000e+00> : vector<1xf32>
    %273 = vector.multi_reduction <add>, %272, %cst_205 [1, 2, 3, 4] : vector<1x1x2x16x16xf32> to vector<1xf32>
    %274 = vector.shape_cast %273 : vector<1xf32> to vector<1x1x1x1x1xf32>
    %275 = vector.extract %274[0, 0, 0, 0, 0] : f32 from vector<1x1x1x1x1xf32>
    %276 = math.sqrt %275 : f32
    %cst_206 = arith.constant 9.99999993E-9 : f32
    %277 = arith.addf %276, %cst_206 : f32
    %278 = arith.divf %8, %277 : f32
    %279 = vector.broadcast %278 : f32 to vector<1x2x16x16xf32>
    %280 = arith.mulf %270, %279 : vector<1x2x16x16xf32>
    %c0_207 = arith.constant 0 : index
    %c0_208 = arith.constant 0 : index
    %c0_209 = arith.constant 0 : index
    %c0_210 = arith.constant 0 : index
    %281 = vector.load %arg9[%c0_207, %c0_208, %c0_209, %c0_210] : memref<1x2x16x16xf32, #tpu.memory_space<vmem>>, vector<1x2x16x16xf32>
    tpu.vector_store %arg9[%c0_207, %c0_208, %c0_209, %c0_210], %280 {strides = array<i32>} : memref<1x2x16x16xf32, #tpu.memory_space<vmem>>, vector<1x2x16x16xf32>,
    return
  }
  func.func @transform_0(%arg0: i32) -> (i32, i32, i32, i32) {
    %c0_i32 = arith.constant 0 : i32
    %c0_i32_0 = arith.constant 0 : i32
    %c0_i32_1 = arith.constant 0 : i32
    %c0_i32_2 = arith.constant 0 : i32
    return %arg0, %c0_i32, %c0_i32_0, %c0_i32_1 : i32, i32, i32, i32
  }
  func.func @transform_1(%arg0: i32) -> (i32, i32) {
    %c0_i32 = arith.constant 0 : i32
    %c0_i32_0 = arith.constant 0 : i32
    %c0_i32_1 = arith.constant 0 : i32
    return %c0_i32, %c0_i32_0 : i32, i32
  }
  func.func @transform_2(%arg0: i32) -> (i32, i32, i32) {
    %c0_i32 = arith.constant 0 : i32
    %c0_i32_0 = arith.constant 0 : i32
    %c0_i32_1 = arith.constant 0 : i32
    %c0_i32_2 = arith.constant 0 : i32
    return %c0_i32, %c0_i32_0, %c0_i32_1 : i32, i32, i32
  }
  func.func @transform_3(%arg0: i32) -> (i32, i32) {
    %c0_i32 = arith.constant 0 : i32
    %c0_i32_0 = arith.constant 0 : i32
    %c0_i32_1 = arith.constant 0 : i32
    return %c0_i32, %c0_i32_0 : i32, i32
  }
  func.func @transform_4(%arg0: i32) -> (i32, i32, i32) {
    %c0_i32 = arith.constant 0 : i32
    %c0_i32_0 = arith.constant 0 : i32
    %c0_i32_1 = arith.constant 0 : i32
    %c0_i32_2 = arith.constant 0 : i32
    return %c0_i32, %c0_i32_0, %c0_i32_1 : i32, i32, i32
  }
  func.func @transform_5(%arg0: i32) -> (i32, i32) {
    %c0_i32 = arith.constant 0 : i32
    %c0_i32_0 = arith.constant 0 : i32
    %c0_i32_1 = arith.constant 0 : i32
    return %c0_i32, %c0_i32_0 : i32, i32
  }
  func.func @transform_6(%arg0: i32) -> (i32, i32, i32) {
    %c0_i32 = arith.constant 0 : i32
    %c0_i32_0 = arith.constant 0 : i32
    %c0_i32_1 = arith.constant 0 : i32
    %c0_i32_2 = arith.constant 0 : i32
    return %c0_i32, %c0_i32_0, %c0_i32_1 : i32, i32, i32
  }
  func.func @transform_7(%arg0: i32) -> (i32, i32) {
    %c0_i32 = arith.constant 0 : i32
    %c0_i32_0 = arith.constant 0 : i32
    %c0_i32_1 = arith.constant 0 : i32
    return %c0_i32, %c0_i32_0 : i32, i32
  }
  func.func @transform_8(%arg0: i32) -> (i32, i32, i32, i32) {
    %c0_i32 = arith.constant 0 : i32
    %c0_i32_0 = arith.constant 0 : i32
    %c0_i32_1 = arith.constant 0 : i32
    %c0_i32_2 = arith.constant 0 : i32
    return %arg0, %c0_i32, %c0_i32_0, %c0_i32_1 : i32, i32, i32, i32
  }
}

</mosaic_0001>

<bundles_post_ra>
// kernel: custom-call.3
= control target key start
LH: loop header
LB: loop body
LE: loop exit
PB: predicated region body
PF: predicated region fallthrough
CT: control target
= control target key end

     0   :  { %s56_s0 = inlined_call_operand.hbm [shape: c64[1,16,16,4], index: 0, kind: input, shape index: {}]   ;;  %s57_s1 = inlined_call_operand.vmem [shape: f32[1,16,16,4], index: 1, kind: output, shape index: {}]  }
   0x1   :  { %s2_s8 = scalar_lea.hbm %s56_s0, 64 }
   0x2   :  { %3 = vsyncpa [#allocation0], 0  ;;  %s5_s9 = sshll.u32 %s2_s8, 4  ;;  %s7_s12 = sshll.u32 %s57_s1, 4  ;;  %s6_s9 = int_to_ptr.hbm [resolvable:$true] %s5_s9  ;;  %s8_s12 = int_to_ptr.vmem [resolvable:$true] %s7_s12 }
   0x3   :  { %10 = dma.hbm_to_vmem [thread:$0]  %s6_s9, 1024, %s8_s12, [#allocation0] }
   0x4   :  { %38 = dma.done.wait [#allocation0], 1024  }
   0x5   :  { %39 = vsyncadd [#allocation0], 4294966272 }
   0x6   :  { %13 = vsyncpa [#allocation0], 1 }

// kernel: custom-call.2
= control target key start
LH: loop header
LB: loop body
LE: loop exit
PB: predicated region body
PF: predicated region fallthrough
CT: control target
= control target key end

     0   :  { %2 = vsyncpa [#allocation0], 0  ;;  %s55_s0 = inlined_call_operand.hbm [shape: c64[1,16,16,4], index: 0, kind: input, shape index: {}]   ;;  %s56_s1 = inlined_call_operand.vmem [shape: f32[1,16,16,4], index: 1, kind: output, shape index: {}]  }
   0x1   :  { %s4_s8 = sshll.u32 %s55_s0, 4  ;;  %s6_s11 = sshll.u32 %s56_s1, 4  ;;  %s5_s8 = int_to_ptr.hbm [resolvable:$true] %s4_s8  ;;  %s7_s11 = int_to_ptr.vmem [resolvable:$true] %s6_s11 }
   0x2   :  { %9 = dma.hbm_to_vmem [thread:$0]  %s5_s8, 1024, %s7_s11, [#allocation0] }
   0x3   :  { %37 = dma.done.wait [#allocation0], 1024  }
   0x4   :  { %38 = vsyncadd [#allocation0], 4294966272 }
   0x5   :  { %12 = vsyncpa [#allocation0], 1 }

// kernel: custom-call
= control target key start
LH: loop header
LB: loop body
LE: loop exit
PB: predicated region body
PF: predicated region fallthrough
CT: control target
= control target key end

     0   :  { %2 = vsyncpa [#allocation0], 0  ;;  %s55_s0 = inlined_call_operand.hbm [shape: c64[2,16,16], index: 0, kind: input, shape index: {}]   ;;  %s56_s1 = inlined_call_operand.vmem [shape: f32[2,16,16], index: 1, kind: output, shape index: {}]  }
   0x1   :  { %s4_s8 = sshll.u32 %s55_s0, 4  ;;  %s6_s11 = sshll.u32 %s56_s1, 4  ;;  %s5_s8 = int_to_ptr.hbm [resolvable:$true] %s4_s8  ;;  %s7_s11 = int_to_ptr.vmem [resolvable:$true] %s6_s11 }
   0x2   :  { %9 = dma.hbm_to_vmem [thread:$0]  %s5_s8, 512, %s7_s11, [#allocation0] }
   0x3   :  { %37 = dma.done.wait [#allocation0], 512  }
   0x4   :  { %38 = vsyncadd [#allocation0], 4294966784 }
   0x5   :  { %12 = vsyncpa [#allocation0], 1 }

// kernel: custom-call.1
= control target key start
LH: loop header
LB: loop body
LE: loop exit
PB: predicated region body
PF: predicated region fallthrough
CT: control target
= control target key end

     0   :  { %s56_s0 = inlined_call_operand.hbm [shape: c64[2,16,16], index: 0, kind: input, shape index: {}]   ;;  %s57_s1 = inlined_call_operand.vmem [shape: f32[2,16,16], index: 1, kind: output, shape index: {}]  }
   0x1   :  { %s2_s8 = scalar_lea.hbm %s56_s0, 32 }
   0x2   :  { %3 = vsyncpa [#allocation0], 0  ;;  %s5_s9 = sshll.u32 %s2_s8, 4  ;;  %s7_s12 = sshll.u32 %s57_s1, 4  ;;  %s6_s9 = int_to_ptr.hbm [resolvable:$true] %s5_s9  ;;  %s8_s12 = int_to_ptr.vmem [resolvable:$true] %s7_s12 }
   0x3   :  { %10 = dma.hbm_to_vmem [thread:$0]  %s6_s9, 512, %s8_s12, [#allocation0] }
   0x4   :  { %38 = dma.done.wait [#allocation0], 512  }
   0x5   :  { %39 = vsyncadd [#allocation0], 4294966784 }
   0x6   :  { %13 = vsyncpa [#allocation0], 1 }

// kernel: supervised_net_forward.7
= control target key start
LH: loop header
LB: loop body
LE: loop exit
PB: predicated region body
PF: predicated region fallthrough
CT: control target
= control target key end

     0   :  { %s419_s15 = smov 0   ;;  %s451_s0 = inlined_call_operand.vmem [shape: f32[2,2,256], index: 0, kind: input, shape index: {}]   ;;  %s452_s1 = inlined_call_operand.vmem [shape: f32[4,256], index: 1, kind: input, shape index: {}]   ;;  %s453_s2 = inlined_call_operand.vmem [shape: f32[4,256], index: 2, kind: input, shape index: {}]   ;;  %s454_s3 = inlined_call_operand.vmem [shape: f32[2,4,256], index: 3, kind: output, shape index: {0}]   ;;  %s455_s4 = inlined_call_operand.vmem [shape: f32[2,4,256], index: 4, kind: output, shape index: {1}]  }
   0x1 LB: > { %s361_s16 = sadd.s32 4294967295, %s392_s15   ;;  %p365_p0 = scmp.ge.s32.totalorder %s392_s15, 1  ;;  %s392_s15 = sphi %s419_s15, %s15_s15  }
   0x2   : > { %p165_p1 = scmp.lt.s32.totalorder %s392_s15, 3 }
   0x4   : > { %p166_p2 = pnand %p365_p0, %p165_p1 }
   0x5   : > { %p196_p3 = scmp.lt.s32.totalorder (!%p166_p2), %s361_s16, 1 }
   0x6   : > { %169 = sbr.rel (%p166_p2) target bundleno = 52 (0x34), region = 32 }
   0xb   : > { %v214_v0 = vld [vmem:[%s452_s1] sm:$0xff]  ;;  %s457_s16 = smov (!%p196_p3, %s361_s16), 1  ;;  %vm247_vm0 = vcmask 1043456  }
   0xc   : > { %222 = vst [vmem:[#allocation1] ss:$2 sm:$0xff] %v214_v0  ;;  %s375_s19 = sshll.u32 %s457_s16, 2  ;;  %v215_v1 = vld [vmem:[%s453_s2] sm:$0xff]  ;;  %s376_s25 = sshll.u32 %s457_s16, 3 }
   0xd   : > { %s200_s24 = scalar_lea.vmem %s451_s0, %s375_s19  ;;  %s205_s28 = scalar_lea.vmem %s454_s3, %s376_s25 }
   0xe   : > { %v211_v4 = vld [vmem:[%s200_s24] ss:$2 sm:$0x3]  ;;  %v372_v5 = vld [vmem:[%s200_s24 + $0x1] ss:$2 sm:$0x3]  ;;  %s210_s5 = scalar_lea.vmem %s455_s4, %s376_s25 }
   0xf   : > { %v218_v6 = vperm.slane %v211_v4, 1  ;;  %v230_v7 = vperm.slane %v372_v5, 0  ;;  %v231_v8 = vperm.slane %v372_v5, 1  ;;  %v217_v9 = vperm.slane %v211_v4, 0 }
  0x13   : > { %v223_v2 = vld.sshfl [vmem:[#allocation1] sm:$0xff pattern:$0x75316420]  ;;  %v224_v3 = vld.sshfl [vmem:[#allocation1 + $0x8] sm:$0xff pattern:$0x75316420] }
  0x14   : > { %235 = vst [vmem:[#allocation1] ss:$2 sm:$0xff] %v215_v1  ;;  %v228_v12 = vmul.f32 %v224_v3, %v218_v6  ;;  %v227_v15 = vmul.f32 %v223_v2, %v217_v9 }
  0x1b   : > { %v236_v10 = vld.sshfl [vmem:[#allocation1] sm:$0xff pattern:$0x75316420]  ;;  %v237_v11 = vld.sshfl [vmem:[#allocation1 + $0x8] sm:$0xff pattern:$0x75316420] }
  0x1c   : > { %251 = vst [vmem:[#allocation1] ss:$2 sm:$0xff] %v215_v1  ;;  %v240_v13 = vmul.f32 %v236_v10, %v230_v7  ;;  %v241_v14 = vmul.f32 %v237_v11, %v231_v8 }
  0x1e   : > { %v243_v16 = vsub.f32 %v228_v12, %v241_v14  ;;  %v242_v17 = vsub.f32 %v227_v15, %v240_v13 }
  0x20   : > { %v246_v18 = vrot.slane %v243_v16, 4 }
  0x22   : > { %v248_v19 = vsel %vm247_vm0, %v242_v17, %v246_v18 }
  0x23   : > { %250 = vst [vmem:[%s205_s28] sm:$0xff] %v248_v19  ;;  %v252_v20 = vld.sshfl [vmem:[#allocation1] sm:$0xff pattern:$0x75316420]  ;;  %v253_v21 = vld.sshfl [vmem:[#allocation1 + $0x8] sm:$0xff pattern:$0x75316420] }
  0x24   : > { %258 = vst [vmem:[#allocation1] ss:$2 sm:$0xff] %v214_v0  ;;  %v257_v24 = vmul.f32 %v253_v21, %v218_v6  ;;  %v256_v27 = vmul.f32 %v252_v20, %v217_v9 }
  0x2b   : > { %v259_v22 = vld.sshfl [vmem:[#allocation1] sm:$0xff pattern:$0x75316420]  ;;  %v260_v23 = vld.sshfl [vmem:[#allocation1 + $0x8] sm:$0xff pattern:$0x75316420] }
  0x2c   : > { %v263_v25 = vmul.f32 %v259_v22, %v230_v7  ;;  %v264_v26 = vmul.f32 %v260_v23, %v231_v8 }
  0x2e   : > { %v266_v28 = vadd.f32 %v264_v26, %v257_v24  ;;  %v265_v29 = vadd.f32 %v263_v25, %v256_v27 }
  0x30   : > { %v269_v30 = vrot.slane %v266_v28, 4 }
  0x32   : > { %v270_v31 = vsel %vm247_vm0, %v265_v29, %v269_v30 }
  0x33   : > { %272 = vst [vmem:[%s210_s5] sm:$0xff] %v270_v31 }
  0x34 PF: > { %s15_s15 = sadd.s32 1, %s392_s15  }
  0x35   : > { %p12_p4 = scmp.ge.s32.totalorder %s15_s15, 4  }
  0x37   :  { %14 = sbr.rel (!%p12_p4) target bundleno = 1 (0x1), region = 75 }

// kernel: supervised_net_forward.8
= control target key start
LH: loop header
LB: loop body
LE: loop exit
PB: predicated region body
PF: predicated region fallthrough
CT: control target
= control target key end

     0   :  { %s482_s21 = smov 0   ;;  %s514_s0 = inlined_call_operand.vmem [shape: f32[2,4,256], index: 0, kind: input, shape index: {}]   ;;  %s515_s1 = inlined_call_operand.vmem [shape: f32[2,4,256], index: 1, kind: input, shape index: {}]   ;;  %s516_s2 = inlined_call_operand.vmem [shape: f32[4,256], index: 2, kind: input, shape index: {}]   ;;  %s517_s3 = inlined_call_operand.vmem [shape: f32[4,256], index: 3, kind: input, shape index: {}]   ;;  %s518_s4 = inlined_call_operand.vmem [shape: f32[1,256], index: 4, kind: input, shape index: {}]   ;;  %s519_s5 = inlined_call_operand.vmem [shape: f32[2,4,256], index: 5, kind: output, shape index: {0}]   ;;  %s520_s6 = inlined_call_operand.vmem [shape: f32[2,4,256], index: 6, kind: output, shape index: {1}]  }
   0x1 LB: > { %s412_s22 = sadd.s32 4294967295, %s445_s21   ;;  %p416_p0 = scmp.ge.s32.totalorder %s445_s21, 1  ;;  %s445_s21 = sphi %s482_s21, %s17_s21  }
   0x2   : > { %p225_p1 = scmp.lt.s32.totalorder %s445_s21, 3 }
   0x4   : > { %p226_p2 = pnand %p416_p0, %p225_p1 }
   0x5   : > { %p265_p3 = scmp.lt.s32.totalorder (!%p226_p2), %s412_s22, 1 }
   0x6   : > { %229 = sbr.rel (%p226_p2) target bundleno = 25 (0x19), region = 40 }
   0xb   : > { %v285_v0 = vld [vmem:[%s518_s4] sm:$0x3]  ;;  %s522_s22 = smov (!%p265_p3, %s412_s22), 1  ;;  %vm292_vm0 = vcmask 1043456  }
   0xc   : > { %v286_v1 = vsub.f32 1.0, %v285_v0  ;;  %v298_v2 = vperm.slane %v285_v0, 0  ;;  %v299_v3 = vperm.slane %v285_v0, 1  ;;  %v296_v6 = vld [vmem:[%s516_s2] sm:$0xff]  ;;  %s427_s29 = sshll.u32 %s522_s22, 3 }
   0xd   : > { %v308_v8 = vld [vmem:[%s517_s3] sm:$0xff]  ;;  %s269_s8 = scalar_lea.vmem %s514_s0, %s427_s29  ;;  %s274_s11 = scalar_lea.vmem %s515_s1, %s427_s29 }
   0xe   : > { %v289_v4 = vperm.slane %v286_v1, 0  ;;  %v290_v5 = vperm.slane %v286_v1, 1  ;;  %v300_v7 = vrot.slane %v299_v3, 4  ;;  %v287_v11 = vld [vmem:[%s269_s8] sm:$0xff]  ;;  %s279_s14 = scalar_lea.vmem %s519_s5, %s427_s29  ;;  %s284_s17 = scalar_lea.vmem %s520_s6, %s427_s29 }
   0xf   : > { %v306_v15 = vld [vmem:[%s274_s11] sm:$0xff] }
  0x10   : > { %v291_v9 = vrot.slane %v290_v5, 4  ;;  %v301_v10 = vsel %vm292_vm0, %v298_v2, %v300_v7 }
  0x11   : > { %v303_v12 = vmul.f32 %v301_v10, %v296_v6  ;;  %v309_v13 = vmul.f32 %v308_v8, %v301_v10 }
  0x12   : > { %v293_v14 = vsel %vm292_vm0, %v289_v4, %v291_v9 }
  0x13   : > { %v295_v16 = vmul.f32 %v293_v14, %v287_v11  ;;  %v307_v17 = vmul.f32 %v306_v15, %v293_v14 }
  0x15   : > { %v304_v18 = vadd.f32 %v303_v12, %v295_v16  ;;  %v310_v19 = vadd.f32 %v309_v13, %v307_v17 }
  0x17   : > { %305 = vst [vmem:[%s279_s14] sm:$0xff] %v304_v18 }
  0x18   : > { %311 = vst [vmem:[%s284_s17] sm:$0xff] %v310_v19 }
  0x19 PF: > { %s17_s21 = sadd.s32 1, %s445_s21  }
  0x1a   : > { %p14_p4 = scmp.ge.s32.totalorder %s17_s21, 4  }
  0x1c   :  { %16 = sbr.rel (!%p14_p4) target bundleno = 1 (0x1), region = 85 }

// kernel: supervised_net_forward.9
= control target key start
LH: loop header
LB: loop body
LE: loop exit
PB: predicated region body
PF: predicated region fallthrough
CT: control target
= control target key end

     0   :  { %s403_s15 = smov 0   ;;  %s433_s0 = inlined_call_operand.vmem [shape: f32[2,4,256], index: 0, kind: input, shape index: {}]   ;;  %s434_s1 = inlined_call_operand.vmem [shape: f32[2,4,256], index: 1, kind: input, shape index: {}]   ;;  %s435_s2 = inlined_call_operand.vmem [shape: f32[4,256], index: 2, kind: input, shape index: {}]   ;;  %s436_s3 = inlined_call_operand.vmem [shape: f32[4,256], index: 3, kind: input, shape index: {}]   ;;  %s437_s4 = inlined_call_operand.vmem [shape: f32[2,2,256], index: 4, kind: output, shape index: {}]  }
   0x1 LB: > { %s346_s16 = sadd.s32 4294967295, %s376_s15   ;;  %p350_p0 = scmp.ge.s32.totalorder %s376_s15, 1  ;;  %s376_s15 = sphi %s403_s15, %s14_s15  }
   0x2   : > { %p172_p1 = scmp.lt.s32.totalorder %s376_s15, 3 }
   0x4   : > { %p173_p2 = pnand %p350_p0, %p172_p1 }
   0x5   : > { %p203_p3 = scmp.lt.s32.totalorder (!%p173_p2), %s346_s16, 1 }
   0x6   : > { %176 = sbr.rel (%p173_p2) target bundleno = 54 (0x36), region = 36 }
   0xb   : > { %s439_s16 = smov (!%p203_p3, %s346_s16), 1  ;;  %v220_v0 = vld [vmem:[%s435_s2] sm:$0xff]  ;;  %vm231_vm0 = vcmask 1043456   ;;  %vm269_vm1 = vcmask 1040384   ;;  %vm275_vm2 = vcmask 1041408  }
   0xc   : > { %s359_s17 = sshll.u32 %s439_s16, 3  ;;  %v221_v1 = vld [vmem:[%s436_s3] sm:$0xff]  ;;  %s361_s28 = sshll.u32 %s439_s16, 2 }
   0xd   : > { %s207_s24 = scalar_lea.vmem %s433_s0, %s359_s17  ;;  %s212_s27 = scalar_lea.vmem %s434_s1, %s359_s17 }
   0xe   : > { %v218_v2 = vld [vmem:[%s207_s24] sm:$0xff]  ;;  %s217_s5 = scalar_lea.vmem %s437_s4, %s361_s28 }
   0xf   : > { %v219_v3 = vld [vmem:[%s212_s27] sm:$0xff]  ;;  %v222_v4 = vmul.f32 %v220_v0, %v218_v2  ;;  %v247_v8 = vmul.f32 %v221_v1, %v218_v2 }
  0x10   : > { %v223_v5 = vmul.f32 %v221_v1, %v219_v3  ;;  %v246_v7 = vmul.f32 %v220_v0, %v219_v3 }
  0x12   : > { %v224_v6 = vadd.f32 %v223_v5, %v222_v4  ;;  %v248_v9 = vsub.f32 %v246_v7, %v247_v8 }
  0x14   : > { %226 = vst [vmem:[#allocation1] ss:$2 sm:$0xff] %v224_v6 }
  0x1b   : > { %v227_v10 = vld.sshfl [vmem:[#allocation1] sm:$0xff pattern:$0x75316420]  ;;  %v228_v11 = vld.sshfl [vmem:[#allocation1 + $0x8] sm:$0xff pattern:$0x75316420] }
  0x1c   : > { %v232_v12 = vsel %vm231_vm0, %v227_v10, 0.0  ;;  %v239_v13 = vsel %vm231_vm0, %v228_v11, 0.0  ;;  %250 = vst [vmem:[#allocation1] ss:$2 sm:$0xff] %v248_v9 }
  0x1d   : > { %v233_v14 = vrot.slane %v232_v12, 4  ;;  %v240_v15 = vrot.slane %v239_v13, 4 }
  0x1f   : > { %v241_v16 = vadd.f32 %v240_v15, %v239_v13  ;;  %v234_v17 = vadd.f32 %v233_v14, %v232_v12 }
  0x21   : > { %v242_v18 = vrot.slane %v241_v16, 2  ;;  %v235_v23 = vrot.slane %v234_v17, 2 }
  0x23   : > { %v252_v19 = vld.sshfl [vmem:[#allocation1 + $0x8] sm:$0xff pattern:$0x75316420]  ;;  %v251_v20 = vld.sshfl [vmem:[#allocation1] sm:$0xff pattern:$0x75316420]  ;;  %v243_v26 = vadd.f32 %v242_v18, %v241_v16  ;;  %v236_v29 = vadd.f32 %v235_v23, %v234_v17 }
  0x24   : > { %v262_v21 = vsel %vm231_vm0, %v252_v19, 0.0  ;;  %v255_v22 = vsel %vm231_vm0, %v251_v20, 0.0 }
  0x25   : > { %v263_v24 = vrot.slane %v262_v21, 4  ;;  %v256_v25 = vrot.slane %v255_v22, 4  ;;  %v244_v32 = vrot.slane %v243_v26, 1  ;;  %v237_v35 = vrot.slane %v236_v29, 1 }
  0x27   : > { %v264_v27 = vadd.f32 %v263_v24, %v262_v21  ;;  %v257_v28 = vadd.f32 %v256_v25, %v255_v22  ;;  %v245_v38 = vadd.f32 %v244_v32, %v243_v26  ;;  %v238_v41 = vadd.f32 %v237_v35, %v236_v29 }
  0x29   : > { %v258_v30 = vrot.slane %v257_v28, 2  ;;  %v265_v31 = vrot.slane %v264_v27, 2 }
  0x2b   : > { %v259_v33 = vadd.f32 %v258_v30, %v257_v28  ;;  %v266_v34 = vadd.f32 %v265_v31, %v264_v27 }
  0x2d   : > { %v260_v36 = vrot.slane %v259_v33, 1  ;;  %v267_v37 = vrot.slane %v266_v34, 1 }
  0x2f   : > { %v261_v39 = vadd.f32 %v260_v36, %v259_v33  ;;  %v268_v40 = vadd.f32 %v267_v37, %v266_v34 }
  0x31   : > { %v271_v42 = vsel %vm269_vm1, %v245_v38, %v268_v40  ;;  %v270_v44 = vsel %vm269_vm1, %v238_v41, %v261_v39 }
  0x32   : > { %v274_v43 = vrot.slane %v271_v42, 6 }
  0x34   : > { %v276_v45 = vsel %vm275_vm2, %v270_v44, %v274_v43 }
  0x35   : > { %278 = vst [vmem:[%s217_s5] sm:$0xf] %v276_v45 }
  0x36 PF: > { %s14_s15 = sadd.s32 1, %s376_s15  }
  0x37   : > { %p11_p4 = scmp.ge.s32.totalorder %s14_s15, 4  }
  0x39   :  { %13 = sbr.rel (!%p11_p4) target bundleno = 1 (0x1), region = 69 }

// kernel: custom-call.6
= control target key start
LH: loop header
LB: loop body
LE: loop exit
PB: predicated region body
PF: predicated region fallthrough
CT: control target
= control target key end

     0   :  { %s105_s0 = inlined_call_operand.vmem [shape: f32[2,16,16], index: 0, kind: input, shape index: {}]   ;;  %s106_s1 = inlined_call_operand.vmem [shape: f32[2,16,16], index: 1, kind: input, shape index: {}]   ;;  %s107_s2 = inlined_call_operand.hbm [shape: c64[2,16,16], index: 2, kind: output, shape index: {}]  }
   0x1   :  { %s3_s11 = scalar_lea.hbm %s107_s2, 32 }
   0x2   :  { %4 = vsyncpa [#allocation0], 0  ;;  %s6_s14 = sshll.u32 %s105_s0, 4  ;;  %s8_s17 = sshll.u32 %s107_s2, 4  ;;  %s7_s14 = int_to_ptr.vmem [resolvable:$true] %s6_s14  ;;  %s9_s17 = int_to_ptr.hbm [resolvable:$true] %s8_s17 }
   0x3   :  { %11 = dma.vmem_to_hbm [thread:$0]  %s7_s14, 512, %s9_s17, [#allocation0] }
   0x4   :  { %74 = dma.done.wait [#allocation0], 512  }
   0x5   :  { %75 = vsyncadd [#allocation0], 4294966784 }
   0x6   :  { %14 = vsyncpa [#allocation0], 1 }
   0x7   :  { %15 = vsyncpa [#allocation1], 0  ;;  %s17_s20 = sshll.u32 %s106_s1, 4  ;;  %s19_s21 = sshll.u32 %s3_s11, 4  ;;  %s18_s20 = int_to_ptr.vmem [resolvable:$true] %s17_s20  ;;  %s20_s21 = int_to_ptr.hbm [resolvable:$true] %s19_s21 }
   0x8   :  { %22 = dma.vmem_to_hbm [thread:$0]  %s18_s20, 512, %s20_s21, [#allocation1] }
   0x9   :  { %76 = dma.done.wait [#allocation1], 512  }
   0xa   :  { %77 = vsyncadd [#allocation1], 4294966784 }
   0xb   :  { %25 = vsyncpa [#allocation1], 1 }

// kernel: supervised_net_forward.10
= control target key start
LH: loop header
LB: loop body
LE: loop exit
PB: predicated region body
PF: predicated region fallthrough
CT: control target
= control target key end

     0   :  { %s6918_s27 = smov 0   ;;  %s10283_s0 = inlined_call_operand.vmem [shape: f32[2,2,16,16], index: 0, kind: input, shape index: {}]   ;;  %s10284_s1 = inlined_call_operand.vmem [shape: f32[1,1024], index: 1, kind: input, shape index: {}]   ;;  %s10285_s2 = inlined_call_operand.vmem [shape: f32[3,16,6], index: 2, kind: input, shape index: {}]   ;;  %s10286_s3 = inlined_call_operand.vmem [shape: f32[16,1], index: 3, kind: input, shape index: {}]   ;;  %s10287_s4 = inlined_call_operand.vmem [shape: f32[3,16,48], index: 4, kind: input, shape index: {}]   ;;  %s10288_s5 = inlined_call_operand.vmem [shape: f32[16,1], index: 5, kind: input, shape index: {}]   ;;  %s10289_s6 = inlined_call_operand.vmem [shape: f32[3,16,48], index: 6, kind: input, shape index: {}]   ;;  %s10290_s7 = inlined_call_operand.vmem [shape: f32[16,1], index: 7, kind: input, shape index: {}]   ;;  %s10291_s8 = inlined_call_operand.vmem [shape: f32[2,2,16,16], index: 8, kind: output, shape index: {}]  }
   0x1 LB: > { %s6093_s28 = sadd.s32 4294967295, %s6867_s27   ;;  %p6097_p0 = scmp.ge.s32.totalorder %s6867_s27, 1  ;;  %s6867_s27 = sphi %s6918_s27, %s18_s27  }
   0x2   : > { %p262_p1 = scmp.lt.s32.totalorder %s6867_s27, 3 }
   0x4   : > { %p263_p2 = pnand %p6097_p0, %p262_p1 }
   0x6   : > { %266 = sbr.rel (%p263_p2) target bundleno = 1641 (0x669), region = 52 }
   0xb   : > { %p296_p3 = scmp.lt.s32.totalorder %s6093_s28, 1  ;;  %v10292_v0 = vmov 0.0   ;;  %vm367_vm0 = vcmask 1043459   ;;  %vm351_vm1 = vcmask 1041409   ;;  %vm359_vm2 = vcmask 1042434   ;;  %s6870_s11 = smov 1  }
   0xc   : > { %346 = vst [vmem:[#allocation2] sm:$0xc] %v10292_v0  ;;  %vm315_vm3 = vcmask 130048   ;;  %vm388_vm4 = vcmask 1046534   ;;  %vm372_vm5 = vcmask 1044484   ;;  %vm380_vm6 = vcmask 1045509  }
   0xd   : > { %347 = vst [vmem:[#allocation2 + $0x30] sm:$0xc] %v10292_v0  ;;  %s10592_s28 = smov (!%p296_p3, %s6093_s28), 1  ;;  %vm396_vm7 = vcmask 1047559   ;;  %s6871_s12 = smov 127   ;;  %vm410_vm8 = vcmask 1042432  }
   0xe   : > { %s6452_s29 = sshll.u32 %s10592_s28, 5  ;;  %vm566_vm9 = vcmask 7168   ;;  %vm657_vm10 = vcmask 1039360   ;;  %vm768_vm11 = vcmask 1045504   ;;  %vm761_vm12 = vcmask 48128  }
   0xf   : > { %s6936_s10 = scalar_lea.vmem %s10283_s0, %s6452_s29  ;;  %vm2699_vm13 = vcmask 392192   ;;  %vm7944_vm14 = vmneg %vm566_vm9  ;;  %s10141_s13 = scalar_lea.vmem %s10291_s8, %s6452_s29  ;;  %vm5249_vm15 = vcmask 122880  }
  0x10   : > { %v307_v1 = vld [vmem:[%s6936_s10] sm:$0xff]  ;;  %v309_v2 = vld [vmem:[%s6936_s10 + $0x10] sm:$0xff]  ;;  %v310_v9 = vld [vmem:[%s6936_s10 + $0x18] sm:$0xff] }
  0x11   : > { %v350_v3 = vrot.slane %v309_v2, 7  ;;  %v6957_v22 = vrot.slane %v310_v9, 7  ;;  %v6962_v28 = vld [vmem:[%s6936_s10 + $0x8] sm:$0xff]  ;;  %v406_v30 = vsel %vm315_vm3, %v307_v1, 0.0 }
  0x12   : > { %v411_v34 = vrot.slane %v406_v30, 5 }
  0x13   : > { %v6940_v4 = vld [vmem:[#allocation2] sm:$0xc]  ;;  %v368_v6 = vsel %vm367_vm0, %v350_v3, %v307_v1  ;;  %v352_v7 = vsel %vm351_vm1, %v350_v3, %v307_v1  ;;  %v360_v8 = vsel %vm359_vm2, %v350_v3, %v307_v1  ;;  %v389_v13 = vsel %vm388_vm4, %v350_v3, %v307_v1 }
  0x14   : > { %v512_v5 = vrot.slane %v6940_v4, 2  ;;  %v370_v10 = vsel %vm315_vm3, %v368_v6, 0.0  ;;  %v354_v11 = vsel %vm315_vm3, %v352_v7, 0.0  ;;  %v362_v12 = vsel %vm315_vm3, %v360_v8, 0.0 }
  0x15   : > { %371 = vst [vmem:[#allocation2 + $0x18] sm:$0xc] %v370_v10  ;;  %v356_v14 = vrot.slane %v354_v11, 6  ;;  %v364_v15 = vrot.slane %v362_v12, 7  ;;  %v391_v16 = vsel %vm315_vm3, %v389_v13, 0.0  ;;  %v373_v17 = vsel %vm372_vm5, %v350_v3, %v307_v1 }
  0x16   : > { %530 = vrot.lane.b32.xlu1 %v512_v5, %s6870_s11  ;;  %v393_v18 = vrot.slane %v391_v16, 3  ;;  %v375_v19 = vsel %vm315_vm3, %v373_v17, 0.0  ;;  %v381_v20 = vsel %vm380_vm6, %v350_v3, %v307_v1  ;;  %v397_v21 = vsel %vm396_vm7, %v350_v3, %v307_v1 }
  0x17   : > { %358 = vst [vmem:[#allocation2 + $0x70] sm:$0xc] %v356_v14  ;;  %v377_v23 = vrot.slane %v375_v19, 1  ;;  %v383_v24 = vsel %vm315_vm3, %v381_v20, 0.0  ;;  %v399_v25 = vsel %vm315_vm3, %v397_v21, 0.0  ;;  %v419_v29 = vsel %vm351_vm1, %v6957_v22, %v6962_v28 }
  0x18   : > { %366 = vst [vmem:[#allocation2 + $0x50] sm:$0xc] %v364_v15  ;;  %v385_v26 = vrot.slane %v383_v24, 2  ;;  %v401_v27 = vrot.slane %v399_v25, 4  ;;  %v407_v31 = vsel %vm315_vm3, %v350_v3, 0.0  ;;  %v421_v33 = vsel %vm315_vm3, %v419_v29, 0.0 }
  0x19   : > { %395 = vst [vmem:[#allocation2 + $0x78] sm:$0xc] %v393_v18  ;;  %v423_v35 = vrot.slane %v421_v33, 6  ;;  %v412_v36 = vrot.slane %v407_v31, 5  ;;  %v426_v42 = vsel %vm359_vm2, %v6957_v22, %v6962_v28  ;;  %v433_v60 = vsel %vm367_vm0, %v6957_v22, %v6962_v28 }
  0x1a   : > { %379 = vst [vmem:[#allocation2 + $0x88] sm:$0xc] %v377_v23  ;;  %v428_v43 = vsel %vm315_vm3, %v426_v42, 0.0  ;;  %v435_v61 = vsel %vm315_vm3, %v433_v60, 0.0  ;;  %v451_v62 = vsel %vm388_vm4, %v6957_v22, %v6962_v28  ;;  %v437_v63 = vsel %vm372_vm5, %v6957_v22, %v6962_v28 }
  0x1b   : > { %387 = vst [vmem:[#allocation2 + $0x68] sm:$0xc] %v385_v26  ;;  %v413_v40 = vsel %vm410_vm8, %v411_v34, %v412_v36  ;;  %v430_v44 = vrot.slane %v428_v43, 7  ;;  %v453_v1 = vsel %vm315_vm3, %v451_v62, 0.0  ;;  %v439_v2 = vsel %vm315_vm3, %v437_v63, 0.0 }
  0x1c   : > { %v479_v32 = vld [vmem:[#allocation2 + $0x18] sm:$0xc]  ;;  %403 = vst [vmem:[#allocation2 + $0x80] sm:$0xc] %v401_v27  ;;  %v455_v3 = vrot.slane %v453_v1, 3  ;;  %v458_v6 = vsel %vm396_vm7, %v6957_v22, %v6962_v28  ;;  %v444_v15 = vsel %vm380_vm6, %v6957_v22, %v6962_v28  ;;  %v467_v17 = vsel %vm315_vm3, %v6962_v28, 0.0 }
  0x1d   : > { %627 = vrot.lane.b32.xlu2 %v479_v32, %s6871_s12  ;;  %425 = vst [vmem:[#allocation2 + $0x48] sm:$0xc] %v423_v35  ;;  %v515_v52 = vrot.slane %v479_v32, 2  ;;  %v460_v7 = vsel %vm315_vm3, %v458_v6, 0.0  ;;  %v446_v16 = vsel %vm315_vm3, %v444_v15, 0.0  ;;  %v468_v18 = vsel %vm315_vm3, %v6957_v22, 0.0 }
  0x1e   : > { %v477_v37 = vld [vmem:[#allocation2 + $0x70] sm:$0xc]  ;;  %415 = vst [vmem:[#allocation2 + $0x38] sm:$0xc] %v413_v40  ;;  %v462_v8 = vrot.slane %v460_v7, 4  ;;  %v448_v19 = vrot.slane %v446_v16, 2 }
  0x1f   : > { %623 = vrot.lane.b32.xlu0 %v477_v37, %s6871_s12  ;;  %v513_v38 = vrot.slane %v477_v37, 2  ;;  %v478_v39 = vld [vmem:[#allocation2 + $0x50] sm:$0xc]  ;;  %432 = vst [vmem:[#allocation2 + $0x20] sm:$0xc] %v430_v44  ;;  %v471_v20 = vrot.slane %v467_v17, 5 }
  0x20   : > { %v514_v41 = vrot.slane %v478_v39, 2  ;;  %v482_v45 = vld [vmem:[#allocation2 + $0x78] sm:$0xc]  ;;  %436 = vst [vmem:[#allocation2 + $0x8] sm:$0xc] %v435_v61  ;;  %v472_v21 = vrot.slane %v468_v18, 5 }
  0x21   : > { %532 = vrot.lane.b32.xlu1 %v513_v38, %s6870_s11  ;;  %v480_v46 = vld [vmem:[#allocation2 + $0x88] sm:$0xc]  ;;  %v518_v50 = vrot.slane %v482_v45, 2  ;;  %457 = vst [vmem:[#allocation2 + $0x10] sm:$0xc] %v455_v3 }
  0x22   : > { %v516_v47 = vrot.slane %v480_v46, 2  ;;  %v481_v48 = vld [vmem:[#allocation2 + $0x68] sm:$0xc]  ;;  %464 = vst [vmem:[#allocation2 + $0x60] sm:$0xc] %v462_v8  ;;  %v473_v23 = vsel %vm410_vm8, %v471_v20, %v472_v21 }
  0x23   : > { %v483_v49 = vld [vmem:[#allocation2 + $0x80] sm:$0xc]  ;;  %v517_v51 = vrot.slane %v481_v48, 2  ;;  %450 = vst [vmem:[#allocation2 + $0x28] sm:$0xc] %v448_v19 }
  0x24   : > { %v485_v53 = vld [vmem:[#allocation2 + $0x48] sm:$0xc]  ;;  %v519_v54 = vrot.slane %v483_v49, 2  ;;  %475 = vst [vmem:[#allocation2 + $0x58] sm:$0xc] %v473_v23 }
  0x25   : > { %534 = vrot.lane.b32.xlu2 %v514_v41, %s6870_s11  ;;  %v484_v55 = vld [vmem:[#allocation2 + $0x38] sm:$0xc]  ;;  %v521_v57 = vrot.slane %v485_v53, 2  ;;  %v493_v40 = vld [vmem:[#allocation2 + $0x30] sm:$0xc] }
  0x26   : > { %v486_v56 = vld [vmem:[#allocation2 + $0x20] sm:$0xc]  ;;  %v520_v58 = vrot.slane %v484_v55, 2 }
  0x27   : > { %625 = vrot.lane.b32.xlu0 %v478_v39, %s6871_s12  ;;  %v522_v59 = vrot.slane %v486_v56, 2  ;;  %v487_v5 = vld [vmem:[#allocation2 + $0x8] sm:$0xc] }
  0x28   : > { %v490_v9 = vld [vmem:[#allocation2 + $0x10] sm:$0xc]  ;;  %v523_v14 = vrot.slane %v487_v5, 2 }
  0x29   : > { %633 = vrot.lane.b32.xlu1 %v482_v45, %s6871_s12  ;;  %v526_v12 = vrot.slane %v490_v9, 2  ;;  %v491_v13 = vld [vmem:[#allocation2 + $0x60] sm:$0xc] }
  0x2a   : > { %v527_v24 = vrot.slane %v491_v13, 2  ;;  %v489_v26 = vld [vmem:[#allocation2 + $0x28] sm:$0xc] }
  0x2b   : > { %v492_v27 = vld [vmem:[#allocation2 + $0x58] sm:$0xc]  ;;  %v525_v22 = vrot.slane %v489_v26, 2 }
  0x2c   : > { %v528_v28 = vrot.slane %v492_v27, 2 }
  0x2d   : > { %538 = vrot.lane.b32.xlu2 %v516_v47, %s6870_s11 }
  0x2f   : > { %631 = vrot.lane.b32.xlu0 %v481_v48, %s6871_s12 }
  0x31   : > { %635 = vrot.lane.b32.xlu1 %v483_v49, %s6871_s12 }
  0x35   : > { %542 = vrot.lane.b32.xlu2 %v518_v50, %s6870_s11  ;;  %v529_v50 = vrot.slane %v493_v40, 2 }
  0x37   : > { %540 = vrot.lane.b32.xlu0 %v517_v51, %s6870_s11 }
  0x39   : > { %536 = vrot.lane.b32.xlu1 %v515_v52, %s6870_s11 }
  0x3d   : > { %621 = vrot.lane.b32.xlu2 %v6940_v4, %s6871_s12  ;;  %v441_v4 = vrot.slane %v439_v2, 1  ;;  %v7070_v2 = vld [vmem:[%s10285_s2 + $0x18] sm:$0xff] }
  0x3f   : > { %629 = vrot.lane.b32.xlu0 %v480_v46, %s6871_s12  ;;  %443 = vst [vmem:[#allocation2 + $0x40] sm:$0xc] %v441_v4 }
  0x41   : > { %639 = vrot.lane.b32.xlu1 %v485_v53, %s6871_s12 }
  0x45   : > { %544 = vrot.lane.b32.xlu2 %v519_v54, %s6870_s11 }
  0x46   : > { %v488_v10 = vld [vmem:[#allocation2 + $0x40] sm:$0xc] }
  0x47   : > { %637 = vrot.lane.b32.xlu0 %v484_v55, %s6871_s12  ;;  %v524_v11 = vrot.slane %v488_v10, 2  ;;  %v7052_v55 = vld [vmem:[%s10285_s2 + $0x10] sm:$0xff] }
  0x49   : > { %641 = vrot.lane.b32.xlu1 %v486_v56, %s6871_s12 }
  0x4d   : > { %548 = vrot.lane.b32.xlu2 %v521_v57, %s6870_s11 }
  0x4f   : > { %546 = vrot.lane.b32.xlu0 %v520_v58, %s6870_s11  ;;  %v6490_v58 = vpack.i.bf16 0.0, %v529_v50 }
  0x51   : > { %550 = vrot.lane.b32.xlu1 %v522_v59, %s6870_s11 }
  0x55   : > { %647 = vrot.lane.b32.xlu2 %v489_v26, %s6871_s12 }
  0x57   : > { %643 = vrot.lane.b32.xlu0 %v487_v5, %s6871_s12 }
  0x59   : > { %554 = vrot.lane.b32.xlu1 %v524_v11, %s6870_s11 }
  0x5d   : > { %556 = vrot.lane.b32.xlu2 %v525_v22, %s6870_s11 }
  0x5f   : > { %649 = vrot.lane.b32.xlu0 %v490_v9, %s6871_s12 }
  0x61   : > { %558 = vrot.lane.b32.xlu1 %v526_v12, %s6870_s11 }
  0x65   : > { %645 = vrot.lane.b32.xlu2 %v488_v10, %s6871_s12 }
  0x67   : > { %651 = vrot.lane.b32.xlu0 %v491_v13, %s6871_s12 }
  0x69   : > { %653 = vrot.lane.b32.xlu1 %v492_v27, %s6871_s12 }
  0x6d   : > { %655 = vrot.lane.b32.xlu2 %v493_v40, %s6871_s12  ;;  %v740_v40 = vld [vmem:[%s10286_s3] sm:$0xff] }
  0x6f   : > { %552 = vrot.lane.b32.xlu0 %v523_v14, %s6870_s11 }
  0x71   : > { %562 = vrot.lane.b32.xlu1 %v528_v28, %s6870_s11 }
  0x77   : > { %v7028_v25 = vpop.permute.xlu2 %627  ;;  %560 = vrot.lane.b32.xlu0 %v527_v24, %s6870_s11 }
  0x79   : > { %6491 = vrot.lane.b32.xlu1 %v6490_v58, %s6870_s11 }
  0x7f   : > { %v535_v29 = vpop.permute.xlu2 %534 }
  0x87   : > { %v539_v30 = vpop.permute.xlu2 %538 }
  0x88   : > { %v531_v31 = vpop.permute.xlu1 %530 }
  0x89   : > { %v602_v32 = vsel %vm566_vm9, 0.0, %v531_v31 }
  0x8a   : > { %603 = vst [vmem:[#allocation2] sm:$0x3] %v602_v32 }
  0x8f   : > { %v543_v33 = vpop.permute.xlu2 %542 }
  0x91   : > { %v624_v34 = vpop.permute.xlu0 %623 }
  0x93   : > { %v533_v35 = vpop.permute.xlu1 %532 }
  0x94   : > { %v567_v36 = vsel %vm566_vm9, %v531_v31, %v533_v35  ;;  %v568_v37 = vsel %vm566_vm9, %v533_v35, %v535_v29 }
  0x95   : > { %604 = vst [vmem:[#allocation2 + $0x70] sm:$0x3] %v567_v36 }
  0x96   : > { %605 = vst [vmem:[#allocation2 + $0x50] sm:$0x3] %v568_v37 }
  0x97   : > { %v622_v38 = vpop.permute.xlu2 %621 }
  0x98   : > { %v658_v39 = vsel %vm657_vm10, %v622_v38, %v624_v34  ;;  %v7135_v38 = vld [vmem:[%s10285_s2 + $0x8] sm:$0xff] }
  0x99   : > { %v678_v41 = vrot.slane %v658_v39, 6  ;;  %v626_v42 = vpop.permute.xlu0 %625 }
  0x9a   : > { %v659_v43 = vsel %vm657_vm10, %v624_v34, %v626_v42  ;;  %v660_v44 = vsel %vm657_vm10, %v626_v42, %v7028_v25 }
  0x9b   : > { %714 = vst [vmem:[#allocation2] sm:$0x30] %v678_v41  ;;  %v679_v45 = vrot.slane %v659_v43, 6  ;;  %v680_v46 = vrot.slane %v660_v44, 6  ;;  %v634_v47 = vpop.permute.xlu1 %633  ;;  %v6872_v41 = vmov 0  }
  0x9c   : > { %6489 = vset.pattern.permute.xlu0 %v6872_v41  ;;  %6488 = vset.pattern.permute.xlu2 %v6872_v41 }
  0x9d   : > { %715 = vst [vmem:[#allocation2 + $0x70] sm:$0x30] %v679_v45  ;;  %744 = vperm.xlu0 %6489, %v740_v40   ;;  %6670 = vset.pattern.permute.xlu1 %v6872_v41 }
  0x9e   : > { %716 = vst [vmem:[#allocation2 + $0x50] sm:$0x30] %v680_v46 }
  0x9f   : > { %v7044_v48 = vpop.permute.xlu2 %544 }
  0xa0   : > { %v573_v49 = vsel %vm566_vm9, %v543_v33, %v7044_v48 }
  0xa1   : > { %v632_v51 = vpop.permute.xlu0 %631  ;;  %610 = vst [vmem:[#allocation2 + $0x80] sm:$0x3] %v573_v49 }
  0xa2   : > { %v663_v52 = vsel %vm657_vm10, %v632_v51, %v634_v47  ;;  %v752_v12 = vld [vmem:[#allocation2] sm:$0x3f] }
  0xa3   : > { %v683_v53 = vrot.slane %v663_v52, 6  ;;  %v636_v54 = vpop.permute.xlu1 %635 }
  0xa4   : > { %v664_v56 = vsel %vm657_vm10, %v634_v47, %v636_v54  ;;  %v753_v57 = vld [vmem:[#allocation2 + $0x70] sm:$0x3f] }
  0xa5   : > { %719 = vst [vmem:[#allocation2 + $0x68] sm:$0x30] %v683_v53  ;;  %v684_v59 = vrot.slane %v664_v56, 6  ;;  %6106 = vmatpush.msk.msra.mxu0 %vm768_vm11, %v753_v57  ;;  %v7056_v60 = vld [vmem:[#allocation2 + $0x50] sm:$0x3f] }
  0xa6   : > { %6109 = vmatpush.msk.msra.mxu1 %vm768_vm11, %v7056_v60  ;;  %6107 = vmatmul.msk.f32.vlgmr.msra.gmra.mxu0 %vm761_vm12, %v7052_v55 }
  0xa7   : > { %720 = vst [vmem:[#allocation2 + $0x78] sm:$0x30] %v684_v59  ;;  %6110 = vmatmul.msk.f32.vlgmr.msra.gmra.mxu1 %vm761_vm12, %v7052_v55 }
  0xa9   : > { %v541_v61 = vpop.permute.xlu0 %540 }
  0xaa   : > { %v571_v62 = vsel %vm566_vm9, %v539_v30, %v541_v61  ;;  %v572_v63 = vsel %vm566_vm9, %v541_v61, %v543_v33 }
  0xab   : > { %608 = vst [vmem:[#allocation2 + $0x68] sm:$0x3] %v571_v62  ;;  %v537_v1 = vpop.permute.xlu1 %536 }
  0xac   : > { %609 = vst [vmem:[#allocation2 + $0x78] sm:$0x3] %v572_v63  ;;  %v569_v3 = vsel %vm566_vm9, %v535_v29, %v537_v1  ;;  %v570_v4 = vsel %vm566_vm9, %v537_v1, %v539_v30  ;;  %v7114_v29 = vld [vmem:[%s10285_s2] sm:$0xff]  ;;  %v1170_v30 = vld [vmem:[#allocation2 + $0x50] sm:$0x3f] }
  0xad   : > { %606 = vst [vmem:[#allocation2 + $0x18] sm:$0x3] %v569_v3  ;;  %v7182_v1 = vld [vmem:[%s10285_s2 + $0x20] sm:$0xff] }
  0xae   : > { %607 = vst [vmem:[#allocation2 + $0x88] sm:$0x3] %v570_v4  ;;  %6108 = vmatmul.msk.f32.gmra.mxu0 %vm761_vm12, %v7070_v2 }
  0xaf   : > { %6111 = vmatmul.msk.f32.gmra.mxu1 %vm761_vm12, %v7070_v2 }
  0xb1   : > { %v630_v5 = vpop.permute.xlu0 %629 }
  0xb2   : > { %v661_v6 = vsel %vm657_vm10, %v7028_v25, %v630_v5  ;;  %v662_v7 = vsel %vm657_vm10, %v630_v5, %v632_v51  ;;  %v757_v8 = vld [vmem:[#allocation2 + $0x68] sm:$0x3f]  ;;  %v549_v25 = vpop.permute.xlu2 %548 }
  0xb3   : > { %v681_v9 = vrot.slane %v661_v6, 6  ;;  %v682_v10 = vrot.slane %v662_v7, 6  ;;  %6118 = vmatpush.msk.msrb.mxu0 %vm768_vm11, %v757_v8  ;;  %v7082_v11 = vld [vmem:[#allocation2 + $0x78] sm:$0x3f]  ;;  %v640_v13 = vpop.permute.xlu1 %639 }
  0xb4   : > { %6121 = vmatpush.msk.msrb.mxu1 %vm768_vm11, %v7082_v11  ;;  %v1174_v46 = vld [vmem:[#allocation2 + $0x78] sm:$0x3f] }
  0xb5   : > { %6130 = vmatpush.msk.msra.mxu0 %vm768_vm11, %v752_v12  ;;  %717 = vst [vmem:[#allocation2 + $0x18] sm:$0x30] %v681_v9 }
  0xb6   : > { %6133 = vmatpush.msk.msra.mxu1 %vm768_vm11, %v753_v57  ;;  %718 = vst [vmem:[#allocation2 + $0x88] sm:$0x30] %v682_v10  ;;  %6119 = vmatmul.msk.f32.vlgmr.msrb.gmra.mxu0 %vm761_vm12, %v7052_v55  ;;  %v1173_v57 = vld [vmem:[#allocation2 + $0x68] sm:$0x3f] }
  0xb7   : > { %6122 = vmatmul.msk.f32.vlgmr.msrb.gmra.mxu1 %vm761_vm12, %v7052_v55 }
  0xb8   : > { %6145 = vmatpush.msk.msrb.mxu1 %vm768_vm11, %v757_v8  ;;  %v7200_v8 = vld [vmem:[%s10285_s2 + $0x28] sm:$0xff] }
  0xb9   : > { %v638_v14 = vpop.permute.xlu0 %637 }
  0xba   : > { %v665_v15 = vsel %vm657_vm10, %v636_v54, %v638_v14  ;;  %v666_v16 = vsel %vm657_vm10, %v638_v14, %v640_v13  ;;  %v648_v42 = vpop.permute.xlu2 %647 }
  0xbb   : > { %v685_v17 = vrot.slane %v665_v15, 6  ;;  %v686_v18 = vrot.slane %v666_v16, 6  ;;  %v642_v19 = vpop.permute.xlu1 %641 }
  0xbc   : > { %v755_v20 = vld [vmem:[#allocation2 + $0x18] sm:$0x3f]  ;;  %v667_v21 = vsel %vm657_vm10, %v640_v13, %v642_v19  ;;  %v741_v13 = vld [vmem:[%s10286_s3 + $0x8] sm:$0xff] }
  0xbd   : > { %721 = vst [vmem:[#allocation2 + $0x80] sm:$0x30] %v685_v17  ;;  %6112 = vmatpush.msk.msra.mxu2 %vm768_vm11, %v755_v20  ;;  %v756_v23 = vld [vmem:[#allocation2 + $0x88] sm:$0x3f]  ;;  %v687_v24 = vrot.slane %v667_v21, 6  ;;  %749 = vperm.xlu2 %6488, %v741_v13  }
  0xbe   : > { %722 = vst [vmem:[#allocation2 + $0x38] sm:$0x30] %v686_v18  ;;  %6115 = vmatpush.msk.msra.mxu3 %vm768_vm11, %v756_v23  ;;  %6142 = vmatpush.msk.msrb.mxu0 %vm768_vm11, %v756_v23  ;;  %v1171_v31 = vld [vmem:[#allocation2 + $0x18] sm:$0x3f]  ;;  %v1172_v56 = vld [vmem:[#allocation2 + $0x88] sm:$0x3f] }
  0xbf   : > { %6113 = vmatmul.msk.f32.vlgmr.msra.gmra.mxu2 %vm761_vm12, %v7052_v55  ;;  %6116 = vmatmul.msk.f32.vlgmr.msra.gmra.mxu3 %vm761_vm12, %v7052_v55  ;;  %723 = vst [vmem:[#allocation2 + $0x48] sm:$0x30] %v687_v24 }
  0xc0   : > { %6120 = vmatmul.msk.f32.gmra.mxu0 %vm761_vm12, %v7070_v2  ;;  %6123 = vmatmul.msk.f32.gmra.mxu1 %vm761_vm12, %v7070_v2 }
  0xc1   : > { %v547_v26 = vpop.permute.xlu0 %546 }
  0xc2   : > { %v574_v27 = vsel %vm566_vm9, %v7044_v48, %v547_v26  ;;  %v575_v22 = vsel %vm566_vm9, %v547_v26, %v549_v25  ;;  %v557_v50 = vpop.permute.xlu2 %556 }
  0xc3   : > { %611 = vst [vmem:[#allocation2 + $0x38] sm:$0x3] %v574_v27  ;;  %v551_v33 = vpop.permute.xlu1 %550 }
  0xc4   : > { %612 = vst [vmem:[#allocation2 + $0x48] sm:$0x3] %v575_v22  ;;  %v759_v28 = vld [vmem:[#allocation2 + $0x80] sm:$0x3f]  ;;  %v576_v36 = vsel %vm566_vm9, %v549_v25, %v551_v33 }
  0xc5   : > { %6124 = vmatpush.msk.msrb.mxu2 %vm768_vm11, %v759_v28  ;;  %613 = vst [vmem:[#allocation2 + $0x20] sm:$0x3] %v576_v36  ;;  %v1175_v47 = vld [vmem:[#allocation2 + $0x80] sm:$0x3f] }
  0xc7   : > { %6136 = vmatpush.msk.msra.mxu2 %vm768_vm11, %v7056_v60  ;;  %6117 = vmatmul.msk.f32.gmra.mxu3 %vm761_vm12, %v7070_v2 }
  0xc8   : > { %6114 = vmatmul.msk.f32.gmra.mxu2 %vm761_vm12, %v7070_v2  ;;  %6131 = vmatmul.msk.f32.vlgmr.msra.gmra.mxu0 %vm761_vm12, %v7114_v29 }
  0xc9   : > { %6134 = vmatmul.msk.f32.vlgmr.msra.gmra.mxu1 %vm761_vm12, %v7114_v29  ;;  %6154 = vmatpush.msk.msra.mxu0 %vm768_vm11, %v1170_v30  ;;  %v644_v32 = vpop.permute.xlu0 %643 }
  0xca   : > { %6157 = vmatpush.msk.msra.mxu1 %vm768_vm11, %v1171_v31  ;;  %v760_v34 = vld [vmem:[#allocation2 + $0x38] sm:$0x3f]  ;;  %v668_v35 = vsel %vm657_vm10, %v642_v19, %v644_v32  ;;  %v646_v61 = vpop.permute.xlu2 %645 }
  0xcb   : > { %6127 = vmatpush.msk.msrb.mxu3 %vm768_vm11, %v760_v34  ;;  %v688_v37 = vrot.slane %v668_v35, 6  ;;  %v555_v44 = vpop.permute.xlu1 %554  ;;  %v669_v62 = vsel %vm657_vm10, %v644_v32, %v646_v61  ;;  %v670_v63 = vsel %vm657_vm10, %v646_v61, %v648_v42  ;;  %v1490_v6 = vld [vmem:[#allocation2 + $0x48] sm:$0x3f]  ;;  %v1489_v22 = vld [vmem:[#allocation2 + $0x38] sm:$0x3f] }
  0xcc   : > { %v579_v52 = vsel %vm566_vm9, %v555_v44, %v557_v50  ;;  %v689_v3 = vrot.slane %v669_v62, 6  ;;  %v690_v4 = vrot.slane %v670_v63, 6  ;;  %v1177_v12 = vld [vmem:[#allocation2 + $0x48] sm:$0x3f] }
  0xcd   : > { %6139 = vmatpush.msk.msra.mxu3 %vm768_vm11, %v755_v20  ;;  %724 = vst [vmem:[#allocation2 + $0x20] sm:$0x30] %v688_v37 }
  0xce   : > { %616 = vst [vmem:[#allocation2 + $0x28] sm:$0x3] %v579_v52 }
  0xcf   : > { %6128 = vmatmul.msk.f32.vlgmr.msrb.gmra.mxu3 %vm761_vm12, %v7052_v55  ;;  %725 = vst [vmem:[#allocation2 + $0x8] sm:$0x30] %v689_v3 }
  0xd0   : > { %6125 = vmatmul.msk.f32.vlgmr.msrb.gmra.mxu2 %vm761_vm12, %v7052_v55  ;;  %6132 = vmatmul.msk.f32.gmra.mxu0 %vm761_vm12, %v7135_v38  ;;  %726 = vst [vmem:[#allocation2 + $0x40] sm:$0x30] %v690_v4 }
  0xd1   : > { %6135 = vmatmul.msk.f32.gmra.mxu1 %vm761_vm12, %v7135_v38  ;;  %6148 = vmatpush.msk.msrb.mxu2 %vm768_vm11, %v7082_v11  ;;  %v650_v39 = vpop.permute.xlu0 %649  ;;  %v1176_v11 = vld [vmem:[#allocation2 + $0x38] sm:$0x3f] }
  0xd2   : > { %6151 = vmatpush.msk.msrb.mxu3 %vm768_vm11, %v759_v28  ;;  %v671_v43 = vsel %vm657_vm10, %v648_v42, %v650_v39  ;;  %v656_v16 = vpop.permute.xlu2 %655 }
  0xd3   : > { %v691_v45 = vrot.slane %v671_v43, 6  ;;  %v559_v53 = vpop.permute.xlu1 %558  ;;  %v676_v18 = vsel %vm657_vm10, %v656_v16, 0.0 }
  0xd4   : > { %v580_v54 = vsel %vm566_vm9, %v557_v50, %v559_v53  ;;  %v7184_v5 = vld [vmem:[#allocation2 + $0x20] sm:$0x3f]  ;;  %v695_v21 = vrot.slane %v676_v18, 6 }
  0xd5   : > { %727 = vst [vmem:[#allocation2 + $0x28] sm:$0x30] %v691_v45  ;;  %v1893_v36 = vld [vmem:[#allocation2 + $0x20] sm:$0x3f] }
  0xd6   : > { %617 = vst [vmem:[#allocation2 + $0x10] sm:$0x3] %v580_v54 }
  0xd7   : > { %6129 = vmatmul.msk.f32.gmra.mxu3 %vm761_vm12, %v7070_v2  ;;  %731 = vst [vmem:[#allocation2 + $0x30] sm:$0x30] %v695_v21 }
  0xd8   : > { %6126 = vmatmul.msk.f32.gmra.mxu2 %vm761_vm12, %v7070_v2  ;;  %6143 = vmatmul.msk.f32.vlgmr.msrb.gmra.mxu0 %vm761_vm12, %v7114_v29 }
  0xd9   : > { %6146 = vmatmul.msk.f32.vlgmr.msrb.gmra.mxu1 %vm761_vm12, %v7114_v29  ;;  %6166 = vmatpush.msk.msrb.mxu0 %vm768_vm11, %v1174_v46  ;;  %v652_v48 = vpop.permute.xlu0 %651 }
  0xda   : > { %6169 = vmatpush.msk.msrb.mxu1 %vm768_vm11, %v1175_v47  ;;  %v672_v49 = vsel %vm657_vm10, %v650_v39, %v652_v48 }
  0xdb   : > { %v692_v51 = vrot.slane %v672_v49, 6  ;;  %v654_v7 = vpop.permute.xlu1 %653 }
  0xdc   : > { %v673_v9 = vsel %vm657_vm10, %v652_v48, %v654_v7  ;;  %v674_v17 = vsel %vm657_vm10, %v654_v7, %v656_v16  ;;  %v1494_v24 = vld [vmem:[#allocation2 + $0x28] sm:$0x3f] }
  0xdd   : > { %728 = vst [vmem:[#allocation2 + $0x10] sm:$0x30] %v692_v51  ;;  %v693_v10 = vrot.slane %v673_v9, 6  ;;  %v694_v20 = vrot.slane %v674_v17, 6  ;;  %v1896_v46 = vld [vmem:[#allocation2 + $0x28] sm:$0x3f] }
  0xdf   : > { %6140 = vmatmul.msk.f32.vlgmr.msra.gmra.mxu3 %vm761_vm12, %v7114_v29  ;;  %729 = vst [vmem:[#allocation2 + $0x60] sm:$0x30] %v693_v10 }
  0xe0   : > { %6137 = vmatmul.msk.f32.vlgmr.msra.gmra.mxu2 %vm761_vm12, %v7114_v29  ;;  %6144 = vmatmul.msk.f32.gmra.mxu0 %vm761_vm12, %v7135_v38  ;;  %730 = vst [vmem:[#allocation2 + $0x58] sm:$0x30] %v694_v20 }
  0xe1   : > { %6147 = vmatmul.msk.f32.gmra.mxu1 %vm761_vm12, %v7135_v38  ;;  %6160 = vmatpush.msk.msra.mxu2 %vm768_vm11, %v1172_v56  ;;  %v553_v58 = vpop.permute.xlu0 %552 }
  0xe2   : > { %6163 = vmatpush.msk.msra.mxu3 %vm768_vm11, %v1173_v57  ;;  %v577_v59 = vsel %vm566_vm9, %v551_v33, %v553_v58  ;;  %v578_v60 = vsel %vm566_vm9, %v553_v58, %v555_v44 }
  0xe3   : > { %614 = vst [vmem:[#allocation2 + $0x8] sm:$0x3] %v577_v59  ;;  %v563_v19 = vpop.permute.xlu1 %562 }
  0xe4   : > { %615 = vst [vmem:[#allocation2 + $0x40] sm:$0x3] %v578_v60  ;;  %v7220_v25 = vld [vmem:[#allocation2 + $0x10] sm:$0x3f] }
  0xe7   : > { %6141 = vmatmul.msk.f32.gmra.mxu3 %vm761_vm12, %v7135_v38 }
  0xe8   : > { %6138 = vmatmul.msk.f32.gmra.mxu2 %vm761_vm12, %v7135_v38  ;;  %6155 = vmatmul.msk.f32.vlgmr.msra.gmra.mxu0 %vm761_vm12, %v7182_v1 }
  0xe9   : > { %6158 = vmatmul.msk.f32.vlgmr.msra.gmra.mxu1 %vm761_vm12, %v7182_v1  ;;  %6178 = vmatpush.msk.msra.mxu0 %vm768_vm11, %v1490_v6  ;;  %v561_v14 = vpop.permute.xlu0 %560 }
  0xea   : > { %6181 = vmatpush.msk.msra.mxu1 %vm768_vm11, %v7184_v5  ;;  %v581_v15 = vsel %vm566_vm9, %v559_v53, %v561_v14  ;;  %v582_v23 = vsel %vm566_vm9, %v561_v14, %v563_v19  ;;  %v1492_v26 = vld [vmem:[#allocation2 + $0x8] sm:$0x3f] }
  0xeb   : > { %618 = vst [vmem:[#allocation2 + $0x60] sm:$0x3] %v581_v15  ;;  %v1493_v27 = vld [vmem:[#allocation2 + $0x40] sm:$0x3f]  ;;  %v7273_v31 = vpop.permute.xlu1 %6491  ;;  %v1894_v37 = vld [vmem:[#allocation2 + $0x8] sm:$0x3f] }
  0xec   : > { %619 = vst [vmem:[#allocation2 + $0x58] sm:$0x3] %v582_v23  ;;  %v6493_v32 = vunpack.i.l.bf16 %v7273_v31 }
  0xee   : > { %v583_v33 = vsel %vm566_vm9, %v563_v19, %v6493_v32 }
  0xef   : > { %6152 = vmatmul.msk.f32.vlgmr.msrb.gmra.mxu3 %vm761_vm12, %v7114_v29  ;;  %620 = vst [vmem:[#allocation2 + $0x30] sm:$0x3] %v583_v33 }
  0xf0   : > { %6149 = vmatmul.msk.f32.vlgmr.msrb.gmra.mxu2 %vm761_vm12, %v7114_v29  ;;  %6156 = vmatmul.msk.f32.gmra.mxu0 %vm761_vm12, %v7200_v8 }
  0xf1   : > { %6159 = vmatmul.msk.f32.gmra.mxu1 %vm761_vm12, %v7200_v8  ;;  %6172 = vmatpush.msk.msrb.mxu2 %vm768_vm11, %v1176_v11  ;;  %v7406_v11 = vld [vmem:[%s10284_s1] sm:$0xff] }
  0xf2   : > { %6175 = vmatpush.msk.msrb.mxu3 %vm768_vm11, %v1177_v12  ;;  %v1496_v28 = vld [vmem:[#allocation2 + $0x60] sm:$0x3f]  ;;  %v7415_v16 = vperm.slane %v7406_v11, 0  ;;  %v7418_v17 = vperm.slane %v7406_v11, 1 }
  0xf3   : > { %v1497_v30 = vld [vmem:[#allocation2 + $0x58] sm:$0x3f]  ;;  %v1898_v43 = vld [vmem:[#allocation2 + $0x60] sm:$0x3f] }
  0xf4   : > { %v1899_v56 = vld [vmem:[#allocation2 + $0x58] sm:$0x3f]  ;;  %10430 = vst [vmem:[#allocation5_spill] sm:$0xff] %v7415_v16 }
  0xf5   : > { %10431 = vst [vmem:[#allocation6_spill] sm:$0xff] %v7418_v17 }
  0xf6   : > { %v1900_v57 = vld [vmem:[#allocation2 + $0x30] sm:$0x3f] }
  0xf7   : > { %6153 = vmatmul.msk.f32.gmra.mxu3 %vm761_vm12, %v7135_v38 }
  0xf8   : > { %6150 = vmatmul.msk.f32.gmra.mxu2 %vm761_vm12, %v7135_v38  ;;  %6167 = vmatmul.msk.f32.vlgmr.msrb.gmra.mxu0 %vm761_vm12, %v7182_v1 }
  0xf9   : > { %6170 = vmatmul.msk.f32.vlgmr.msrb.gmra.mxu1 %vm761_vm12, %v7182_v1  ;;  %6190 = vmatpush.msk.msrb.mxu0 %vm768_vm11, %v1494_v24 }
  0xfa   : > { %6193 = vmatpush.msk.msrb.mxu1 %vm768_vm11, %v7220_v25 }
  0xff   : > { %6164 = vmatmul.msk.f32.vlgmr.msra.gmra.mxu3 %vm761_vm12, %v7182_v1 }
 0x100   : > { %6161 = vmatmul.msk.f32.vlgmr.msra.gmra.mxu2 %vm761_vm12, %v7182_v1  ;;  %6168 = vmatmul.msk.f32.gmra.mxu0 %vm761_vm12, %v7200_v8 }
 0x101   : > { %6171 = vmatmul.msk.f32.gmra.mxu1 %vm761_vm12, %v7200_v8  ;;  %6184 = vmatpush.msk.msra.mxu2 %vm768_vm11, %v1492_v26 }
 0x102   : > { %6187 = vmatpush.msk.msra.mxu3 %vm768_vm11, %v1493_v27 }
 0x107   : > { %6165 = vmatmul.msk.f32.gmra.mxu3 %vm761_vm12, %v7200_v8 }
 0x108   : > { %6162 = vmatmul.msk.f32.gmra.mxu2 %vm761_vm12, %v7200_v8  ;;  %6179 = vmatmul.msk.f32.vlgmr.msra.gmra.mxu0 %vm761_vm12, %v7052_v55 }
 0x109   : > { %6182 = vmatmul.msk.f32.vlgmr.msra.gmra.mxu1 %vm761_vm12, %v7052_v55  ;;  %6202 = vmatpush.msk.msra.mxu0 %vm768_vm11, %v1489_v22 }
 0x10a   : > { %6205 = vmatpush.msk.msra.mxu1 %vm768_vm11, %v1490_v6 }
 0x10f   : > { %6176 = vmatmul.msk.f32.vlgmr.msrb.gmra.mxu3 %vm761_vm12, %v7182_v1  ;;  %v7401_v7 = vpop.permute.xlu0 %744 }
 0x110   : > { %6173 = vmatmul.msk.f32.vlgmr.msrb.gmra.mxu2 %vm761_vm12, %v7182_v1  ;;  %6180 = vmatmul.msk.f32.gmra.mxu0 %vm761_vm12, %v7070_v2 }
 0x111   : > { %6183 = vmatmul.msk.f32.gmra.mxu1 %vm761_vm12, %v7070_v2  ;;  %6196 = vmatpush.msk.msrb.mxu2 %vm768_vm11, %v1496_v28 }
 0x112   : > { %6199 = vmatpush.msk.msrb.mxu3 %vm768_vm11, %v1497_v30 }
 0x117   : > { %6177 = vmatmul.msk.f32.gmra.mxu3 %vm761_vm12, %v7200_v8 }
 0x118   : > { %6174 = vmatmul.msk.f32.gmra.mxu2 %vm761_vm12, %v7200_v8  ;;  %6191 = vmatmul.msk.f32.vlgmr.msrb.gmra.mxu0 %vm761_vm12, %v7052_v55 }
 0x119   : > { %6194 = vmatmul.msk.f32.vlgmr.msrb.gmra.mxu1 %vm761_vm12, %v7052_v55  ;;  %6214 = vmatpush.msk.msrb.mxu0 %vm768_vm11, %v1493_v27 }
 0x11a   : > { %6217 = vmatpush.msk.msrb.mxu1 %vm768_vm11, %v1494_v24 }
 0x11f   : > { %6188 = vmatmul.msk.f32.vlgmr.msra.gmra.mxu3 %vm761_vm12, %v7052_v55 }
 0x120   : > { %6185 = vmatmul.msk.f32.vlgmr.msra.gmra.mxu2 %vm761_vm12, %v7052_v55  ;;  %6192 = vmatmul.msk.f32.gmra.mxu0 %vm761_vm12, %v7070_v2 }
 0x121   : > { %6195 = vmatmul.msk.f32.gmra.mxu1 %vm761_vm12, %v7070_v2  ;;  %6208 = vmatpush.msk.msra.mxu2 %vm768_vm11, %v7184_v5 }
 0x122   : > { %6211 = vmatpush.msk.msra.mxu3 %vm768_vm11, %v1492_v26 }
 0x123   : > { %v7288_v34 = vpop.f32.mrf.mxu0 }
 0x124   : > { %v7290_v35 = vpop.f32.mrf.mxu1 }
 0x127   : > { %6189 = vmatmul.msk.f32.gmra.mxu3 %vm761_vm12, %v7070_v2 }
 0x128   : > { %6186 = vmatmul.msk.f32.gmra.mxu2 %vm761_vm12, %v7070_v2  ;;  %6203 = vmatmul.msk.f32.vlgmr.msra.gmra.mxu0 %vm761_vm12, %v7114_v29 }
 0x129   : > { %6206 = vmatmul.msk.f32.vlgmr.msra.gmra.mxu1 %vm761_vm12, %v7114_v29  ;;  %6226 = vmatpush.msk.msra.mxu0 %vm768_vm11, %v1893_v36 }
 0x12a   : > { %6229 = vmatpush.msk.msra.mxu1 %vm768_vm11, %v1894_v37 }
 0x12b   : > { %v7302_v39 = vpop.f32.mrf.mxu0 }
 0x12c   : > { %v7304_v40 = vpop.f32.mrf.mxu1 }
 0x12f   : > { %6200 = vmatmul.msk.f32.vlgmr.msrb.gmra.mxu3 %vm761_vm12, %v7052_v55 }
 0x130   : > { %6197 = vmatmul.msk.f32.vlgmr.msrb.gmra.mxu2 %vm761_vm12, %v7052_v55  ;;  %6204 = vmatmul.msk.f32.gmra.mxu0 %vm761_vm12, %v7135_v38  ;;  %v1897_v55 = vld [vmem:[#allocation2 + $0x10] sm:$0x3f] }
 0x131   : > { %6207 = vmatmul.msk.f32.gmra.mxu1 %vm761_vm12, %v7135_v38  ;;  %6220 = vmatpush.msk.msrb.mxu2 %vm768_vm11, %v7220_v25  ;;  %v7426_v25 = vpop.permute.xlu2 %749 }
 0x132   : > { %6223 = vmatpush.msk.msrb.mxu3 %vm768_vm11, %v1496_v28 }
 0x133   : > { %v7317_v41 = vpop.f32.mrf.mxu0 }
 0x134   : > { %v7319_v42 = vpop.f32.mrf.mxu1 }
 0x137   : > { %6201 = vmatmul.msk.f32.gmra.mxu3 %vm761_vm12, %v7070_v2 }
 0x138   : > { %6198 = vmatmul.msk.f32.gmra.mxu2 %vm761_vm12, %v7070_v2  ;;  %6215 = vmatmul.msk.f32.vlgmr.msrb.gmra.mxu0 %vm761_vm12, %v7114_v29  ;;  %v1895_v2 = vld [vmem:[#allocation2 + $0x40] sm:$0x3f] }
 0x139   : > { %6218 = vmatmul.msk.f32.vlgmr.msrb.gmra.mxu1 %vm761_vm12, %v7114_v29  ;;  %6238 = vmatpush.msk.msrb.mxu0 %vm768_vm11, %v1897_v55 }
 0x13a   : > { %6241 = vmatpush.msk.msrb.mxu1 %vm768_vm11, %v1898_v43 }
 0x13d   : > { %v7331_v44 = vpop.f32.mrf.mxu0  ;;  %v7333_v45 = vpop.f32.mrf.mxu1 }
 0x13f   : > { %6212 = vmatmul.msk.f32.vlgmr.msra.gmra.mxu3 %vm761_vm12, %v7114_v29 }
 0x140   : > { %6209 = vmatmul.msk.f32.vlgmr.msra.gmra.mxu2 %vm761_vm12, %v7114_v29  ;;  %6216 = vmatmul.msk.f32.gmra.mxu0 %vm761_vm12, %v7135_v38 }
 0x141   : > { %6219 = vmatmul.msk.f32.gmra.mxu1 %vm761_vm12, %v7135_v38  ;;  %6232 = vmatpush.msk.msra.mxu2 %vm768_vm11, %v1895_v2 }
 0x142   : > { %6235 = vmatpush.msk.msra.mxu3 %vm768_vm11, %v1896_v46  ;;  %v7345_v47 = vpop.f32.mrf.mxu2  ;;  %v7347_v48 = vpop.f32.mrf.mxu3 }
 0x145   : > { %v1003_v49 = vpop.f32.mrf.mxu0 }
 0x146   : > { %v1026_v50 = vpop.f32.mrf.mxu1  ;;  %v1004_v5 = vadd.f32 %v1003_v49, %v7288_v34 }
 0x147   : > { %6213 = vmatmul.msk.f32.gmra.mxu3 %vm761_vm12, %v7135_v38  ;;  %v1027_v6 = vadd.f32 %v1026_v50, %v7290_v35 }
 0x148   : > { %6210 = vmatmul.msk.f32.gmra.mxu2 %vm761_vm12, %v7135_v38  ;;  %6227 = vmatmul.msk.f32.vlgmr.msra.gmra.mxu0 %vm761_vm12, %v7182_v1 }
 0x149   : > { %6230 = vmatmul.msk.f32.vlgmr.msra.gmra.mxu1 %vm761_vm12, %v7182_v1 }
 0x14a   : > { %v7359_v52 = vpop.f32.mrf.mxu3 }
 0x14b   : > { %v7357_v51 = vpop.f32.mrf.mxu2 }
 0x14d   : > { %v1006_v53 = vpop.f32.mrf.mxu0 }
 0x14e   : > { %v1029_v54 = vpop.f32.mrf.mxu1  ;;  %v1007_v23 = vadd.f32 %v1006_v53, %v7302_v39 }
 0x14f   : > { %6224 = vmatmul.msk.f32.vlgmr.msrb.gmra.mxu3 %vm761_vm12, %v7114_v29  ;;  %v1030_v24 = vadd.f32 %v1029_v54, %v7304_v40 }
 0x150   : > { %6221 = vmatmul.msk.f32.vlgmr.msrb.gmra.mxu2 %vm761_vm12, %v7114_v29  ;;  %6228 = vmatmul.msk.f32.gmra.mxu0 %vm761_vm12, %v7200_v8 }
 0x151   : > { %6231 = vmatmul.msk.f32.gmra.mxu1 %vm761_vm12, %v7200_v8  ;;  %6244 = vmatpush.msk.msrb.mxu2 %vm768_vm11, %v1899_v56 }
 0x152   : > { %6247 = vmatpush.msk.msrb.mxu3 %vm768_vm11, %v1900_v57  ;;  %v7373_v59 = vpop.f32.mrf.mxu3 }
 0x153   : > { %v7371_v58 = vpop.f32.mrf.mxu2 }
 0x155   : > { %v1095_v60 = vpop.f32.mrf.mxu0 }
 0x156   : > { %v1118_v61 = vpop.f32.mrf.mxu1  ;;  %v1096_v55 = vadd.f32 %v1095_v60, %v7317_v41 }
 0x157   : > { %6225 = vmatmul.msk.f32.gmra.mxu3 %vm761_vm12, %v7135_v38  ;;  %v1119_v43 = vadd.f32 %v1118_v61, %v7319_v42 }
 0x158   : > { %6222 = vmatmul.msk.f32.gmra.mxu2 %vm761_vm12, %v7135_v38  ;;  %6239 = vmatmul.msk.f32.vlgmr.msrb.gmra.mxu0 %vm761_vm12, %v7182_v1 }
 0x159   : > { %6242 = vmatmul.msk.f32.vlgmr.msrb.gmra.mxu1 %vm761_vm12, %v7182_v1 }
 0x15a   : > { %v7385_v62 = vpop.f32.mrf.mxu3 }
 0x15b   : > { %v7383_v29 = vpop.f32.mrf.mxu2 }
 0x15d   : > { %v1098_v63 = vpop.f32.mrf.mxu0 }
 0x15e   : > { %v1121_v3 = vpop.f32.mrf.mxu1  ;;  %v1099_v60 = vadd.f32 %v1098_v63, %v7331_v44 }
 0x15f   : > { %6236 = vmatmul.msk.f32.vlgmr.msra.gmra.mxu3 %vm761_vm12, %v7182_v1  ;;  %v1122_v61 = vadd.f32 %v1121_v3, %v7333_v45 }
 0x160   : > { %6233 = vmatmul.msk.f32.vlgmr.msra.gmra.mxu2 %vm761_vm12, %v7182_v1  ;;  %6240 = vmatmul.msk.f32.gmra.mxu0 %vm761_vm12, %v7200_v8 }
 0x161   : > { %6243 = vmatmul.msk.f32.gmra.mxu1 %vm761_vm12, %v7200_v8 }
 0x162   : > { %v7397_v4 = vpop.f32.mrf.mxu3 }
 0x163   : > { %v7395_v38 = vpop.f32.mrf.mxu2 }
 0x165   : > { %v1225_v9 = vpop.f32.mrf.mxu0 }
 0x166   : > { %v1248_v10 = vpop.f32.mrf.mxu1  ;;  %v1392_v12 = vadd.f32 %v1225_v9, %v1004_v5  ;;  %v7471_v5 = vperm.slane %v7406_v11, 4 }
 0x167   : > { %v1393_v13 = vadd.f32 %v1248_v10, %v1027_v6  ;;  %6237 = vmatmul.msk.f32.gmra.mxu3 %vm761_vm12, %v7200_v8  ;;  %v7474_v6 = vperm.slane %v7406_v11, 5 }
 0x168   : > { %6234 = vmatmul.msk.f32.gmra.mxu2 %vm761_vm12, %v7200_v8  ;;  %v1408_v14 = vadd.f32 %v1392_v12, %v7401_v7  ;;  %10432 = vst [vmem:[#allocation7_spill] sm:$0xff] %v7471_v5 }
 0x169   : > { %v1409_v15 = vadd.f32 %v1393_v13, %v7401_v7  ;;  %10433 = vst [vmem:[#allocation8_spill] sm:$0xff] %v7474_v6 }
 0x16a   : > { %v7422_v19 = vpop.f32.mrf.mxu3  ;;  %v1424_v20 = vmax.f32 %v1408_v14, 0.0 }
 0x16b   : > { %v7420_v18 = vpop.f32.mrf.mxu2  ;;  %v1425_v21 = vmax.f32 %v1409_v15, 0.0 }
 0x16c   : > { %v7429_v26 = vmul.f32 %v7415_v16, %v1424_v20 }
 0x16d   : > { %v7432_v27 = vmul.f32 %v7418_v17, %v1425_v21  ;;  %v1228_v22 = vpop.f32.mrf.mxu0 }
 0x16e   : > { %v1251_v28 = vpop.f32.mrf.mxu1  ;;  %v1400_v30 = vadd.f32 %v1228_v22, %v1007_v23 }
 0x16f   : > { %v1401_v32 = vadd.f32 %v1251_v28, %v1030_v24  ;;  %v6495_v33 = vpack.i.bf16 %v7432_v27, %v7429_v26  ;;  %6248 = vmatmul.msk.f32.vlgmr.msrb.gmra.mxu3 %vm761_vm12, %v7182_v1 }
 0x170   : > { %6245 = vmatmul.msk.f32.vlgmr.msrb.gmra.mxu2 %vm761_vm12, %v7182_v1  ;;  %v1416_v34 = vadd.f32 %v1400_v30, %v7426_v25 }
 0x171   : > { %6496 = vrot.lane.b32.xlu1 %v6495_v33, %s6871_s12  ;;  %v1417_v35 = vadd.f32 %v1401_v32, %v7426_v25  ;;  %v1050_v33 = vadd.f32 %v7395_v38, %v7345_v47  ;;  %v1076_v47 = vadd.f32 %v7422_v19, %v7359_v52 }
 0x172   : > { %v7445_v37 = vpop.f32.mrf.mxu3  ;;  %v1432_v39 = vmax.f32 %v1416_v34, 0.0 }
 0x173   : > { %v7443_v36 = vpop.f32.mrf.mxu2  ;;  %v1433_v40 = vmax.f32 %v1417_v35, 0.0 }
 0x174   : > { %v7450_v2 = vmul.f32 %v7415_v16, %v1432_v39 }
 0x175   : > { %v7453_v1 = vmul.f32 %v7418_v17, %v1433_v40  ;;  %v1317_v46 = vpop.f32.mrf.mxu0  ;;  %v1073_v40 = vadd.f32 %v7397_v4, %v7347_v48  ;;  %v7519_v4 = vperm.slane %v7406_v11, 3 }
 0x176   : > { %v1340_v49 = vpop.f32.mrf.mxu1  ;;  %v1396_v50 = vadd.f32 %v1317_v46, %v1096_v55  ;;  %v6505_v10 = vpack.i.bf16 0.0, %v7450_v2  ;;  %v1053_v55 = vadd.f32 %v7420_v18, %v7357_v51 }
 0x177   : > { %v1397_v53 = vadd.f32 %v1340_v49, %v1119_v43  ;;  %v6500_v54 = vpack.i.bf16 %v7453_v1, %v7450_v2  ;;  %6249 = vmatmul.msk.f32.gmra.mxu3 %vm761_vm12, %v7200_v8  ;;  %10436 = vst [vmem:[#allocation11_spill] sm:$0xff] %v7519_v4 }
 0x178   : > { %6246 = vmatmul.msk.f32.gmra.mxu2 %vm761_vm12, %v7200_v8  ;;  %v1412_v41 = vadd.f32 %v1396_v50, %v7401_v7 }
 0x179   : > { %6501 = vrot.lane.b32.xlu2 %v6500_v54, %s6871_s12  ;;  %v1413_v42 = vadd.f32 %v1397_v53, %v7401_v7 }
 0x17a   : > { %v7466_v57 = vpop.f32.mrf.mxu3  ;;  %v1428_v12 = vmax.f32 %v1412_v41, 0.0 }
 0x17b   : > { %v7464_v56 = vpop.f32.mrf.mxu2  ;;  %v1429_v13 = vmax.f32 %v1413_v42, 0.0 }
 0x17c   : > { %v7481_v45 = vmul.f32 %v7471_v5, %v1428_v12  ;;  %v1142_v12 = vadd.f32 %v7443_v36, %v7371_v58  ;;  %v1145_v58 = vadd.f32 %v7464_v56, %v7383_v29 }
 0x17d   : > { %v1320_v8 = vpop.f32.mrf.mxu0  ;;  %v7484_v63 = vmul.f32 %v7474_v6, %v1429_v13 }
 0x17e   : > { %v1343_v9 = vpop.f32.mrf.mxu1  ;;  %v1404_v14 = vadd.f32 %v1320_v8, %v1099_v60  ;;  %v7522_v60 = vperm.slane %v7406_v11, 2 }
 0x17f   : > { %v1405_v15 = vadd.f32 %v1343_v9, %v1122_v61  ;;  %10434 = vst [vmem:[#allocation9_spill] sm:$0xff] %v7484_v63  ;;  %v6520_v34 = vpack.i.bf16 %v7484_v63, %v7481_v45 }
 0x180   : > { %v1420_v20 = vadd.f32 %v1404_v14, %v7426_v25  ;;  %10437 = vst [vmem:[#allocation12_spill] sm:$0xff] %v7522_v60 }
 0x181   : > { %v1421_v44 = vadd.f32 %v1405_v15, %v7426_v25  ;;  %6506 = vrot.lane.b32.xlu2 %v6505_v10, %s6870_s11 }
 0x182   : > { %v1436_v3 = vmax.f32 %v1420_v20, 0.0  ;;  %v1294_v24 = vpop.f32.mrf.mxu3 }
 0x183   : > { %v1437_v21 = vmax.f32 %v1421_v44, 0.0  ;;  %v1271_v23 = vpop.f32.mrf.mxu2  ;;  %v1395_v46 = vadd.f32 %v1294_v24, %v1073_v40  ;;  %v7559_v40 = vperm.slane %v7406_v11, 6 }
 0x184   : > { %v7487_v22 = vmul.f32 %v7471_v5, %v1436_v3  ;;  %v1394_v39 = vadd.f32 %v1271_v23, %v1050_v33 }
 0x185   : > { %v7490_v28 = vmul.f32 %v7474_v6, %v1437_v21  ;;  %v7492_v30 = vpop.f32.mrf.mxu0  ;;  %v1411_v51 = vadd.f32 %v1395_v46, %v7401_v7  ;;  %10440 = vst [vmem:[#allocation15_spill] sm:$0xff] %v7559_v40 }
 0x186   : > { %v7494_v32 = vpop.f32.mrf.mxu1  ;;  %v1410_v53 = vadd.f32 %v1394_v39, %v7401_v7 }
 0x187   : > { %10435 = vst [vmem:[#allocation10_spill] sm:$0xff] %v7490_v28  ;;  %v6515_v35 = vpack.i.bf16 %v7490_v28, %v7487_v22  ;;  %v1427_v13 = vmax.f32 %v1411_v51, 0.0  ;;  %v6560_v29 = vpack.i.bf16 %v7484_v63, %v7490_v28  ;;  %v7617_v28 = vperm.slane %v7406_v11, 7 }
 0x188   : > { %v1426_v19 = vmax.f32 %v1410_v53, 0.0 }
 0x189   : > { %6521 = vrot.lane.b32.xlu2 %v6520_v34, %s6871_s12  ;;  %6516 = vrot.lane.b32.xlu1 %v6515_v35, %s6871_s12  ;;  %v7549_v23 = vmul.f32 %v7519_v4, %v1427_v13  ;;  %10441 = vst [vmem:[#allocation16_spill] sm:$0xff] %v7617_v28 }
 0x18a   : > { %v1297_v43 = vpop.f32.mrf.mxu3  ;;  %v7539_v15 = vmul.f32 %v7522_v60, %v1426_v19  ;;  %v6550_v19 = vpack.i.bf16 %v7432_v27, %v7453_v1 }
 0x18b   : > { %v1274_v38 = vpop.f32.mrf.mxu2  ;;  %v1403_v50 = vadd.f32 %v1297_v43, %v1076_v47  ;;  %10439 = vst [vmem:[#allocation14_spill] sm:$0xff] %v7549_v23  ;;  %v6525_v35 = vpack.i.bf16 %v7549_v23, %v7487_v22 }
 0x18c   : > { %v1402_v49 = vadd.f32 %v1274_v38, %v1053_v55  ;;  %10438 = vst [vmem:[#allocation13_spill] sm:$0xff] %v7539_v15 }
 0x18d   : > { %v1419_v41 = vadd.f32 %v1403_v50, %v7426_v25  ;;  %v7513_v42 = vpop.f32.mrf.mxu0 }
 0x18e   : > { %v1418_v54 = vadd.f32 %v1402_v49, %v7426_v25  ;;  %v7515_v48 = vpop.f32.mrf.mxu1 }
 0x18f   : > { %v1435_v18 = vmax.f32 %v1419_v41, 0.0 }
 0x190   : > { %v1434_v52 = vmax.f32 %v1418_v54, 0.0 }
 0x191   : > { %6531 = vrot.lane.b32.xlu2 %v10292_v0, %s6871_s12  ;;  %2275 = vrot.lane.b32.xlu1 %v7481_v45, %s6870_s11  ;;  %v7529_v61 = vmul.f32 %v7519_v4, %v1435_v18 }
 0x192   : > { %v7532_v8 = vmul.f32 %v7522_v60, %v1434_v52  ;;  %v1386_v10 = vpop.f32.mrf.mxu3 }
 0x193   : > { %v1363_v9 = vpop.f32.mrf.mxu2  ;;  %v6510_v14 = vpack.i.bf16 %v7529_v61, %v7429_v26  ;;  %v6535_v54 = vpack.i.bf16 %v7549_v23, %v7529_v61 }
 0x194   : > { %v1398_v20 = vadd.f32 %v1363_v9, %v1142_v12  ;;  %v6545_v21 = vpack.i.bf16 %v7539_v15, %v7532_v8 }
 0x195   : > { %v7541_v44 = vpop.f32.mrf.mxu0  ;;  %6511 = vrot.lane.b32.xlu0 %v6510_v14, %s6870_s11 }
 0x196   : > { %v7543_v3 = vpop.f32.mrf.mxu1  ;;  %v1414_v36 = vadd.f32 %v1398_v20, %v7401_v7 }
 0x198   : > { %v1430_v39 = vmax.f32 %v1414_v36, 0.0 }
 0x199   : > { %6546 = vrot.lane.b32.xlu2 %v6545_v21, %s6871_s12  ;;  %6541 = vrot.lane.b32.xlu1 %v6545_v21, %s6870_s11 }
 0x19a   : > { %v1389_v33 = vpop.f32.mrf.mxu3  ;;  %v7571_v43 = vmul.f32 %v7559_v40, %v1430_v39 }
 0x19b   : > { %v1366_v24 = vpop.f32.mrf.mxu2 }
 0x19c   : > { %v1406_v34 = vadd.f32 %v1366_v24, %v1145_v58  ;;  %v1165_v24 = vadd.f32 %v7445_v37, %v7373_v59 }
 0x19d   : > { %v7562_v47 = vpop.f32.mrf.mxu0  ;;  %6526 = vrot.lane.b32.xlu0 %v6525_v35, %s6870_s11 }
 0x19e   : > { %v1422_v55 = vadd.f32 %v1406_v34, %v7426_v25  ;;  %v7564_v38 = vpop.f32.mrf.mxu1  ;;  %v1399_v39 = vadd.f32 %v1386_v10, %v1165_v24 }
 0x1a0   : > { %v1438_v56 = vmax.f32 %v1422_v55, 0.0 }
 0x1a1   : > { %6561 = vrot.lane.b32.xlu2 %v6560_v29, %s6870_s11 }
 0x1a2   : > { %v7574_v46 = vmul.f32 %v7559_v40, %v1438_v56  ;;  %v7578_v50 = vpop.f32.mrf.mxu3  ;;  %v1415_v56 = vadd.f32 %v1399_v39, %v7401_v7 }
 0x1a3   : > { %v7576_v49 = vpop.f32.mrf.mxu2 }
 0x1a4   : > { %v6555_v53 = vpack.i.bf16 %v7571_v43, %v7574_v46  ;;  %v1431_v63 = vmax.f32 %v1415_v56, 0.0 }
 0x1a5   : > { %v1726_v41 = vpop.f32.mrf.mxu0  ;;  %6536 = vrot.lane.b32.xlu0 %v6535_v54, %s6871_s12  ;;  %v1168_v54 = vadd.f32 %v7466_v57, %v7385_v62 }
 0x1a6   : > { %v1749_v51 = vpop.f32.mrf.mxu1  ;;  %6556 = vrot.lane.b32.xlu1 %v6555_v53, %s6871_s12  ;;  %v1727_v53 = vadd.f32 %v1726_v41, %v7492_v30  ;;  %v7625_v62 = vmul.f32 %v7617_v28, %v1431_v63 }
 0x1a7   : > { %v1750_v59 = vadd.f32 %v1749_v51, %v7494_v32  ;;  %v1407_v10 = vadd.f32 %v1389_v33, %v1168_v54 }
 0x1a9   : > { %v1423_v57 = vadd.f32 %v1407_v10, %v7426_v25 }
 0x1aa   : > { %v7588_v18 = vpop.f32.mrf.mxu3 }
 0x1ab   : > { %v7586_v52 = vpop.f32.mrf.mxu2  ;;  %v1439_v63 = vmax.f32 %v1423_v57, 0.0 }
 0x1ad   : > { %v1729_v9 = vpop.f32.mrf.mxu0  ;;  %6551 = vrot.lane.b32.xlu0 %v6550_v19, %s6870_s11 }
 0x1ae   : > { %v1752_v12 = vpop.f32.mrf.mxu1  ;;  %v1730_v32 = vadd.f32 %v1729_v9, %v7513_v42 }
 0x1af   : > { %v1753_v41 = vadd.f32 %v1752_v12, %v7515_v48  ;;  %v7644_v12 = vmul.f32 %v7617_v28, %v1439_v63 }
 0x1b2   : > { %v7595_v14 = vpop.f32.mrf.mxu3 }
 0x1b3   : > { %v7593_v13 = vpop.f32.mrf.mxu2 }
 0x1b5   : > { %v1818_v20 = vpop.f32.mrf.mxu0 }
 0x1b6   : > { %v1841_v21 = vpop.f32.mrf.mxu1 }
 0x1ba   : > { %v7599_v36 = vpop.f32.mrf.mxu3 }
 0x1bb   : > { %v7597_v58 = vpop.f32.mrf.mxu2 }
 0x1bd   : > { %v7603_v34 = vpop.f32.mrf.mxu0 }
 0x1be   : > { %v7605_v35 = vpop.f32.mrf.mxu1 }
 0x1c2   : > { %v7609_v29 = vpop.f32.mrf.mxu3 }
 0x1c3   : > { %v7607_v55 = vpop.f32.mrf.mxu2 }
 0x1c5   : > { %v1942_v19 = vpop.f32.mrf.mxu0 }
 0x1c6   : > { %v1965_v0 = vpop.f32.mrf.mxu1  ;;  %v2109_v37 = vadd.f32 %v1942_v19, %v1727_v53 }
 0x1c7   : > { %v2110_v23 = vadd.f32 %v1965_v0, %v1750_v59 }
 0x1c8   : > { %v2125_v24 = vadd.f32 %v2109_v37, %v7401_v7  ;;  %v1819_v37 = vadd.f32 %v1818_v20, %v7541_v44 }
 0x1c9   : > { %v2126_v33 = vadd.f32 %v2110_v23, %v7401_v7 }
 0x1ca   : > { %v2141_v15 = vmax.f32 %v2125_v24, 0.0  ;;  %v7622_v30 = vpop.f32.mrf.mxu3 }
 0x1cb   : > { %v7620_v39 = vpop.f32.mrf.mxu2  ;;  %v2142_v19 = vmax.f32 %v2126_v33, 0.0 }
 0x1cc   : > { %v7631_v11 = vmul.f32 %v2141_v15, %v7415_v16 }
 0x1cd   : > { %v1945_v0 = vpop.f32.mrf.mxu0 }
 0x1ce   : > { %10442 = vst [vmem:[#allocation17_spill] sm:$0xff] %v7631_v11  ;;  %v1968_v51 = vpop.f32.mrf.mxu1  ;;  %v2117_v56 = vadd.f32 %v1945_v0, %v1730_v32  ;;  %v6565_v54 = vpack.i.bf16 %v7631_v11, %v7625_v62  ;;  %v1842_v32 = vadd.f32 %v1841_v21, %v7543_v3  ;;  %v6580_v3 = vpack.i.bf16 %v7625_v62, %v7571_v43 }
 0x1cf   : > { %v2118_v53 = vadd.f32 %v1968_v51, %v1753_v41  ;;  %v7653_v41 = vmul.f32 %v2142_v19, %v7418_v17 }
 0x1d0   : > { %v2133_v59 = vadd.f32 %v2117_v56, %v7426_v25  ;;  %6566 = vrot.lane.b32.xlu1 %v6565_v54, %s6871_s12 }
 0x1d1   : > { %v2134_v42 = vadd.f32 %v2118_v53, %v7426_v25 }
 0x1d2   : > { %v2149_v48 = vmax.f32 %v2133_v59, 0.0  ;;  %v7649_v57 = vpop.f32.mrf.mxu3 }
 0x1d3   : > { %v2150_v15 = vmax.f32 %v2134_v42, 0.0  ;;  %v7639_v9 = vpop.permute.xlu2 %6501  ;;  %v7641_v23 = vpop.f32.mrf.mxu2 }
 0x1d4   : > { %v10303_v10 = vunpack.i.h.bf16 %v7639_v9  ;;  %v10302_v24 = vunpack.i.l.bf16 %v7639_v9  ;;  %v7656_v33 = vmul.f32 %v2149_v48, %v7415_v16 }
 0x1d5   : > { %v7659_v0 = vmul.f32 %v2150_v15, %v7418_v17  ;;  %v2034_v51 = vpop.f32.mrf.mxu0 }
 0x1d6   : > { %10443 = vst [vmem:[#allocation18_spill] sm:$0xff] %v7656_v33  ;;  %v2057_v56 = vpop.f32.mrf.mxu1  ;;  %v7666_v44 = vsel %vm657_vm10, %v10302_v24, %v10303_v10  ;;  %v2113_v20 = vadd.f32 %v2034_v51, %v1819_v37  ;;  %v6570_v53 = vpack.i.bf16 %v7656_v33, %v7644_v12  ;;  %v1845_v51 = vadd.f32 %v7605_v35, %v7564_v38 }
 0x1d7   : > { %v2114_v21 = vadd.f32 %v2057_v56, %v1842_v32  ;;  %2716 = vmatpush.msra.mxu0 %v7666_v44  ;;  %v7675_v54 = vpack.i.bf16 %v7653_v41, %v7659_v0  ;;  %v1822_v32 = vadd.f32 %v7603_v34, %v7562_v47  ;;  %v6590_v47 = vpack.i.bf16 %v7631_v11, %v7656_v33 }
 0x1d8   : > { %v2129_v63 = vadd.f32 %v2113_v20, %v7401_v7  ;;  %6581 = vrot.lane.b32.xlu1 %v6580_v3, %s6870_s11  ;;  %6571 = vrot.lane.b32.xlu0 %v6570_v53, %s6871_s12  ;;  %v1796_v35 = vadd.f32 %v7609_v29, %v7578_v50  ;;  %v1773_v29 = vadd.f32 %v7607_v55, %v7576_v49 }
 0x1d9   : > { %v2130_v19 = vadd.f32 %v2114_v21, %v7401_v7  ;;  %6586 = vrot.lane.b32.xlu2 %v7675_v54, %s6871_s12  ;;  %v1776_v49 = vadd.f32 %v7620_v39, %v7586_v52  ;;  %v1799_v55 = vadd.f32 %v7622_v30, %v7588_v18 }
 0x1da   : > { %v2145_v59 = vmax.f32 %v2129_v63, 0.0  ;;  %v7687_v37 = vpop.f32.mrf.mxu3 }
 0x1db   : > { %v2146_v42 = vmax.f32 %v2130_v19, 0.0  ;;  %v7683_v48 = vpop.permute.xlu2 %6506  ;;  %v7685_v15 = vpop.f32.mrf.mxu2  ;;  %v6575_v19 = vpack.i.bf16 %v7644_v12, %v7574_v46 }
 0x1dc   : > { %v7694_v56 = vmul.f32 %v2145_v59, %v7471_v5 }
 0x1dd   : > { %v7697_v3 = vmul.f32 %v2146_v42, %v7474_v6  ;;  %v2037_v20 = vpop.f32.mrf.mxu0 }
 0x1de   : > { %v2060_v21 = vpop.f32.mrf.mxu1  ;;  %v2121_v53 = vadd.f32 %v2037_v20, %v1822_v32 }
 0x1df   : > { %10444 = vst [vmem:[#allocation19_spill] sm:$0xff] %v7697_v3  ;;  %v2122_v63 = vadd.f32 %v2060_v21, %v1845_v51  ;;  %v6600_v24 = vpack.i.bf16 %v7697_v3, %v7694_v56 }
 0x1e0   : > { %v2137_v38 = vadd.f32 %v2121_v53, %v7426_v25  ;;  %6576 = vrot.lane.b32.xlu0 %v6575_v19, %s6870_s11 }
 0x1e1   : > { %v2138_v34 = vadd.f32 %v2122_v63, %v7426_v25  ;;  %6601 = vrot.lane.b32.xlu1 %v6600_v24, %s6871_s12  ;;  %6591 = vrot.lane.b32.xlu2 %v6590_v47, %s6870_s11 }
 0x1e2   : > { %v2153_v59 = vmax.f32 %v2137_v38, 0.0  ;;  %v2011_v63 = vpop.f32.mrf.mxu3 }
 0x1e3   : > { %v2154_v42 = vmax.f32 %v2138_v34, 0.0  ;;  %v7712_v32 = vpop.permute.xlu2 %6521  ;;  %v7714_v51 = vpop.permute.xlu1 %6496  ;;  %v2112_v47 = vadd.f32 %v2011_v63, %v1796_v35  ;;  %v10310_v35 = vunpack.i.h.bf16 %v7273_v31 }
 0x1e4   : > { %v6499_v20 = vunpack.i.h.bf16 %v7714_v51  ;;  %v10304_v21 = vunpack.i.l.bf16 %v7714_v51  ;;  %v1988_v53 = vpop.f32.mrf.mxu2  ;;  %v7719_v19 = vmul.f32 %v2153_v59, %v7471_v5  ;;  %v10309_v59 = vunpack.i.l.bf16 %v7683_v48 }
 0x1e5   : > { %v7722_v24 = vmul.f32 %v2154_v42, %v7474_v6  ;;  %v2128_v38 = vadd.f32 %v2112_v47, %v7401_v7  ;;  %v2111_v42 = vadd.f32 %v1988_v53, %v1773_v29 }
 0x1e6   : > { %v7727_v50 = vsel %vm657_vm10, %v10304_v21, %v6499_v20 }
 0x1e7   : > { %10445 = vst [vmem:[#allocation20_spill] sm:$0xff] %v7722_v24  ;;  %2717 = vmatpush.msra.mxu0 %v7727_v50  ;;  %v6595_v34 = vpack.i.bf16 %v7722_v24, %v7719_v19  ;;  %v2144_v10 = vmax.f32 %v2128_v38, 0.0  ;;  %v7754_v38 = vsel %vm566_vm9, %v10310_v35, %v10309_v59  ;;  %v2127_v52 = vadd.f32 %v2111_v42, %v7401_v7 }
 0x1e9   : > { %6596 = vrot.lane.b32.xlu0 %v6595_v34, %s6871_s12  ;;  %2718 = vmatpush.msra.mxu0 %v7450_v2  ;;  %v7744_v63 = vmul.f32 %v2144_v10, %v7519_v4  ;;  %v2143_v21 = vmax.f32 %v2127_v52, 0.0  ;;  %v1865_v52 = vadd.f32 %v7641_v23, %v7593_v13 }
 0x1ea   : > { %v2014_v29 = vpop.f32.mrf.mxu3 }
 0x1eb   : > { %10446 = vst [vmem:[#allocation21_spill] sm:$0xff] %v7744_v63  ;;  %v7746_v47 = vpop.permute.xlu2 %6531  ;;  %2719 = vmatpush.msra.mxu0 %v7429_v26  ;;  %v2120_v18 = vadd.f32 %v2014_v29, %v1799_v55  ;;  %v6610_v34 = vpack.i.bf16 %v7694_v56, %v7744_v63 }
 0x1ec   : > { %v1991_v53 = vpop.f32.mrf.mxu2 }
 0x1ed   : > { %v2119_v39 = vadd.f32 %v1991_v53, %v1776_v49  ;;  %2720 = vmatpush.msra.mxu0 %v7754_v38  ;;  %v2136_v10 = vadd.f32 %v2120_v18, %v7426_v25  ;;  %v7776_v18 = vmul.f32 %v2143_v21, %v7522_v60  ;;  %v1888_v21 = vadd.f32 %v7649_v57, %v7595_v14 }
 0x1ef   : > { %v2135_v30 = vadd.f32 %v2119_v39, %v7426_v25  ;;  %v2152_v5 = vmax.f32 %v2136_v10, 0.0  ;;  %10449 = vst [vmem:[#allocation24_spill] sm:$0xff] %v7776_v18 }
 0x1f1   : > { %v2151_v6 = vmax.f32 %v2135_v30, 0.0  ;;  %6611 = vrot.lane.b32.xlu0 %v6610_v34, %s6870_s11  ;;  %v7767_v42 = vmul.f32 %v2152_v5, %v7519_v4  ;;  %v10450_v30 = vunpack.i.h.bf16 %v7639_v9 }
 0x1f2   : > { %v2103_v39 = vpop.f32.mrf.mxu3 }
 0x1f3   : > { %v7764_v59 = vmul.f32 %v2151_v6, %v7522_v60  ;;  %10448 = vst [vmem:[#allocation23_spill] sm:$0xff] %v7767_v42  ;;  %v7769_v49 = vpop.permute.xlu2 %6546  ;;  %v6605_v6 = vpack.i.bf16 %v7719_v19, %v7767_v42  ;;  %v6615_v5 = vpack.i.bf16 %v7744_v63, %v7767_v42 }
 0x1f4   : > { %v10311_v55 = vunpack.i.h.bf16 %v7769_v49  ;;  %v10312_v53 = vunpack.i.l.bf16 %v7769_v49  ;;  %v2080_v29 = vpop.f32.mrf.mxu2 }
 0x1f5   : > { %10447 = vst [vmem:[#allocation22_spill] sm:$0xff] %v7764_v59  ;;  %v2115_v34 = vadd.f32 %v2080_v29, %v1865_v52  ;;  %6606 = vrot.lane.b32.xlu2 %v6605_v6, %s6870_s11  ;;  %v6625_v13 = vpack.i.bf16 %v7776_v18, %v7764_v59  ;;  %6616 = vrot.lane.b32.xlu1 %v6615_v5, %s6871_s12 }
 0x1f6   : > { %v7787_v10 = vsel %vm657_vm10, %v10450_v30, %v10312_v53  ;;  %v7797_v23 = vsel %vm657_vm10, %v6499_v20, %v10311_v55  ;;  %v1868_v29 = vadd.f32 %v7685_v15, %v7597_v58  ;;  %v1891_v52 = vadd.f32 %v7687_v37, %v7599_v36 }
 0x1f7   : > { %2739 = vmatpush.msra.mxu1 %v7787_v10  ;;  %v2131_v6 = vadd.f32 %v2115_v34, %v7401_v7  ;;  %v2116_v30 = vadd.f32 %v2103_v39, %v1888_v21  ;;  %v6640_v58 = vpack.i.bf16 %v7697_v3, %v7722_v24 }
 0x1f9   : > { %6626 = vrot.lane.b32.xlu0 %v6625_v13, %s6871_s12  ;;  %2740 = vmatpush.msra.mxu1 %v7797_v23  ;;  %v2147_v53 = vmax.f32 %v2131_v6, 0.0  ;;  %v2132_v36 = vadd.f32 %v2116_v30, %v7401_v7  ;;  %v10314_v30 = vunpack.i.h.bf16 %v7712_v32 }
 0x1fa   : > { %v2106_v20 = vpop.f32.mrf.mxu3 }
 0x1fb   : > { %2741 = vmatpush.msra.mxu1 %v7453_v1  ;;  %v2124_v55 = vadd.f32 %v2106_v20, %v1891_v52  ;;  %v7820_v39 = vmul.f32 %v2147_v53, %v7559_v40  ;;  %v7828_v34 = vpop.permute.xlu1 %6516  ;;  %v7850_v20 = vld [vmem:[%s10287_s4 + $0x10] sm:$0xff] }
 0x1fc   : > { %v2083_v5 = vpop.f32.mrf.mxu2  ;;  %v10313_v52 = vunpack.i.h.bf16 %v7828_v34  ;;  %v6518_v6 = vunpack.i.l.bf16 %v7828_v34 }
 0x1fd   : > { %v2123_v35 = vadd.f32 %v2083_v5, %v1868_v29  ;;  %2742 = vmatpush.msra.mxu1 %v7432_v27  ;;  %v2140_v57 = vadd.f32 %v2124_v55, %v7426_v25  ;;  %6621 = vrot.lane.b32.xlu2 %v6625_v13, %s6870_s11  ;;  %10451 = vst [vmem:[#allocation25_spill] sm:$0xff] %v7820_v39  ;;  %v2148_v55 = vmax.f32 %v2132_v36, 0.0  ;;  %v10316_v13 = vunpack.i.h.bf16 %v7683_v48 }
 0x1fe   : > { %6631 = vrot.lane.b32.xlu1 %v7675_v54, %s6870_s11 }
 0x1ff   : > { %v2139_v14 = vadd.f32 %v2123_v35, %v7426_v25  ;;  %v2156_v37 = vmax.f32 %v2140_v57, 0.0  ;;  %v7841_v29 = vmul.f32 %v2148_v55, %v7617_v28 }
 0x201   : > { %v2155_v15 = vmax.f32 %v2139_v14, 0.0  ;;  %6641 = vrot.lane.b32.xlu0 %v6640_v58, %s6870_s11  ;;  %v7826_v25 = vmul.f32 %v2156_v37, %v7617_v28  ;;  %10454 = vst [vmem:[#allocation28_spill] sm:$0xff] %v7841_v29  ;;  %v6523_v14 = vunpack.i.l.bf16 %v7712_v32  ;;  %v7867_v58 = vsel %vm657_vm10, %v6518_v6, %v10313_v52  ;;  %v2634_v37 = vld [vmem:[%s10288_s5 + $0x8] sm:$0xff] }
 0x202   : > { %v6650_v36 = vpack.i.bf16 0.0, %v7841_v29  ;;  %v10455_v28 = vmov 0.0  }
 0x203   : > { %v7823_v35 = vmul.f32 %v2155_v15, %v7559_v40  ;;  %10453 = vst [vmem:[#allocation27_spill] sm:$0xff] %v7826_v25  ;;  %v6645_v7 = vpack.i.bf16 0.0, %v7826_v25  ;;  %v6660_v15 = vpack.i.bf16 %v7841_v29, %v7820_v39  ;;  %v7876_v55 = vpop.permute.xlu1 %2275  ;;  %v10456_v40 = vunpack.i.l.bf16 %v7639_v9 }
 0x205   : > { %10452 = vst [vmem:[#allocation26_spill] sm:$0xff] %v7823_v35  ;;  %v6635_v54 = vpack.i.bf16 %v7820_v39, %v7823_v35  ;;  %v6655_v53 = vpack.i.bf16 %v7826_v25, %v7823_v35  ;;  %v10458_v39 = vunpack.i.l.bf16 %v7769_v49 }
 0x206   : > { %6646 = vrot.lane.b32.xlu1 %v6645_v7, %s6871_s12 }
 0x207   : > { %6636 = vrot.lane.b32.xlu2 %v6635_v54, %s6871_s12  ;;  %v7838_v21 = vpop.permute.xlu0 %6511  ;;  %v7882_v54 = vsel %vm657_vm10, %v6523_v14, %v10314_v30 }
 0x208   : > { %v10315_v5 = vunpack.i.l.bf16 %v7838_v21 }
 0x209   : > { %6656 = vrot.lane.b32.xlu0 %v6655_v53, %s6870_s11  ;;  %v6514_v53 = vunpack.i.h.bf16 %v7838_v21 }
 0x20a   : > { %v7859_v57 = vsel %vm566_vm9, %v10316_v13, %v10315_v5  ;;  %v6533_v5 = vunpack.i.l.bf16 %v7746_v47 }
 0x20b   : > { %2721 = vmatpush.msra.mxu0 %v7859_v57  ;;  %v6542_v4 = vpop.permute.xlu1 %6541 }
 0x20c   : > { %6254 = vmatmul.msk.f32.vlgmr.msra.gmra.mxu0 %vm2699_vm13, %v7850_v20  ;;  %v2534_v60 = vsel %vm657_vm10, %v6533_v5, %v10456_v40  ;;  %v10465_v5 = vld [vmem:[#allocation14_spill] sm:$0xff] }
 0x20d   : > { %2808 = vmatpush.msrb.mxu0 %v7867_v58 }
 0x20e   : > { %6661 = vrot.lane.b32.xlu1 %v6660_v15, %s6870_s11 }
 0x20f   : > { %6651 = vrot.lane.b32.xlu2 %v6650_v36, %s6871_s12  ;;  %2809 = vmatpush.msrb.mxu0 %v7882_v54  ;;  %v7886_v7 = vpop.permute.xlu0 %6526  ;;  %v7894_v36 = vld [vmem:[%s10287_s4 + $0x18] sm:$0xff] }
 0x210   : > { %v10319_v52 = vunpack.i.l.bf16 %v7886_v7  ;;  %v6529_v30 = vunpack.i.h.bf16 %v7886_v7 }
 0x211   : > { %2642 = vperm.xlu0 %6489, %v2634_v37   ;;  %2810 = vmatpush.msrb.mxu0 %v7487_v22  ;;  %v6534_v37 = vunpack.i.h.bf16 %v7746_v47  ;;  %v10457_v47 = vunpack.i.l.bf16 %v7714_v51  ;;  %v6543_v51 = vunpack.i.l.bf16 %v6542_v4 }
 0x212   : > { %v7900_v15 = vsel %vm566_vm9, %v6514_v53, %v10319_v52  ;;  %v7910_v13 = vsel %vm566_vm9, %v6529_v30, %v7876_v55 }
 0x213   : > { %2811 = vmatpush.msrb.mxu0 %v7481_v45  ;;  %v2517_v29 = vsel %vm657_vm10, %v6534_v37, %v10457_v47  ;;  %v10467_v37 = vunpack.i.l.bf16 %v7683_v48 }
 0x214   : > { %6255 = vmatmul.msk.f32.gmra.mxu0 %vm2699_vm13, %v7894_v36 }
 0x215   : > { %2812 = vmatpush.msrb.mxu0 %v7900_v15 }
 0x217   : > { %6666 = vrot.lane.b32.xlu2 %v10455_v28, %s6870_s11  ;;  %2813 = vmatpush.msrb.mxu0 %v7910_v13  ;;  %v6537_v52 = vpop.permute.xlu0 %6536 }
 0x218   : > { %v6539_v17 = vunpack.i.h.bf16 %v6537_v52  ;;  %v6538_v16 = vunpack.i.l.bf16 %v6537_v52 }
 0x219   : > { %2906 = vmatpush.msra.mxu0 %v2534_v60  ;;  %v10459_v60 = vunpack.i.h.bf16 %v7769_v49 }
 0x21a   : > { %v7924_v25 = vsel %vm657_vm10, %v10458_v39, %v6538_v16  ;;  %v7927_v35 = vsel %vm657_vm10, %v6538_v16, %v6518_v6  ;;  %v7941_v9 = vsel %vm657_vm10, %v6539_v17, %v6523_v14  ;;  %v10460_v16 = vmov 0  ;;  %v7951_v39 = vpop.permute.xlu1 %6556  ;;  %v10464_v6 = vld [vmem:[#allocation13_spill] sm:$0xff] }
 0x21b   : > { %2907 = vmatpush.msra.mxu0 %v2517_v29  ;;  %2762 = vmatpush.msra.mxu2 %v7924_v25  ;;  %v7935_v40 = vsel %vm657_vm10, %v10459_v60, %v6539_v17  ;;  %v10461_v16 = vsel %vm7944_vm14, 4294967295, %v10460_v16  ;;  %v10463_v17 = vunpack.i.h.bf16 %v7273_v31  ;;  %v10466_v14 = vunpack.i.h.bf16 %v7683_v48 }
 0x21c   : > { %2785 = vmatpush.msra.mxu3 %v7927_v35  ;;  %6262 = vmatmul.msk.f32.vlgmr.msrb.gmra.mxu0 %vm2699_vm13, %v7850_v20  ;;  %10462 = vst [vmem:[#allocation29_spill] sm:$0xff] %v10461_v16  ;;  %v6544_v31 = vunpack.i.h.bf16 %v6542_v4  ;;  %v10468_v48 = vunpack.i.l.bf16 %v7838_v21  ;;  %v10338_v4 = vunpack.i.h.bf16 %v7951_v39  ;;  %v10469_v21 = vunpack.i.h.bf16 %v7828_v34  ;;  %v8020_v34 = vpop.permute.xlu2 %6561 }
 0x21d   : > { %2908 = vmatpush.msra.mxu0 %v10455_v28  ;;  %2763 = vmatpush.msra.mxu2 %v7935_v40 }
 0x21e   : > { %2786 = vmatpush.msra.mxu3 %v7941_v9 }
 0x21f   : > { %2909 = vmatpush.msra.mxu0 %v10455_v28  ;;  %v6552_v49 = vpop.permute.xlu0 %6551  ;;  %2764 = vmatpush.msra.mxu2 %v7532_v8 }
 0x220   : > { %v6554_v29 = vunpack.i.h.bf16 %v6552_v49  ;;  %v6553_v52 = vunpack.i.l.bf16 %v6552_v49  ;;  %2787 = vmatpush.msra.mxu3 %v7529_v61  ;;  %v10339_v49 = vunpack.i.l.bf16 %v7951_v39 }
 0x221   : > { %6455 = vmatpush.msk.msra.mxu0 %vm7944_vm14, %v10463_v17  ;;  %2765 = vmatpush.msra.mxu2 %v10464_v6  ;;  %v7976_v17 = vsel %vm566_vm9, %v6543_v51, %v6514_v53  ;;  %v7995_v53 = vsel %vm566_vm9, %v6544_v31, %v6529_v30  ;;  %v10470_v30 = vunpack.i.h.bf16 %v7712_v32  ;;  %v10471_v32 = vld [vmem:[#allocation10_spill] sm:$0xff] }
 0x222   : > { %2788 = vmatpush.msra.mxu3 %v10465_v5  ;;  %v7967_v47 = vsel %vm566_vm9, %v10467_v37, %v6553_v52  ;;  %v7970_v60 = vsel %vm566_vm9, %v6553_v52, %v6543_v51  ;;  %v7990_v52 = vsel %vm566_vm9, %v6554_v29, %v6544_v31  ;;  %v8005_v51 = vsel %vm657_vm10, %v10469_v21, %v10339_v49  ;;  %v8027_v37 = vld [vmem:[%s10287_s4] sm:$0xff] }
 0x223   : > { %6457 = vmatpush.msk.msra.mxu0 %vm7944_vm14, %v10466_v14  ;;  %2743 = vmatpush.msra.mxu1 %v7967_v47  ;;  %v7983_v14 = vsel %vm566_vm9, %v10468_v48, %v6554_v29  ;;  %v8014_v29 = vsel %vm657_vm10, %v10470_v30, %v10338_v4  ;;  %v10341_v31 = vunpack.i.l.bf16 %v8020_v34  ;;  %v10472_v48 = vld [vmem:[#allocation9_spill] sm:$0xff]  ;;  %v10340_v21 = vunpack.i.h.bf16 %v8020_v34 }
 0x224   : > { %2766 = vmatpush.msra.mxu2 %v7970_v60  ;;  %2789 = vmatpush.msra.mxu3 %v7976_v17  ;;  %v10473_v30 = vunpack.i.l.bf16 %v7886_v7  ;;  %v8065_v7 = vld [vmem:[%s10287_s4 + $0x8] sm:$0xff] }
 0x225   : > { %2998 = vmatpush.msrb.mxu0 %v7927_v35  ;;  %2744 = vmatpush.msra.mxu1 %v7983_v14  ;;  %v8053_v49 = vsel %vm566_vm9, %v7876_v55, %v10340_v21 }
 0x226   : > { %6263 = vmatmul.msk.f32.gmra.mxu0 %vm2699_vm13, %v7894_v36  ;;  %2767 = vmatpush.msra.mxu2 %v7990_v52  ;;  %v8045_v4 = vsel %vm566_vm9, %v10473_v30, %v10341_v31  ;;  %v8109_v30 = vld [vmem:[%s10287_s4 + $0x20] sm:$0xff]  ;;  %v10474_v31 = vunpack.i.l.bf16 %v7951_v39 }
 0x227   : > { %2999 = vmatpush.msrb.mxu0 %v7941_v9  ;;  %2790 = vmatpush.msra.mxu3 %v7995_v53 }
 0x228   : > { %6256 = vmatmul.msk.f32.vlgmr.msra.gmra.mxu1 %vm2699_vm13, %v7850_v20  ;;  %6258 = vmatmul.msk.f32.vlgmr.msra.gmra.mxu2 %vm2699_vm13, %v7850_v20 }
 0x229   : > { %2831 = vmatpush.msrb.mxu1 %v8005_v51  ;;  %3000 = vmatpush.msrb.mxu0 %v7529_v61 }
 0x22a   : > { %6260 = vmatmul.msk.f32.vlgmr.msra.gmra.mxu3 %vm2699_vm13, %v7850_v20 }
 0x22b   : > { %2832 = vmatpush.msrb.mxu1 %v8014_v29  ;;  %3001 = vmatpush.msrb.mxu0 %v10465_v5 }
 0x22d   : > { %2833 = vmatpush.msrb.mxu1 %v10471_v32  ;;  %3002 = vmatpush.msrb.mxu0 %v7976_v17 }
 0x22e   : > { %6270 = vmatmul.msk.f32.vlgmr.msra.gmra.mxu0 %vm2699_vm13, %v8027_v37 }
 0x22f   : > { %2834 = vmatpush.msrb.mxu1 %v10472_v48  ;;  %3003 = vmatpush.msrb.mxu0 %v7995_v53 }
 0x230   : > { %6257 = vmatmul.msk.f32.gmra.mxu1 %vm2699_vm13, %v7894_v36  ;;  %6259 = vmatmul.msk.f32.gmra.mxu2 %vm2699_vm13, %v7894_v36 }
 0x231   : > { %3144 = vmatpush.msra.mxu0 %v7787_v10  ;;  %2835 = vmatpush.msrb.mxu1 %v8045_v4 }
 0x232   : > { %6261 = vmatmul.msk.f32.gmra.mxu3 %vm2699_vm13, %v7894_v36 }
 0x233   : > { %3145 = vmatpush.msra.mxu0 %v7797_v23  ;;  %2836 = vmatpush.msrb.mxu1 %v8053_v49 }
 0x235   : > { %2929 = vmatpush.msra.mxu1 %v7666_v44  ;;  %3146 = vmatpush.msra.mxu0 %v7453_v1  ;;  %v8096_v44 = vpop.permute.xlu2 %6586 }
 0x236   : > { %6271 = vmatmul.msk.f32.gmra.mxu0 %vm2699_vm13, %v8065_v7 }
 0x237   : > { %2930 = vmatpush.msra.mxu1 %v7727_v50  ;;  %3147 = vmatpush.msra.mxu0 %v7432_v27 }
 0x238   : > { %6264 = vmatmul.msk.f32.vlgmr.msrb.gmra.mxu1 %vm2699_vm13, %v7850_v20 }
 0x239   : > { %2931 = vmatpush.msra.mxu1 %v7450_v2  ;;  %3148 = vmatpush.msra.mxu0 %v7967_v47  ;;  %v2633_v2 = vld [vmem:[%s10288_s5] sm:$0xff] }
 0x23a   : > { %2637 = vperm.xlu1 %6670, %v2633_v2  }
 0x23b   : > { %2932 = vmatpush.msra.mxu1 %v7429_v26  ;;  %3149 = vmatpush.msra.mxu0 %v7983_v14 }
 0x23d   : > { %2933 = vmatpush.msra.mxu1 %v7754_v38  ;;  %v10345_v38 = vunpack.i.l.bf16 %v8096_v44 }
 0x23e   : > { %6278 = vmatmul.msk.f32.vlgmr.msrb.gmra.mxu0 %vm2699_vm13, %v8027_v37 }
 0x23f   : > { %2934 = vmatpush.msra.mxu1 %v7859_v57  ;;  %3236 = vmatpush.msrb.mxu0 %v8005_v51 }
 0x240   : > { %6265 = vmatmul.msk.f32.gmra.mxu1 %vm2699_vm13, %v7894_v36 }
 0x241   : > { %3021 = vmatpush.msrb.mxu1 %v7867_v58  ;;  %3237 = vmatpush.msrb.mxu0 %v8014_v29 }
 0x242   : > { %v6567_v26 = vpop.permute.xlu1 %6566 }
 0x243   : > { %3022 = vmatpush.msrb.mxu1 %v7882_v54  ;;  %3238 = vmatpush.msrb.mxu0 %v10471_v32  ;;  %v6568_v2 = vunpack.i.l.bf16 %v6567_v26  ;;  %v6569_v21 = vunpack.i.h.bf16 %v6567_v26 }
 0x245   : > { %3023 = vmatpush.msrb.mxu1 %v7487_v22  ;;  %3239 = vmatpush.msrb.mxu0 %v10472_v48  ;;  %v8144_v18 = vsel %vm657_vm10, %v6568_v2, %v6569_v21 }
 0x246   : > { %6279 = vmatmul.msk.f32.gmra.mxu0 %vm2699_vm13, %v8065_v7 }
 0x247   : > { %3024 = vmatpush.msrb.mxu1 %v7481_v45  ;;  %3240 = vmatpush.msrb.mxu0 %v8045_v4 }
 0x248   : > { %6272 = vmatmul.msk.f32.vlgmr.msra.gmra.mxu1 %vm2699_vm13, %v8027_v37 }
 0x249   : > { %3025 = vmatpush.msrb.mxu1 %v7900_v15  ;;  %3241 = vmatpush.msrb.mxu0 %v8053_v49 }
 0x24a   : > { %v6572_v50 = vpop.permute.xlu0 %6571  ;;  %v6582_v26 = vpop.permute.xlu1 %6581 }
 0x24b   : > { %3026 = vmatpush.msrb.mxu1 %v7910_v13  ;;  %v6574_v57 = vunpack.i.h.bf16 %v6572_v50  ;;  %v6573_v55 = vunpack.i.l.bf16 %v6572_v50  ;;  %v6584_v24 = vunpack.i.h.bf16 %v6582_v26 }
 0x24d   : > { %3167 = vmatpush.msra.mxu1 %v7924_v25  ;;  %v8115_v16 = vsel %vm657_vm10, %v10474_v31, %v6573_v55  ;;  %v8118_v28 = vsel %vm657_vm10, %v6573_v55, %v6574_v57  ;;  %v8123_v50 = vsel %vm657_vm10, %v6574_v57, %v10345_v38  ;;  %v10354_v31 = vunpack.i.h.bf16 %v8096_v44  ;;  %v8138_v38 = vpop.permute.xlu2 %6591 }
 0x24e   : > { %6286 = vmatmul.msk.f32.vlgmr.msra.gmra.mxu0 %vm2699_vm13, %v8109_v30  ;;  %2854 = vmatpush.msrb.mxu2 %v8115_v16  ;;  %v10475_v55 = vunpack.i.h.bf16 %v7951_v39  ;;  %v10361_v42 = vunpack.i.l.bf16 %v8138_v38 }
 0x24f   : > { %3168 = vmatpush.msra.mxu1 %v7935_v40  ;;  %2877 = vmatpush.msrb.mxu3 %v8118_v28  ;;  %v8151_v39 = vsel %vm657_vm10, %v6569_v21, %v10354_v31  ;;  %v6583_v21 = vunpack.i.l.bf16 %v6582_v26 }
 0x250   : > { %3462 = vmatpush.msra.mxu0 %v8123_v50  ;;  %v8136_v57 = vsel %vm657_vm10, %v10475_v55, %v6568_v2  ;;  %6273 = vmatmul.msk.f32.gmra.mxu1 %vm2699_vm13, %v8065_v7  ;;  %v8158_v2 = vld [vmem:[%s10287_s4 + $0x28] sm:$0xff] }
 0x251   : > { %3169 = vmatpush.msra.mxu1 %v7532_v8  ;;  %2855 = vmatpush.msrb.mxu2 %v8136_v57 }
 0x252   : > { %2878 = vmatpush.msrb.mxu3 %v8144_v18  ;;  %v6577_v55 = vpop.permute.xlu0 %6576  ;;  %3463 = vmatpush.msra.mxu0 %v8151_v39 }
 0x253   : > { %3170 = vmatpush.msra.mxu1 %v10464_v6  ;;  %v6579_v59 = vunpack.i.h.bf16 %v6577_v55  ;;  %v6578_v63 = vunpack.i.l.bf16 %v6577_v55  ;;  %2856 = vmatpush.msrb.mxu2 %v7574_v46  ;;  %v10476_v55 = vunpack.i.l.bf16 %v8020_v34 }
 0x254   : > { %2879 = vmatpush.msrb.mxu3 %v7644_v12  ;;  %3464 = vmatpush.msra.mxu0 %v7656_v33 }
 0x255   : > { %3171 = vmatpush.msra.mxu1 %v7970_v60  ;;  %2857 = vmatpush.msrb.mxu2 %v7571_v43  ;;  %v8168_v31 = vsel %vm566_vm9, %v10476_v55, %v6578_v63  ;;  %v8171_v3 = vsel %vm566_vm9, %v6578_v63, %v6579_v59  ;;  %v8179_v33 = vsel %vm566_vm9, %v6579_v59, %v10361_v42  ;;  %v10366_v55 = vunpack.i.h.bf16 %v8138_v38  ;;  %v8193_v59 = vpop.permute.xlu1 %6601 }
 0x256   : > { %2880 = vmatpush.msrb.mxu3 %v7625_v62  ;;  %6287 = vmatmul.msk.f32.gmra.mxu0 %vm2699_vm13, %v8158_v2  ;;  %10477 = vst [vmem:[#allocation13_spill] sm:$0xff] %v8179_v33  ;;  %v10478_v63 = vunpack.i.h.bf16 %v8020_v34  ;;  %v8198_v42 = vsel %vm566_vm9, %v6583_v21, %v6584_v24 }
 0x257   : > { %3172 = vmatpush.msra.mxu1 %v7990_v52  ;;  %3465 = vmatpush.msra.mxu0 %v7631_v11 }
 0x258   : > { %2858 = vmatpush.msrb.mxu2 %v8168_v31  ;;  %2881 = vmatpush.msrb.mxu3 %v8171_v3  ;;  %v8191_v26 = vsel %vm566_vm9, %v10478_v63, %v6583_v21  ;;  %v6604_v21 = vunpack.i.h.bf16 %v8193_v59 }
 0x259   : > { %3466 = vmatpush.msra.mxu0 %v8179_v33  ;;  %6280 = vmatmul.msk.f32.vlgmr.msrb.gmra.mxu1 %vm2699_vm13, %v8027_v37  ;;  %v8203_v33 = vsel %vm566_vm9, %v6584_v24, %v10366_v55  ;;  %v6603_v24 = vunpack.i.l.bf16 %v8193_v59 }
 0x25a   : > { %3259 = vmatpush.msrb.mxu1 %v8115_v16  ;;  %2859 = vmatpush.msrb.mxu2 %v8191_v26 }
 0x25b   : > { %v8205_v11 = vpop.permute.xlu0 %6596  ;;  %2882 = vmatpush.msrb.mxu3 %v8198_v42  ;;  %3467 = vmatpush.msra.mxu0 %v8203_v33 }
 0x25c   : > { %v6599_v34 = vunpack.i.h.bf16 %v8205_v11  ;;  %v6598_v63 = vunpack.i.l.bf16 %v8205_v11  ;;  %6266 = vmatmul.msk.f32.vlgmr.msrb.gmra.mxu2 %vm2699_vm13, %v7850_v20  ;;  %6268 = vmatmul.msk.f32.vlgmr.msrb.gmra.mxu3 %vm2699_vm13, %v7850_v20 }
 0x25d   : > { %2952 = vmatpush.msra.mxu2 %v7787_v10  ;;  %2975 = vmatpush.msra.mxu3 %v7924_v25  ;;  %v8240_v10 = vsel %vm657_vm10, %v6603_v24, %v6604_v21 }
 0x25e   : > { %v8224_v55 = vsel %vm657_vm10, %v6598_v63, %v6599_v34  ;;  %3260 = vmatpush.msrb.mxu1 %v8136_v57  ;;  %6294 = vmatmul.msk.f32.vlgmr.msrb.gmra.mxu0 %vm2699_vm13, %v8109_v30 }
 0x25f   : > { %2953 = vmatpush.msra.mxu2 %v7797_v23  ;;  %2976 = vmatpush.msra.mxu3 %v7935_v40 }
 0x260   : > { %3261 = vmatpush.msrb.mxu1 %v7574_v46  ;;  %3554 = vmatpush.msrb.mxu0 %v8224_v55 }
 0x261   : > { %2954 = vmatpush.msra.mxu2 %v7453_v1  ;;  %2977 = vmatpush.msra.mxu3 %v7532_v8  ;;  %v8248_v1 = vpop.permute.xlu2 %6606 }
 0x262   : > { %3262 = vmatpush.msrb.mxu1 %v7571_v43  ;;  %3555 = vmatpush.msrb.mxu0 %v8240_v10  ;;  %v6608_v8 = vunpack.i.l.bf16 %v8248_v1 }
 0x263   : > { %v8244_v23 = vpop.permute.xlu0 %6611  ;;  %2955 = vmatpush.msra.mxu2 %v7432_v27  ;;  %2978 = vmatpush.msra.mxu3 %v10464_v6  ;;  %v6609_v27 = vunpack.i.h.bf16 %v8248_v1 }
 0x264   : > { %6281 = vmatmul.msk.f32.gmra.mxu1 %vm2699_vm13, %v8065_v7  ;;  %6267 = vmatmul.msk.f32.gmra.mxu2 %vm2699_vm13, %v7894_v36  ;;  %v6614_v25 = vunpack.i.h.bf16 %v8244_v23  ;;  %v6613_v40 = vunpack.i.l.bf16 %v8244_v23  ;;  %v10490_v23 = vld [vmem:[#allocation22_spill] sm:$0xff] }
 0x265   : > { %3263 = vmatpush.msrb.mxu1 %v8168_v31  ;;  %6269 = vmatmul.msk.f32.gmra.mxu3 %vm2699_vm13, %v7894_v36 }
 0x266   : > { %2956 = vmatpush.msra.mxu2 %v7967_v47  ;;  %2979 = vmatpush.msra.mxu3 %v7970_v60  ;;  %v8280_v47 = vsel %vm566_vm9, %v6608_v8, %v6609_v27 }
 0x267   : > { %3264 = vmatpush.msrb.mxu1 %v8191_v26  ;;  %3556 = vmatpush.msrb.mxu0 %v7719_v19 }
 0x268   : > { %2957 = vmatpush.msra.mxu2 %v7983_v14  ;;  %2980 = vmatpush.msra.mxu3 %v7990_v52  ;;  %v8295_v14 = vsel %vm566_vm9, %v6613_v40, %v6614_v25 }
 0x269   : > { %3557 = vmatpush.msrb.mxu0 %v7694_v56 }
 0x26a   : > { %3044 = vmatpush.msrb.mxu2 %v8005_v51  ;;  %3067 = vmatpush.msrb.mxu3 %v8115_v16  ;;  %v8285_v16 = vpop.permute.xlu1 %6616  ;;  %v10479_v51 = vunpack.i.l.bf16 %v8096_v44 }
 0x26b   : > { %v8270_v6 = vpop.permute.xlu0 %6626  ;;  %6295 = vmatmul.msk.f32.gmra.mxu0 %vm2699_vm13, %v8158_v2 }
 0x26c   : > { %3045 = vmatpush.msrb.mxu2 %v8014_v29  ;;  %v6628_v60 = vunpack.i.l.bf16 %v8270_v6  ;;  %3068 = vmatpush.msrb.mxu3 %v8136_v57  ;;  %v6629_v52 = vunpack.i.h.bf16 %v8270_v6 }
 0x26d   : > { %3558 = vmatpush.msrb.mxu0 %v8280_v47  ;;  %6288 = vmatmul.msk.f32.vlgmr.msra.gmra.mxu1 %vm2699_vm13, %v8109_v30 }
 0x26e   : > { %3046 = vmatpush.msrb.mxu2 %v10471_v32  ;;  %3069 = vmatpush.msrb.mxu3 %v7574_v46  ;;  %v8305_v29 = vsel %vm657_vm10, %v10479_v51, %v6628_v60  ;;  %v8313_v46 = vpop.permute.xlu2 %6621  ;;  %v10480_v32 = vunpack.i.h.bf16 %v8096_v44  ;;  %v10483_v44 = vld [vmem:[#allocation20_spill] sm:$0xff] }
 0x26f   : > { %3559 = vmatpush.msrb.mxu0 %v8295_v14  ;;  %6274 = vmatmul.msk.f32.vlgmr.msra.gmra.mxu2 %vm2699_vm13, %v8027_v37 }
 0x270   : > { %6276 = vmatmul.msk.f32.vlgmr.msra.gmra.mxu3 %vm2699_vm13, %v8027_v37  ;;  %3047 = vmatpush.msrb.mxu2 %v10472_v48  ;;  %v8323_v57 = vsel %vm657_vm10, %v10480_v32, %v6629_v52 }
 0x271   : > { %3070 = vmatpush.msrb.mxu3 %v7571_v43  ;;  %3485 = vmatpush.msra.mxu1 %v8305_v29 }
 0x272   : > { %3048 = vmatpush.msrb.mxu2 %v8045_v4  ;;  %v8335_v43 = vpop.permute.xlu1 %6631  ;;  %v6619_v4 = vunpack.i.h.bf16 %v8285_v16 }
 0x273   : > { %3071 = vmatpush.msrb.mxu3 %v8168_v31  ;;  %6302 = vmatmul.msk.f32.vlgmr.msra.gmra.mxu0 %vm2699_vm13, %v7850_v20  ;;  %v8398_v48 = vpop.permute.xlu0 %6641 }
 0x274   : > { %3486 = vmatpush.msra.mxu1 %v8323_v57  ;;  %3646 = vmatpush.msra.mxu0 %v8118_v28  ;;  %v6644_v11 = vunpack.i.h.bf16 %v8398_v48 }
 0x275   : > { %3049 = vmatpush.msrb.mxu2 %v8053_v49  ;;  %3072 = vmatpush.msrb.mxu3 %v8191_v26  ;;  %v6633_v49 = vunpack.i.l.bf16 %v8335_v43  ;;  %v10485_v26 = vld [vmem:[#allocation19_spill] sm:$0xff] }
 0x276   : > { %6289 = vmatmul.msk.f32.gmra.mxu1 %vm2699_vm13, %v8158_v2  ;;  %3647 = vmatpush.msra.mxu0 %v8144_v18 }
 0x277   : > { %3190 = vmatpush.msra.mxu2 %v7927_v35  ;;  %3213 = vmatpush.msra.mxu3 %v7867_v58  ;;  %v8348_v35 = vpop.permute.xlu2 %6636  ;;  %v6634_v58 = vunpack.i.h.bf16 %v8335_v43 }
 0x278   : > { %6275 = vmatmul.msk.f32.gmra.mxu2 %vm2699_vm13, %v8065_v7  ;;  %6277 = vmatmul.msk.f32.gmra.mxu3 %vm2699_vm13, %v8065_v7 }
 0x279   : > { %3191 = vmatpush.msra.mxu2 %v7941_v9  ;;  %3214 = vmatpush.msra.mxu3 %v7882_v54  ;;  %v10482_v9 = vunpack.i.h.bf16 %v8138_v38 }
 0x27a   : > { %3648 = vmatpush.msra.mxu0 %v7644_v12  ;;  %3487 = vmatpush.msra.mxu1 %v7659_v0  ;;  %v8528_v6 = vpop.permute.xlu1 %6646 }
 0x27b   : > { %3192 = vmatpush.msra.mxu2 %v7529_v61  ;;  %3215 = vmatpush.msra.mxu3 %v7487_v22  ;;  %v10481_v61 = vunpack.i.l.bf16 %v8138_v38  ;;  %v6638_v22 = vunpack.i.l.bf16 %v8348_v35  ;;  %v10484_v38 = vld [vmem:[#allocation18_spill] sm:$0xff]  ;;  %v10368_v51 = vunpack.i.h.bf16 %v8528_v6 }
 0x27c   : > { %3649 = vmatpush.msra.mxu0 %v7625_v62  ;;  %3488 = vmatpush.msra.mxu1 %v7653_v41 }
 0x27d   : > { %3193 = vmatpush.msra.mxu2 %v10465_v5  ;;  %3216 = vmatpush.msra.mxu3 %v7481_v45  ;;  %v8363_v54 = vsel %vm566_vm9, %v10481_v61, %v6633_v49  ;;  %v6639_v45 = vunpack.i.h.bf16 %v8348_v35  ;;  %v8379_v5 = vsel %vm566_vm9, %v10482_v9, %v6634_v58 }
 0x27e   : > { %6303 = vmatmul.msk.f32.gmra.mxu0 %vm2699_vm13, %v7894_v36  ;;  %3489 = vmatpush.msra.mxu1 %v8363_v54 }
 0x27f   : > { %3650 = vmatpush.msra.mxu0 %v8171_v3  ;;  %3194 = vmatpush.msra.mxu2 %v7976_v17  ;;  %v8393_v17 = vsel %vm657_vm10, %v6599_v34, %v6638_v22  ;;  %v6623_v34 = vunpack.i.l.bf16 %v8313_v46 }
 0x280   : > { %3217 = vmatpush.msra.mxu3 %v7900_v15  ;;  %6296 = vmatmul.msk.f32.vlgmr.msrb.gmra.mxu1 %vm2699_vm13, %v8109_v30  ;;  %v6618_v15 = vunpack.i.l.bf16 %v8285_v16  ;;  %v8539_v16 = vpop.permute.xlu2 %6651 }
 0x281   : > { %3651 = vmatpush.msra.mxu0 %v8198_v42  ;;  %3490 = vmatpush.msra.mxu1 %v8379_v5  ;;  %v10367_v32 = vunpack.i.h.bf16 %v8539_v16 }
 0x282   : > { %6282 = vmatmul.msk.f32.vlgmr.msrb.gmra.mxu2 %vm2699_vm13, %v8027_v37  ;;  %6284 = vmatmul.msk.f32.vlgmr.msrb.gmra.mxu3 %vm2699_vm13, %v8027_v37  ;;  %v8490_v1 = vsel %vm657_vm10, %v6628_v60, %v6618_v15 }
 0x283   : > { %3195 = vmatpush.msra.mxu2 %v7995_v53  ;;  %3218 = vmatpush.msra.mxu3 %v7910_v13  ;;  %v8407_v53 = vsel %vm657_vm10, %v6604_v21, %v6639_v45  ;;  %v6643_v13 = vunpack.i.l.bf16 %v8398_v48  ;;  %v10488_v21 = vld [vmem:[#allocation13_spill] sm:$0xff] }
 0x284   : > { %3577 = vmatpush.msrb.mxu1 %v8393_v17 }
 0x285   : > { %3282 = vmatpush.msrb.mxu2 %v8118_v28  ;;  %3305 = vmatpush.msrb.mxu3 %v8123_v50  ;;  %v8417_v28 = vsel %vm657_vm10, %v6618_v15, %v6598_v63  ;;  %v8445_v59 = vsel %vm566_vm9, %v6609_v27, %v6643_v13  ;;  %v8458_v63 = vsel %vm566_vm9, %v6614_v25, %v6644_v11  ;;  %v6624_v27 = vunpack.i.h.bf16 %v8313_v46  ;;  %v8591_v15 = vpop.permute.xlu1 %6661 }
 0x286   : > { %3578 = vmatpush.msrb.mxu1 %v8407_v53  ;;  %6310 = vmatmul.msk.f32.vlgmr.msrb.gmra.mxu0 %vm2699_vm13, %v7850_v20  ;;  %v6653_v46 = vunpack.i.l.bf16 %v8539_v16 }
 0x287   : > { %3283 = vmatpush.msrb.mxu2 %v8144_v18  ;;  %3306 = vmatpush.msrb.mxu3 %v8151_v39  ;;  %v8427_v18 = vsel %vm657_vm10, %v6619_v4, %v6603_v24  ;;  %v10489_v24 = vld [vmem:[#allocation21_spill] sm:$0xff]  ;;  %v8537_v60 = vsel %vm566_vm9, %v6634_v58, %v6624_v27 }
 0x288   : > { %3579 = vmatpush.msrb.mxu1 %v10483_v44  ;;  %3738 = vmatpush.msrb.mxu0 %v8417_v28  ;;  %v8579_v61 = vsel %vm657_vm10, %v6639_v45, %v6653_v46  ;;  %v8587_v9 = vsel %vm657_vm10, %v6653_v46, %v10367_v32  ;;  %v10496_v46 = vld [vmem:[#allocation28_spill] sm:$0xff] }
 0x289   : > { %3284 = vmatpush.msrb.mxu2 %v7644_v12  ;;  %3307 = vmatpush.msrb.mxu3 %v10484_v38  ;;  %v8433_v31 = vpop.f32.mrf.mxu0  ;;  %v10486_v12 = vld [vmem:[#allocation17_spill] sm:$0xff] }
 0x28a   : > { %6297 = vmatmul.msk.f32.gmra.mxu1 %vm2699_vm13, %v8158_v2  ;;  %3739 = vmatpush.msrb.mxu0 %v8427_v18 }
 0x28b   : > { %3580 = vmatpush.msrb.mxu1 %v10485_v26  ;;  %3285 = vmatpush.msrb.mxu2 %v7625_v62  ;;  %v10487_v62 = vld [vmem:[#allocation23_spill] sm:$0xff] }
 0x28c   : > { %3308 = vmatpush.msrb.mxu3 %v10486_v12  ;;  %6283 = vmatmul.msk.f32.gmra.mxu2 %vm2699_vm13, %v8065_v7 }
 0x28d   : > { %6285 = vmatmul.msk.f32.gmra.mxu3 %vm2699_vm13, %v8065_v7  ;;  %3581 = vmatpush.msrb.mxu1 %v8445_v59 }
 0x28e   : > { %3740 = vmatpush.msrb.mxu0 %v10487_v62  ;;  %3286 = vmatpush.msrb.mxu2 %v8171_v3  ;;  %v8471_v3 = vsel %vm566_vm9, %v6623_v34, %v6608_v8  ;;  %v10491_v8 = vld [vmem:[#allocation24_spill] sm:$0xff] }
 0x28f   : > { %3309 = vmatpush.msrb.mxu3 %v10488_v21  ;;  %3582 = vmatpush.msrb.mxu1 %v8458_v63 }
 0x290   : > { %3741 = vmatpush.msrb.mxu0 %v10489_v24  ;;  %3287 = vmatpush.msrb.mxu2 %v8198_v42  ;;  %v8482_v42 = vsel %vm566_vm9, %v6624_v27, %v6613_v40  ;;  %v8526_v40 = vsel %vm566_vm9, %v6633_v49, %v6623_v34  ;;  %v6663_v27 = vunpack.i.l.bf16 %v8591_v15 }
 0x291   : > { %3310 = vmatpush.msrb.mxu3 %v8203_v33  ;;  %6311 = vmatmul.msk.f32.gmra.mxu0 %vm2699_vm13, %v7894_v36  ;;  %v8476_v25 = vpop.f32.mrf.mxu0 }
 0x292   : > { %3742 = vmatpush.msrb.mxu0 %v8471_v3  ;;  %6304 = vmatmul.msk.f32.vlgmr.msra.gmra.mxu1 %vm2699_vm13, %v7850_v20 }
 0x293   : > { %3669 = vmatpush.msra.mxu1 %v8123_v50  ;;  %v8500_v50 = vsel %vm657_vm10, %v6629_v52, %v6619_v4  ;;  %v6648_v52 = vunpack.i.l.bf16 %v8528_v6  ;;  %v10493_v4 = vld [vmem:[#allocation26_spill] sm:$0xff] }
 0x294   : > { %3743 = vmatpush.msrb.mxu0 %v8482_v42  ;;  %6290 = vmatmul.msk.f32.vlgmr.msra.gmra.mxu2 %vm2699_vm13, %v8109_v30 }
 0x295   : > { %6292 = vmatmul.msk.f32.vlgmr.msra.gmra.mxu3 %vm2699_vm13, %v8109_v30  ;;  %3508 = vmatpush.msra.mxu2 %v8490_v1  ;;  %v8564_v49 = vsel %vm657_vm10, %v6638_v22, %v6648_v52  ;;  %v8572_v58 = vsel %vm657_vm10, %v6648_v52, %v10368_v51  ;;  %v8581_v22 = vpop.permute.xlu0 %6656  ;;  %v10495_v52 = vld [vmem:[#allocation25_spill] sm:$0xff] }
 0x296   : > { %3531 = vmatpush.msra.mxu3 %v8417_v28  ;;  %3670 = vmatpush.msra.mxu1 %v8151_v39  ;;  %v6659_v45 = vunpack.i.h.bf16 %v8581_v22 }
 0x297   : > { %3509 = vmatpush.msra.mxu2 %v8500_v50 }
 0x298   : > { %3532 = vmatpush.msra.mxu3 %v8427_v18  ;;  %3671 = vmatpush.msra.mxu1 %v10484_v38  ;;  %v6658_v38 = vunpack.i.l.bf16 %v8581_v22 }
 0x299   : > { %3510 = vmatpush.msra.mxu2 %v10490_v23  ;;  %6318 = vmatmul.msk.f32.vlgmr.msra.gmra.mxu0 %vm2699_vm13, %v8027_v37  ;;  %v8513_v39 = vpop.f32.mrf.mxu0 }
 0x29a   : > { %3533 = vmatpush.msra.mxu3 %v10487_v62  ;;  %3672 = vmatpush.msra.mxu1 %v10486_v12  ;;  %v10494_v12 = vld [vmem:[#allocation27_spill] sm:$0xff]  ;;  %v8620_v32 = vsel %vm566_vm9, %v6643_v13, %v6658_v38  ;;  %v8625_v51 = vsel %vm566_vm9, %v6658_v38, %v6659_v45  ;;  %v10497_v13 = vunpack.i.h.bf16 %v8591_v15 }
 0x29b   : > { %3878 = vmatpush.msra.mxu0 %v8305_v29  ;;  %6305 = vmatmul.msk.f32.gmra.mxu1 %vm2699_vm13, %v7894_v36 }
 0x29c   : > { %3511 = vmatpush.msra.mxu2 %v10491_v8  ;;  %3534 = vmatpush.msra.mxu3 %v10489_v24 }
 0x29d   : > { %3673 = vmatpush.msra.mxu1 %v10488_v21  ;;  %3879 = vmatpush.msra.mxu0 %v8323_v57  ;;  %v8634_v21 = vsel %vm566_vm9, %v6644_v11, %v6663_v27 }
 0x29e   : > { %6291 = vmatmul.msk.f32.gmra.mxu2 %vm2699_vm13, %v8158_v2  ;;  %6293 = vmatmul.msk.f32.gmra.mxu3 %vm2699_vm13, %v8158_v2 }
 0x29f   : > { %3512 = vmatpush.msra.mxu2 %v8526_v40  ;;  %3535 = vmatpush.msra.mxu3 %v8471_v3 }
 0x2a0   : > { %3674 = vmatpush.msra.mxu1 %v8203_v33  ;;  %3880 = vmatpush.msra.mxu0 %v7659_v0 }
 0x2a1   : > { %3513 = vmatpush.msra.mxu2 %v8537_v60  ;;  %3536 = vmatpush.msra.mxu3 %v8482_v42 }
 0x2a2   : > { %3881 = vmatpush.msra.mxu0 %v7653_v41 }
 0x2a3   : > { %6319 = vmatmul.msk.f32.gmra.mxu0 %vm2699_vm13, %v8065_v7  ;;  %6312 = vmatmul.msk.f32.vlgmr.msrb.gmra.mxu1 %vm2699_vm13, %v7850_v20  ;;  %v8550_v33 = vpop.f32.mrf.mxu0 }
 0x2a4   : > { %10492 = vst [vmem:[#allocation14_spill] sm:$0xff] %v8550_v33  ;;  %3882 = vmatpush.msra.mxu0 %v8363_v54  ;;  %3761 = vmatpush.msrb.mxu1 %v8224_v55  ;;  %v8639_v33 = vsel %vm566_vm9, %v6663_v27, %v10497_v13 }
 0x2a5   : > { %v8556_v43 = vpop.f32.mrf.mxu1 }
 0x2a6   : > { %3883 = vmatpush.msra.mxu0 %v8379_v5  ;;  %6298 = vmatmul.msk.f32.vlgmr.msrb.gmra.mxu2 %vm2699_vm13, %v8109_v30 }
 0x2a7   : > { %6300 = vmatmul.msk.f32.vlgmr.msrb.gmra.mxu3 %vm2699_vm13, %v8109_v30  ;;  %3600 = vmatpush.msrb.mxu2 %v8564_v49 }
 0x2a8   : > { %3623 = vmatpush.msrb.mxu3 %v8572_v58  ;;  %3762 = vmatpush.msrb.mxu1 %v8240_v10 }
 0x2a9   : > { %3601 = vmatpush.msrb.mxu2 %v8579_v61 }
 0x2aa   : > { %3624 = vmatpush.msrb.mxu3 %v8587_v9  ;;  %3763 = vmatpush.msrb.mxu1 %v7719_v19 }
 0x2ab   : > { %3602 = vmatpush.msrb.mxu2 %v10493_v4  ;;  %6326 = vmatmul.msk.f32.vlgmr.msrb.gmra.mxu0 %vm2699_vm13, %v8027_v37  ;;  %v8596_v35 = vpop.f32.mrf.mxu0 }
 0x2ac   : > { %3625 = vmatpush.msrb.mxu3 %v10494_v12  ;;  %3764 = vmatpush.msrb.mxu1 %v7694_v56 }
 0x2ad   : > { %3970 = vmatpush.msrb.mxu0 %v8393_v17  ;;  %6313 = vmatmul.msk.f32.gmra.mxu1 %vm2699_vm13, %v7894_v36  ;;  %v8605_v34 = vpop.f32.mrf.mxu1 }
 0x2ae   : > { %3603 = vmatpush.msrb.mxu2 %v10495_v52  ;;  %3626 = vmatpush.msrb.mxu3 %v10496_v46 }
 0x2af   : > { %3765 = vmatpush.msrb.mxu1 %v8280_v47  ;;  %3971 = vmatpush.msrb.mxu0 %v8407_v53 }
 0x2b0   : > { %6299 = vmatmul.msk.f32.gmra.mxu2 %vm2699_vm13, %v8158_v2  ;;  %6301 = vmatmul.msk.f32.gmra.mxu3 %vm2699_vm13, %v8158_v2 }
 0x2b1   : > { %3604 = vmatpush.msrb.mxu2 %v8620_v32  ;;  %3627 = vmatpush.msrb.mxu3 %v8625_v51 }
 0x2b2   : > { %3766 = vmatpush.msrb.mxu1 %v8295_v14  ;;  %3972 = vmatpush.msrb.mxu0 %v10483_v44 }
 0x2b3   : > { %3605 = vmatpush.msrb.mxu2 %v8634_v21  ;;  %3628 = vmatpush.msrb.mxu3 %v8639_v33  ;;  %v2916_v38 = vpop.f32.mrf.mxu0 }
 0x2b4   : > { %3973 = vmatpush.msrb.mxu0 %v10485_v26 }
 0x2b5   : > { %6327 = vmatmul.msk.f32.gmra.mxu0 %vm2699_vm13, %v8065_v7  ;;  %6320 = vmatmul.msk.f32.vlgmr.msra.gmra.mxu1 %vm2699_vm13, %v8027_v37  ;;  %v8650_v48 = vpop.f32.mrf.mxu1 }
 0x2b6   : > { %3974 = vmatpush.msrb.mxu0 %v8445_v59  ;;  %3901 = vmatpush.msra.mxu1 %v8490_v1 }
 0x2b8   : > { %3975 = vmatpush.msrb.mxu0 %v8458_v63  ;;  %6306 = vmatmul.msk.f32.vlgmr.msra.gmra.mxu2 %vm2699_vm13, %v7850_v20 }
 0x2b9   : > { %6308 = vmatmul.msk.f32.vlgmr.msra.gmra.mxu3 %vm2699_vm13, %v7850_v20  ;;  %3692 = vmatpush.msra.mxu2 %v8305_v29 }
 0x2ba   : > { %3715 = vmatpush.msra.mxu3 %v8490_v1  ;;  %3902 = vmatpush.msra.mxu1 %v8500_v50 }
 0x2bb   : > { %3693 = vmatpush.msra.mxu2 %v8323_v57  ;;  %v8663_v11 = vpop.f32.mrf.mxu0  ;;  %v8702_v57 = vpop.f32.mrf.mxu2 }
 0x2bc   : > { %3716 = vmatpush.msra.mxu3 %v8500_v50  ;;  %3903 = vmatpush.msra.mxu1 %v10490_v23 }
 0x2bd   : > { %3694 = vmatpush.msra.mxu2 %v7659_v0  ;;  %6334 = vmatmul.msk.f32.vlgmr.msra.gmra.mxu0 %vm2699_vm13, %v8109_v30  ;;  %v8670_v29 = vpop.f32.mrf.mxu1 }
 0x2be   : > { %3717 = vmatpush.msra.mxu3 %v10490_v23  ;;  %3904 = vmatpush.msra.mxu1 %v10491_v8 }
 0x2bf   : > { %6321 = vmatmul.msk.f32.gmra.mxu1 %vm2699_vm13, %v8065_v7  ;;  %3695 = vmatpush.msra.mxu2 %v7653_v41 }
 0x2c0   : > { %3718 = vmatpush.msra.mxu3 %v10491_v8  ;;  %3905 = vmatpush.msra.mxu1 %v8526_v40  ;;  %v10500_v8 = vmov 0.0  }
 0x2c1   : > { %6307 = vmatmul.msk.f32.gmra.mxu2 %vm2699_vm13, %v7894_v36  ;;  %6309 = vmatmul.msk.f32.gmra.mxu3 %vm2699_vm13, %v7894_v36 }
 0x2c2   : > { %3696 = vmatpush.msra.mxu2 %v8363_v54  ;;  %3719 = vmatpush.msra.mxu3 %v8526_v40 }
 0x2c3   : > { %3906 = vmatpush.msra.mxu1 %v8537_v60  ;;  %v8686_v41 = vpop.f32.mrf.mxu0 }
 0x2c4   : > { %3697 = vmatpush.msra.mxu2 %v8379_v5  ;;  %3720 = vmatpush.msra.mxu3 %v8537_v60  ;;  %v8706_v5 = vpop.f32.mrf.mxu3 }
 0x2c5   : > { %6335 = vmatmul.msk.f32.gmra.mxu0 %vm2699_vm13, %v8158_v2  ;;  %v8690_v0 = vpop.f32.mrf.mxu1 }
 0x2c7   : > { %6328 = vmatmul.msk.f32.vlgmr.msrb.gmra.mxu1 %vm2699_vm13, %v8027_v37 }
 0x2c8   : > { %3993 = vmatpush.msrb.mxu1 %v8564_v49 }
 0x2c9   : > { %6314 = vmatmul.msk.f32.vlgmr.msrb.gmra.mxu2 %vm2699_vm13, %v7850_v20  ;;  %6316 = vmatmul.msk.f32.vlgmr.msrb.gmra.mxu3 %vm2699_vm13, %v7850_v20 }
 0x2ca   : > { %3784 = vmatpush.msrb.mxu2 %v8393_v17  ;;  %3807 = vmatpush.msrb.mxu3 %v8564_v49  ;;  %v2917_v17 = vadd.f32 %v2916_v38, %v8476_v25 }
 0x2cb   : > { %3994 = vmatpush.msrb.mxu1 %v8579_v61  ;;  %v3151_v54 = vpop.f32.mrf.mxu0 }
 0x2cc   : > { %3785 = vmatpush.msrb.mxu2 %v8407_v53  ;;  %3808 = vmatpush.msrb.mxu3 %v8579_v61  ;;  %v8737_v25 = vpop.f32.mrf.mxu3 }
 0x2cd   : > { %3995 = vmatpush.msrb.mxu1 %v10493_v4  ;;  %6342 = vmatmul.msk.f32.vlgmr.msrb.gmra.mxu0 %vm2699_vm13, %v8109_v30  ;;  %v8714_v20 = vpop.f32.mrf.mxu1 }
 0x2ce   : > { %3786 = vmatpush.msrb.mxu2 %v10483_v44  ;;  %3809 = vmatpush.msrb.mxu3 %v10493_v4  ;;  %v8729_v44 = vpop.permute.xlu0 %2642  ;;  %v2940_v27 = vadd.f32 %v8714_v20, %v8605_v34 }
 0x2cf   : > { %3996 = vmatpush.msrb.mxu1 %v10495_v52 }
 0x2d0   : > { %6329 = vmatmul.msk.f32.gmra.mxu1 %vm2699_vm13, %v8065_v7  ;;  %3787 = vmatpush.msrb.mxu2 %v10485_v26 }
 0x2d1   : > { %3810 = vmatpush.msrb.mxu3 %v10495_v52  ;;  %3997 = vmatpush.msrb.mxu1 %v8620_v32 }
 0x2d2   : > { %6315 = vmatmul.msk.f32.gmra.mxu2 %vm2699_vm13, %v7894_v36  ;;  %6317 = vmatmul.msk.f32.gmra.mxu3 %vm2699_vm13, %v7894_v36  ;;  %v8735_v36 = vpop.f32.mrf.mxu2 }
 0x2d3   : > { %3788 = vmatpush.msrb.mxu2 %v8445_v59  ;;  %3811 = vmatpush.msrb.mxu3 %v8620_v32  ;;  %v3154_v53 = vpop.f32.mrf.mxu0 }
 0x2d4   : > { %3998 = vmatpush.msrb.mxu1 %v8634_v21  ;;  %v3326_v26 = vadd.f32 %v3154_v53, %v2917_v17 }
 0x2d5   : > { %3789 = vmatpush.msrb.mxu2 %v8458_v63  ;;  %3812 = vmatpush.msrb.mxu3 %v8634_v21  ;;  %v10498_v63 = vld [vmem:[#allocation5_spill] sm:$0xff] }
 0x2d6   : > { %6343 = vmatmul.msk.f32.gmra.mxu0 %vm2699_vm13, %v8158_v2  ;;  %v3342_v59 = vadd.f32 %v3326_v26, %v8729_v44  ;;  %v8742_v1 = vpop.f32.mrf.mxu1 }
 0x2d8   : > { %6336 = vmatmul.msk.f32.vlgmr.msra.gmra.mxu1 %vm2699_vm13, %v8109_v30  ;;  %v3358_v50 = vmax.f32 %v3342_v59, 0.0 }
 0x2da   : > { %6322 = vmatmul.msk.f32.vlgmr.msra.gmra.mxu2 %vm2699_vm13, %v8027_v37  ;;  %6324 = vmatmul.msk.f32.vlgmr.msra.gmra.mxu3 %vm2699_vm13, %v8027_v37  ;;  %v8751_v23 = vmul.f32 %v3358_v50, %v10498_v63 }
 0x2db   : > { %3924 = vmatpush.msra.mxu2 %v8417_v28  ;;  %3947 = vmatpush.msra.mxu3 %v8224_v55  ;;  %v8759_v60 = vpop.f32.mrf.mxu0 }
 0x2dc   : > { %10499 = vst [vmem:[#allocation10_spill] sm:$0xff] %v8751_v23  ;;  %v6676_v40 = vpack.i.bf16 %v8751_v23, %v10500_v8 }
 0x2dd   : > { %3925 = vmatpush.msra.mxu2 %v8427_v18  ;;  %3948 = vmatpush.msra.mxu3 %v8240_v10  ;;  %v2914_v10 = vadd.f32 %v8596_v35, %v8433_v31  ;;  %v8782_v18 = vpop.permute.xlu1 %2637  ;;  %v6667_v31 = vpop.permute.xlu2 %6666  ;;  %v10503_v35 = vld [vmem:[#allocation6_spill] sm:$0xff] }
 0x2de   : > { %6677 = vrot.lane.b32.xlu1 %v6676_v40, %s6870_s11  ;;  %v6668_v61 = vunpack.i.l.bf16 %v6667_v31 }
 0x2df   : > { %3926 = vmatpush.msra.mxu2 %v10487_v62  ;;  %3949 = vmatpush.msra.mxu3 %v7719_v19  ;;  %v8763_v55 = vpop.f32.mrf.mxu2  ;;  %v8765_v28 = vpop.f32.mrf.mxu3 }
 0x2e0   : > { %6337 = vmatmul.msk.f32.gmra.mxu1 %vm2699_vm13, %v8158_v2 }
 0x2e1   : > { %3927 = vmatpush.msra.mxu2 %v10489_v24  ;;  %3950 = vmatpush.msra.mxu3 %v7694_v56  ;;  %v8774_v19 = vpop.f32.mrf.mxu1  ;;  %v3318_v56 = vadd.f32 %v3151_v54, %v2914_v10 }
 0x2e2   : > { %6323 = vmatmul.msk.f32.gmra.mxu2 %vm2699_vm13, %v8065_v7  ;;  %6325 = vmatmul.msk.f32.gmra.mxu3 %vm2699_vm13, %v8065_v7 }
 0x2e3   : > { %3928 = vmatpush.msra.mxu2 %v8471_v3  ;;  %3951 = vmatpush.msra.mxu3 %v8280_v47  ;;  %v2937_v47 = vadd.f32 %v8690_v0, %v8556_v43  ;;  %v10502_v43 = vunpack.i.h.bf16 %v8539_v16 }
 0x2e5   : > { %3929 = vmatpush.msra.mxu2 %v8482_v42  ;;  %3952 = vmatpush.msra.mxu3 %v8295_v14  ;;  %v3334_v14 = vadd.f32 %v3318_v56, %v8782_v18  ;;  %v10501_v42 = vunpack.i.h.bf16 %v8528_v6 }
 0x2e7   : > { %v8786_v62 = vpop.f32.mrf.mxu2  ;;  %v3350_v4 = vmax.f32 %v3334_v14, 0.0  ;;  %v3006_v14 = vadd.f32 %v8663_v11, %v8513_v39 }
 0x2e8   : > { %6344 = vmatmul.msk.f32.vlgmr.msrb.gmra.mxu1 %vm2699_vm13, %v8109_v30  ;;  %v8788_v24 = vpop.f32.mrf.mxu0  ;;  %v8790_v3 = vpop.f32.mrf.mxu3 }
 0x2e9   : > { %v8827_v21 = vmul.f32 %v3350_v4, %v10498_v63 }
 0x2ea   : > { %6330 = vmatmul.msk.f32.vlgmr.msrb.gmra.mxu2 %vm2699_vm13, %v8027_v37  ;;  %6332 = vmatmul.msk.f32.vlgmr.msrb.gmra.mxu3 %vm2699_vm13, %v8027_v37  ;;  %v3174_v32 = vpop.f32.mrf.mxu1 }
 0x2eb   : > { %4016 = vmatpush.msrb.mxu2 %v8572_v58  ;;  %6458 = vmatpush.msk.msrb.mxu3 %vm657_vm10, %v10501_v42  ;;  %v3319_v49 = vadd.f32 %v3174_v32, %v2937_v47  ;;  %v6669_v58 = vunpack.i.h.bf16 %v6667_v31  ;;  %10504 = vst [vmem:[#allocation9_spill] sm:$0xff] %v8827_v21  ;;  %v3322_v31 = vadd.f32 %v8759_v60, %v3006_v14 }
 0x2ed   : > { %4017 = vmatpush.msrb.mxu2 %v8587_v9  ;;  %6459 = vmatpush.msk.msrb.mxu3 %vm657_vm10, %v10502_v43  ;;  %v3335_v37 = vadd.f32 %v3319_v49, %v8782_v18  ;;  %v2370_v9 = vsel %vm566_vm9, %v6659_v45, %v6668_v61 }
 0x2ef   : > { %4018 = vmatpush.msrb.mxu2 %v10494_v12  ;;  %4041 = vmatpush.msrb.mxu3 %v10500_v8  ;;  %v3351_v6 = vmax.f32 %v3335_v37, 0.0 }
 0x2f0   : > { %6345 = vmatmul.msk.f32.gmra.mxu1 %vm2699_vm13, %v8158_v2  ;;  %v8814_v16 = vpop.f32.mrf.mxu0 }
 0x2f1   : > { %4019 = vmatpush.msrb.mxu2 %v10496_v46  ;;  %4042 = vmatpush.msrb.mxu3 %v10500_v8  ;;  %v8824_v12 = vmul.f32 %v3351_v6, %v10503_v35 }
 0x2f2   : > { %6331 = vmatmul.msk.f32.gmra.mxu2 %vm2699_vm13, %v8065_v7  ;;  %6333 = vmatmul.msk.f32.gmra.mxu3 %vm2699_vm13, %v8065_v7  ;;  %v2959_v52 = vpop.f32.mrf.mxu2  ;;  %v10505_v7 = vmov %v10497_v13 }
 0x2f3   : > { %4020 = vmatpush.msrb.mxu2 %v8625_v51  ;;  %4043 = vmatpush.msrb.mxu3 %v2370_v9  ;;  %v2982_v46 = vpop.f32.mrf.mxu3  ;;  %v2353_v22 = vsel %vm566_vm9, %v10505_v7, %v6669_v58  ;;  %v3177_v13 = vpop.f32.mrf.mxu1  ;;  %v6671_v45 = vpack.i.bf16 %v8824_v12, %v8827_v21  ;;  %v10506_v58 = vld [vmem:[#allocation7_spill] sm:$0xff]  ;;  %v2960_v9 = vadd.f32 %v2959_v52, %v8702_v57 }
 0x2f4   : > { %v3327_v38 = vadd.f32 %v3177_v13, %v2940_v27  ;;  %v2983_v32 = vadd.f32 %v2982_v46, %v8706_v5 }
 0x2f5   : > { %4021 = vmatpush.msrb.mxu2 %v8639_v33  ;;  %4044 = vmatpush.msrb.mxu3 %v2353_v22 }
 0x2f6   : > { %6672 = vrot.lane.b32.xlu2 %v6671_v45, %s6871_s12  ;;  %v3343_v34 = vadd.f32 %v3327_v38, %v8729_v44  ;;  %v10508_v38 = vld [vmem:[#allocation14_spill] sm:$0xff] }
 0x2f8   : > { %v3359_v51 = vmax.f32 %v3343_v34, 0.0  ;;  %v3009_v34 = vadd.f32 %v8686_v41, %v10508_v38 }
 0x2fa   : > { %6338 = vmatmul.msk.f32.vlgmr.msra.gmra.mxu2 %vm2699_vm13, %v8109_v30  ;;  %6340 = vmatmul.msk.f32.vlgmr.msra.gmra.mxu3 %vm2699_vm13, %v8109_v30  ;;  %v8845_v15 = vmul.f32 %v3359_v51, %v10503_v35  ;;  %v3330_v57 = vadd.f32 %v8788_v24, %v3009_v34 }
 0x2fb   : > { %v8847_v0 = vpop.f32.mrf.mxu0  ;;  %v2962_v54 = vpop.f32.mrf.mxu2 }
 0x2fc   : > { %v2985_v33 = vpop.f32.mrf.mxu3  ;;  %v6681_v20 = vpack.i.bf16 %v8845_v15, %v8751_v23  ;;  %v2963_v27 = vadd.f32 %v2962_v54, %v8735_v36 }
 0x2fd   : > { %v8851_v17 = vpop.f32.mrf.mxu1  ;;  %v2986_v5 = vadd.f32 %v2985_v33, %v8737_v25 }
 0x2fe   : > { %6682 = vrot.lane.b32.xlu2 %v6681_v20, %s6871_s12 }
 0x302   : > { %6339 = vmatmul.msk.f32.gmra.mxu2 %vm2699_vm13, %v8158_v2  ;;  %6341 = vmatmul.msk.f32.gmra.mxu3 %vm2699_vm13, %v8158_v2 }
 0x303   : > { %v8858_v53 = vpop.f32.mrf.mxu0 }
 0x305   : > { %v8860_v26 = vpop.f32.mrf.mxu2  ;;  %v8862_v59 = vpop.f32.mrf.mxu3 }
 0x307   : > { %v8864_v50 = vpop.f32.mrf.mxu1 }
 0x30a   : > { %6346 = vmatmul.msk.f32.vlgmr.msrb.gmra.mxu2 %vm2699_vm13, %v8109_v30  ;;  %6348 = vmatmul.msk.f32.vlgmr.msrb.gmra.mxu3 %vm2699_vm13, %v8109_v30  ;;  %v3338_v30 = vadd.f32 %v3322_v31, %v8782_v18  ;;  %v3346_v31 = vadd.f32 %v3330_v57, %v8729_v44 }
 0x30c   : > { %v3354_v39 = vmax.f32 %v3338_v30, 0.0  ;;  %v10509_v30 = vld [vmem:[#allocation12_spill] sm:$0xff] }
 0x30e   : > { %v8870_v40 = vpop.f32.mrf.mxu0  ;;  %v8889_v6 = vmul.f32 %v3354_v39, %v10506_v58 }
 0x30f   : > { %v3054_v10 = vpop.f32.mrf.mxu2  ;;  %v8872_v56 = vpop.f32.mrf.mxu1 }
 0x310   : > { %v3077_v47 = vpop.f32.mrf.mxu3 }
 0x312   : > { %6347 = vmatmul.msk.f32.gmra.mxu2 %vm2699_vm13, %v8158_v2  ;;  %6349 = vmatmul.msk.f32.gmra.mxu3 %vm2699_vm13, %v8158_v2  ;;  %v10507_v2 = vld [vmem:[#allocation11_spill] sm:$0xff] }
 0x316   : > { %v8881_v42 = vpop.f32.mrf.mxu0 }
 0x317   : > { %v3197_v49 = vpop.f32.mrf.mxu2 }
 0x318   : > { %v3220_v43 = vpop.f32.mrf.mxu3  ;;  %v8885_v61 = vpop.f32.mrf.mxu1  ;;  %v3320_v51 = vadd.f32 %v3197_v49, %v2960_v9 }
 0x319   : > { %v3321_v37 = vadd.f32 %v3220_v43, %v2983_v32 }
 0x31a   : > { %v3336_v52 = vadd.f32 %v3320_v51, %v8782_v18 }
 0x31b   : > { %v3337_v11 = vadd.f32 %v3321_v37, %v8782_v18 }
 0x31c   : > { %v3352_v24 = vmax.f32 %v3336_v52, 0.0 }
 0x31d   : > { %v3353_v4 = vmax.f32 %v3337_v11, 0.0 }
 0x31f   : > { %v8892_v60 = vmul.f32 %v3353_v4, %v10507_v2 }
 0x320   : > { %v8897_v46 = vpop.f32.mrf.mxu0  ;;  %v8899_v7 = vpop.f32.mrf.mxu1 }
 0x321   : > { %v3200_v22 = vpop.f32.mrf.mxu2  ;;  %v3223_v13 = vpop.f32.mrf.mxu3  ;;  %v6696_v45 = vpack.i.bf16 %v8889_v6, %v8892_v60 }
 0x322   : > { %v3328_v20 = vadd.f32 %v3200_v22, %v2963_v27  ;;  %v3329_v14 = vadd.f32 %v3223_v13, %v2986_v5  ;;  %v3362_v27 = vmax.f32 %v3346_v31, 0.0  ;;  %v8931_v5 = vmul.f32 %v3352_v24, %v10509_v30 }
 0x323   : > { %6697 = vrot.lane.b32.xlu1 %v6696_v45, %s6871_s12  ;;  %v3055_v13 = vadd.f32 %v3054_v10, %v8786_v62  ;;  %v3078_v45 = vadd.f32 %v3077_v47, %v8790_v3  ;;  %v3032_v47 = vadd.f32 %v8774_v19, %v8670_v29 }
 0x324   : > { %v3344_v36 = vadd.f32 %v3328_v20, %v8729_v44  ;;  %v3345_v25 = vadd.f32 %v3329_v14, %v8729_v44  ;;  %v8934_v22 = vmul.f32 %v3362_v27, %v10506_v58  ;;  %v3075_v20 = vadd.f32 %v8862_v59, %v8765_v28 }
 0x325   : > { %v3029_v28 = vadd.f32 %v8742_v1, %v8650_v48  ;;  %v3654_v59 = vadd.f32 %v8881_v42, %v8814_v16 }
 0x326   : > { %v3360_v54 = vmax.f32 %v3344_v36, 0.0  ;;  %v3361_v33 = vmax.f32 %v3345_v25, 0.0  ;;  %v6691_v51 = vpack.i.bf16 %v8931_v5, %v8934_v22  ;;  %v6711_v36 = vpack.i.bf16 %v8827_v21, %v10500_v8 }
 0x327   : > { %v3323_v48 = vadd.f32 %v8851_v17, %v3029_v28 }
 0x328   : > { %v8912_v32 = vmul.f32 %v3360_v54, %v10509_v30  ;;  %v8915_v41 = vmul.f32 %v3361_v33, %v10507_v2  ;;  %v8917_v49 = vpop.f32.mrf.mxu0  ;;  %v3331_v33 = vadd.f32 %v8864_v50, %v3032_v47 }
 0x329   : > { %v3289_v43 = vpop.f32.mrf.mxu2  ;;  %v3339_v17 = vadd.f32 %v3323_v48, %v8782_v18 }
 0x32a   : > { %v3312_v37 = vpop.f32.mrf.mxu3  ;;  %v8919_v39 = vpop.f32.mrf.mxu1  ;;  %v6686_v11 = vpack.i.bf16 %v8912_v32, %v8845_v15  ;;  %v6716_v4 = vpack.i.bf16 %v8824_v12, %v8915_v41  ;;  %v6706_v9 = vpack.i.bf16 %v8915_v41, %v8912_v32  ;;  %v3347_v27 = vadd.f32 %v3331_v33, %v8729_v44 }
 0x32b   : > { %v3325_v62 = vadd.f32 %v3312_v37, %v3075_v20  ;;  %v3657_v20 = vadd.f32 %v8897_v46, %v8847_v0 }
 0x32c   : > { %6687 = vrot.lane.b32.xlu0 %v6686_v11, %s6870_s11  ;;  %6717 = vrot.lane.b32.xlu1 %v6716_v4, %s6870_s11  ;;  %v6701_v11 = vpack.i.bf16 %v8892_v60, %v8931_v5  ;;  %v3052_v4 = vadd.f32 %v8860_v26, %v8763_v55  ;;  %v10511_v55 = vld [vmem:[#allocation16_spill] sm:$0xff] }
 0x32d   : > { %6707 = vrot.lane.b32.xlu2 %v6706_v9, %s6871_s12  ;;  %v3341_v54 = vadd.f32 %v3325_v62, %v8782_v18 }
 0x32e   : > { %v3324_v50 = vadd.f32 %v3289_v43, %v3052_v4 }
 0x32f   : > { %v3357_v42 = vmax.f32 %v3341_v54, 0.0  ;;  %v10514_v54 = vld [vmem:[#allocation8_spill] sm:$0xff] }
 0x331   : > { %v8983_v43 = vmul.f32 %v3357_v42, %v10511_v55 }
 0x332   : > { %v8938_v38 = vpop.f32.mrf.mxu0  ;;  %v8940_v34 = vpop.f32.mrf.mxu1 }
 0x333   : > { %v3292_v14 = vpop.f32.mrf.mxu2  ;;  %v3315_v57 = vpop.f32.mrf.mxu3  ;;  %10512 = vst [vmem:[#allocation20_spill] sm:$0xff] %v8983_v43 }
 0x334   : > { %v3332_v25 = vadd.f32 %v3292_v14, %v3055_v13  ;;  %v3333_v52 = vadd.f32 %v3315_v57, %v3078_v45  ;;  %6692 = vrot.lane.b32.xlu0 %v6691_v51, %s6871_s12  ;;  %v10510_v13 = vld [vmem:[#allocation15_spill] sm:$0xff]  ;;  %v3340_v14 = vadd.f32 %v3324_v50, %v8782_v18 }
 0x335   : > { %6712 = vrot.lane.b32.xlu2 %v6711_v36, %s6870_s11  ;;  %v3363_v36 = vmax.f32 %v3347_v27, 0.0 }
 0x336   : > { %v3348_v3 = vadd.f32 %v3332_v25, %v8729_v44  ;;  %v3349_v10 = vadd.f32 %v3333_v52, %v8729_v44  ;;  %v3356_v46 = vmax.f32 %v3340_v14, 0.0 }
 0x337   : > { %v9002_v33 = vmul.f32 %v3363_v36, %v10514_v54  ;;  %v3677_v36 = vadd.f32 %v8940_v34, %v8872_v56 }
 0x338   : > { %v3364_v31 = vmax.f32 %v3348_v3, 0.0  ;;  %v3365_v24 = vmax.f32 %v3349_v10, 0.0  ;;  %v3355_v10 = vmax.f32 %v3339_v17, 0.0 }
 0x33a   : > { %v3885_v37 = vpop.f32.mrf.mxu0  ;;  %v8973_v45 = vmul.f32 %v3364_v31, %v10510_v13  ;;  %v8976_v26 = vmul.f32 %v3365_v24, %v10511_v55  ;;  %v9005_v24 = vmul.f32 %v3355_v10, %v10514_v54 }
 0x33b   : > { %v4052_v29 = vadd.f32 %v3885_v37, %v3654_v59  ;;  %v8964_v19 = vpop.f32.mrf.mxu2  ;;  %v9008_v37 = vmul.f32 %v3356_v46, %v10510_v13 }
 0x33c   : > { %v8967_v1 = vpop.f32.mrf.mxu3  ;;  %v3679_v16 = vpop.f32.mrf.mxu1  ;;  %6702 = vrot.lane.b32.xlu0 %v6701_v11, %s6870_s11  ;;  %v6731_v52 = vpack.i.bf16 %v8976_v26, %v8973_v45  ;;  %10515 = vst [vmem:[#allocation19_spill] sm:$0xff] %v9005_v24  ;;  %v6736_v4 = vpack.i.bf16 %v9005_v24, %v9002_v33  ;;  %v6746_v48 = vpack.i.bf16 %v9005_v24, %v8976_v26 }
 0x33d   : > { %v4068_v9 = vadd.f32 %v4052_v29, %v8782_v18  ;;  %v6751_v27 = vpack.i.bf16 %v8983_v43, %v9008_v37  ;;  %v3680_v34 = vadd.f32 %v3679_v16, %v8885_v61 }
 0x33f   : > { %v4084_v51 = vmax.f32 %v4068_v9, 0.0 }
 0x341   : > { %v8986_v57 = vmul.f32 %v4084_v51, %v10498_v63  ;;  %v6741_v51 = vpack.i.bf16 %v8973_v45, %v9002_v33 }
 0x342   : > { %v3888_v25 = vpop.f32.mrf.mxu0 }
 0x343   : > { %10513 = vst [vmem:[#allocation18_spill] sm:$0xff] %v8986_v57  ;;  %v4060_v62 = vadd.f32 %v3888_v25, %v3657_v20  ;;  %v6721_v3 = vpack.i.bf16 %v8986_v57, %v8983_v43 }
 0x344   : > { %v8992_v47 = vpop.f32.mrf.mxu2  ;;  %v8994_v0 = vpop.f32.mrf.mxu3  ;;  %6732 = vrot.lane.b32.xlu0 %v6731_v52, %s6871_s12 }
 0x345   : > { %v4076_v28 = vadd.f32 %v4060_v62, %v8729_v44  ;;  %v8998_v59 = vpop.f32.mrf.mxu1  ;;  %6722 = vrot.lane.b32.xlu2 %v6721_v3, %s6871_s12 }
 0x347   : > { %v4092_v31 = vmax.f32 %v4076_v28, 0.0  ;;  %v6756_v28 = vpack.i.bf16 %v8889_v6, %v8934_v22 }
 0x349   : > { %v9011_v11 = vmul.f32 %v4092_v31, %v10498_v63 }
 0x34b   : > { %10516 = vst [vmem:[#allocation17_spill] sm:$0xff] %v9011_v11  ;;  %v6726_v29 = vpack.i.bf16 %v9008_v37, %v9011_v11 }
 0x34c   : > { %v9019_v50 = vpop.f32.mrf.mxu2  ;;  %v9021_v42 = vpop.f32.mrf.mxu3  ;;  %6737 = vrot.lane.b32.xlu0 %v6736_v4, %s6871_s12 }
 0x34d   : > { %v9024_v9 = vpop.f32.mrf.mxu1  ;;  %6727 = vrot.lane.b32.xlu1 %v6726_v29, %s6871_s12  ;;  %6747 = vrot.lane.b32.xlu2 %v6746_v48, %s6870_s11 }
 0x350   : > { %v9028_v63 = vpop.permute.xlu2 %6672  ;;  %v9052_v31 = vpop.permute.xlu1 %6677 }
 0x351   : > { %v10371_v62 = vunpack.i.h.bf16 %v9028_v63  ;;  %v10370_v3 = vunpack.i.l.bf16 %v9028_v63  ;;  %v10373_v61 = vunpack.i.h.bf16 %v9052_v31  ;;  %v10372_v16 = vunpack.i.l.bf16 %v9052_v31 }
 0x354   : > { %6752 = vrot.lane.b32.xlu0 %v6751_v27, %s6870_s11 }
 0x355   : > { %v9035_v17 = vpop.f32.mrf.mxu2  ;;  %v9037_v20 = vpop.f32.mrf.mxu3  ;;  %6742 = vrot.lane.b32.xlu1 %v6741_v51, %s6870_s11  ;;  %6762 = vrot.lane.b32.xlu2 %v10500_v8, %s6871_s12  ;;  %v9070_v51 = vsel %vm657_vm10, %v10370_v3, %v10371_v62 }
 0x356   : > { %v3908_v14 = vpop.f32.mrf.mxu1  ;;  %10518 = vst [vmem:[#allocation13_spill] sm:$0xff] %v9070_v51  ;;  %v3977_v62 = vpop.f32.mrf.mxu0 }
 0x357   : > { %v4053_v25 = vadd.f32 %v3908_v14, %v3677_v36 }
 0x358   : > { %v9044_v52 = vpop.permute.xlu2 %6682 }
 0x359   : > { %v10374_v10 = vunpack.i.h.bf16 %v9044_v52  ;;  %v10369_v46 = vunpack.i.l.bf16 %v9044_v52  ;;  %v4069_v4 = vadd.f32 %v4053_v25, %v8782_v18 }
 0x35b   : > { %v9059_v56 = vsel %vm657_vm10, %v10369_v46, %v10374_v10  ;;  %v4085_v36 = vmax.f32 %v4069_v4, 0.0  ;;  %v6771_v46 = vpack.i.bf16 %v8986_v57, %v9011_v11 }
 0x35c   : > { %10517 = vst [vmem:[#allocation23_spill] sm:$0xff] %v9059_v56  ;;  %4652 = vmatpush.msra.mxu0 %v9059_v56 }
 0x35d   : > { %v3699_v29 = vpop.f32.mrf.mxu2  ;;  %v3722_v48 = vpop.f32.mrf.mxu3  ;;  %6757 = vrot.lane.b32.xlu1 %v6756_v28, %s6870_s11 }
 0x35e   : > { %v3911_v27 = vpop.f32.mrf.mxu1  ;;  %4653 = vmatpush.msra.mxu0 %v9070_v51  ;;  %v3980_v10 = vpop.f32.mrf.mxu0 }
 0x35f   : > { %v4061_v14 = vadd.f32 %v3911_v27, %v3680_v34  ;;  %v9085_v34 = vsel %vm566_vm9, %v10372_v16, %v10373_v61  ;;  %v9088_v27 = vmul.f32 %v4085_v36, %v10503_v35  ;;  %v3746_v36 = vadd.f32 %v8917_v49, %v8858_v53 }
 0x360   : > { %4654 = vmatpush.msra.mxu0 %v8751_v23  ;;  %10519 = vst [vmem:[#allocation21_spill] sm:$0xff] %v9085_v34  ;;  %v3723_v23 = vadd.f32 %v3722_v48, %v8967_v1 }
 0x361   : > { %v4077_v25 = vadd.f32 %v4061_v14, %v8729_v44  ;;  %10520 = vst [vmem:[#allocation22_spill] sm:$0xff] %v9088_v27  ;;  %v4056_v57 = vadd.f32 %v3977_v62, %v3746_v36 }
 0x362   : > { %4655 = vmatpush.msra.mxu0 %v8827_v21  ;;  %v3700_v21 = vadd.f32 %v3699_v29, %v8964_v19 }
 0x363   : > { %v4093_v28 = vmax.f32 %v4077_v25, 0.0 }
 0x364   : > { %4656 = vmatpush.msra.mxu0 %v9085_v34  ;;  %v4072_v34 = vadd.f32 %v4056_v57, %v8782_v18 }
 0x365   : > { %v9091_v4 = vmul.f32 %v4093_v28, %v10503_v35  ;;  %v3702_v14 = vpop.f32.mrf.mxu2  ;;  %v3725_v25 = vpop.f32.mrf.mxu3  ;;  %6772 = vrot.lane.b32.xlu1 %v6771_v46, %s6870_s11  ;;  %v3749_v35 = vadd.f32 %v8938_v38, %v8870_v40 }
 0x366   : > { %v4088_v43 = vmax.f32 %v4072_v34, 0.0  ;;  %v4000_v62 = vpop.f32.mrf.mxu1  ;;  %v3703_v1 = vadd.f32 %v3702_v14, %v8992_v47 }
 0x367   : > { %10521 = vst [vmem:[#allocation24_spill] sm:$0xff] %v9091_v4  ;;  %v6766_v3 = vpack.i.bf16 %v9088_v27, %v9091_v4  ;;  %v4064_v11 = vadd.f32 %v3980_v10, %v3749_v35 }
 0x368   : > { %v9113_v57 = vmul.f32 %v4088_v43, %v10506_v58 }
 0x369   : > { %6767 = vrot.lane.b32.xlu0 %v6766_v3, %s6871_s12  ;;  %v4080_v3 = vadd.f32 %v4064_v11, %v8729_v44 }
 0x36a   : > { %10522 = vst [vmem:[#allocation26_spill] sm:$0xff] %v9113_v57 }
 0x36b   : > { %v4096_v40 = vmax.f32 %v4080_v3, 0.0  ;;  %v10526_v3 = vunpack.i.h.bf16 %v9044_v52 }
 0x36d   : > { %v3791_v16 = vpop.f32.mrf.mxu2  ;;  %v3814_v61 = vpop.f32.mrf.mxu3  ;;  %v9116_v19 = vmul.f32 %v4096_v40, %v10506_v58 }
 0x36e   : > { %v3792_v40 = vadd.f32 %v3791_v16, %v9019_v50 }
 0x36f   : > { %10523 = vst [vmem:[#allocation27_spill] sm:$0xff] %v9116_v19 }
 0x375   : > { %v9102_v28 = vpop.f32.mrf.mxu2  ;;  %v9104_v46 = vpop.f32.mrf.mxu3 }
 0x37d   : > { %v3931_v51 = vpop.f32.mrf.mxu2  ;;  %v3954_v56 = vpop.f32.mrf.mxu3 }
 0x37e   : > { %v4054_v53 = vadd.f32 %v3931_v51, %v3700_v21  ;;  %v4055_v49 = vadd.f32 %v3954_v56, %v3723_v23  ;;  %v3726_v21 = vadd.f32 %v3725_v25, %v8994_v0 }
 0x380   : > { %v4070_v38 = vadd.f32 %v4054_v53, %v8782_v18  ;;  %v4071_v24 = vadd.f32 %v4055_v49, %v8782_v18 }
 0x382   : > { %v4086_v10 = vmax.f32 %v4070_v38, 0.0  ;;  %v4087_v36 = vmax.f32 %v4071_v24, 0.0  ;;  %v3815_v38 = vadd.f32 %v3814_v61, %v9021_v42 }
 0x384   : > { %v9121_v23 = vmul.f32 %v4086_v10, %v10509_v30  ;;  %v9124_v11 = vmul.f32 %v4087_v36, %v10507_v2  ;;  %v4003_v10 = vpop.f32.mrf.mxu1 }
 0x385   : > { %v3934_v56 = vpop.f32.mrf.mxu2  ;;  %v3957_v29 = vpop.f32.mrf.mxu3 }
 0x386   : > { %10524 = vst [vmem:[#allocation25_spill] sm:$0xff] %v9121_v23  ;;  %v4062_v48 = vadd.f32 %v3934_v56, %v3703_v1  ;;  %v4063_v24 = vadd.f32 %v3957_v29, %v3726_v21  ;;  %v6781_v43 = vpack.i.bf16 %v9113_v57, %v9124_v11  ;;  %v6776_v58 = vpack.i.bf16 %v9121_v23, %v9116_v19 }
 0x387   : > { %10525 = vst [vmem:[#allocation28_spill] sm:$0xff] %v9124_v11  ;;  %v9130_v51 = vpop.permute.xlu2 %6707  ;;  %v3769_v21 = vadd.f32 %v8998_v59, %v8899_v7  ;;  %v3772_v56 = vadd.f32 %v9024_v9, %v8919_v39  ;;  %v6796_v50 = vpack.i.bf16 %v9124_v11, %v9121_v23 }
 0x388   : > { %v4078_v47 = vadd.f32 %v4062_v48, %v8729_v44  ;;  %v4079_v0 = vadd.f32 %v4063_v24, %v8729_v44  ;;  %6782 = vrot.lane.b32.xlu1 %v6781_v43, %s6871_s12  ;;  %6777 = vrot.lane.b32.xlu0 %v6776_v58, %s6871_s12  ;;  %v6710_v34 = vunpack.i.h.bf16 %v9130_v51  ;;  %v6709_v14 = vunpack.i.l.bf16 %v9130_v51 }
 0x389   : > { %v4057_v61 = vadd.f32 %v4000_v62, %v3769_v21  ;;  %v4065_v24 = vadd.f32 %v4003_v10, %v3772_v56 }
 0x38a   : > { %v4094_v25 = vmax.f32 %v4078_v47, 0.0  ;;  %v4095_v35 = vmax.f32 %v4079_v0, 0.0  ;;  %v9141_v53 = vsel %vm657_vm10, %v10526_v3, %v6709_v14  ;;  %v9146_v49 = vsel %vm657_vm10, %v6709_v14, %v6710_v34 }
 0x38b   : > { %4674 = vmatpush.msra.mxu1 %v9141_v53  ;;  %4696 = vmatpush.msra.mxu2 %v9146_v49  ;;  %v4073_v0 = vadd.f32 %v4057_v61, %v8782_v18  ;;  %v4081_v14 = vadd.f32 %v4065_v24, %v8729_v44 }
 0x38c   : > { %v9153_v36 = vmul.f32 %v4094_v25, %v10509_v30  ;;  %v9156_v1 = vmul.f32 %v4095_v35, %v10507_v2  ;;  %v3795_v25 = vadd.f32 %v9102_v28, %v9035_v17  ;;  %v3818_v35 = vadd.f32 %v9104_v46, %v9037_v20 }
 0x38d   : > { %v4023_v29 = vpop.f32.mrf.mxu2  ;;  %v4046_v48 = vpop.f32.mrf.mxu3  ;;  %v4089_v28 = vmax.f32 %v4073_v0, 0.0  ;;  %v4097_v20 = vmax.f32 %v4081_v14, 0.0  ;;  %v6841_v14 = vpack.i.bf16 %v9113_v57, %v9116_v19  ;;  %v10537_v19 = vld [vmem:[#allocation19_spill] sm:$0xff] }
 0x38e   : > { %v4058_v16 = vadd.f32 %v4023_v29, %v3792_v40  ;;  %v4059_v42 = vadd.f32 %v4046_v48, %v3815_v38  ;;  %v6786_v30 = vpack.i.bf16 %v9156_v1, %v9153_v36  ;;  %v6801_v2 = vpack.i.bf16 %v9088_v27, %v9156_v1 }
 0x38f   : > { %v9168_v43 = vpop.permute.xlu2 %6712 }
 0x390   : > { %v4074_v7 = vadd.f32 %v4058_v16, %v8782_v18  ;;  %v4075_v39 = vadd.f32 %v4059_v42, %v8782_v18  ;;  %6787 = vrot.lane.b32.xlu2 %v6786_v30, %s6871_s12  ;;  %6797 = vrot.lane.b32.xlu1 %v6796_v50, %s6870_s11  ;;  %v6715_v59 = vunpack.i.h.bf16 %v9168_v43  ;;  %v10388_v9 = vunpack.i.l.bf16 %v9168_v43  ;;  %v9210_v42 = vld [vmem:[%s10289_s6 + $0x10] sm:$0xff] }
 0x391   : > { %6802 = vrot.lane.b32.xlu0 %v6801_v2, %s6870_s11  ;;  %v6791_v18 = vpack.i.bf16 %v9153_v36, %v9091_v4  ;;  %v9215_v30 = vmul.f32 %v4089_v28, %v10514_v54 }
 0x392   : > { %v4090_v58 = vmax.f32 %v4074_v7, 0.0  ;;  %v4091_v47 = vmax.f32 %v4075_v39, 0.0  ;;  %v9182_v62 = vsel %vm566_vm9, %v10388_v9, %v6715_v59 }
 0x393   : > { %4657 = vmatpush.msra.mxu0 %v9182_v62  ;;  %10529 = vst [vmem:[#allocation7_spill] sm:$0xff] %v9215_v30 }
 0x394   : > { %v9192_v3 = vmul.f32 %v4090_v58, %v10510_v13  ;;  %v9195_v40 = vmul.f32 %v4091_v47, %v10511_v55  ;;  %6354 = vmatmul.msk.f32.vlgmr.msra.gmra.mxu0 %vm2699_vm13, %v9210_v42 }
 0x395   : > { %v4026_v38 = vpop.f32.mrf.mxu2  ;;  %v4049_v10 = vpop.f32.mrf.mxu3 }
 0x396   : > { %10527 = vst [vmem:[#allocation5_spill] sm:$0xff] %v9192_v3  ;;  %v4066_v21 = vadd.f32 %v4026_v38, %v3795_v25  ;;  %v4067_v56 = vadd.f32 %v4049_v10, %v3818_v35  ;;  %v6811_v29 = vpack.i.bf16 0.0, %v9195_v40  ;;  %v6806_v17 = vpack.i.bf16 %v9192_v3, %v10500_v8  ;;  %v9232_v47 = vpop.permute.xlu1 %6697 }
 0x397   : > { %10528 = vst [vmem:[#allocation6_spill] sm:$0xff] %v9195_v40  ;;  %v6699_v0 = vunpack.i.l.bf16 %v9232_v47  ;;  %v10391_v38 = vunpack.i.h.bf16 %v9232_v47  ;;  %v10533_v10 = vunpack.i.h.bf16 %v9028_v63 }
 0x398   : > { %v4082_v46 = vadd.f32 %v4066_v21, %v8729_v44  ;;  %v4083_v48 = vadd.f32 %v4067_v56, %v8729_v44  ;;  %6792 = vrot.lane.b32.xlu2 %v6791_v18, %s6870_s11  ;;  %6812 = vrot.lane.b32.xlu1 %v6811_v29, %s6871_s12  ;;  %v9218_v44 = vmul.f32 %v4097_v20, %v10514_v54 }
 0x399   : > { %6807 = vrot.lane.b32.xlu0 %v6806_v17, %s6871_s12  ;;  %v9283_v51 = vsel %vm657_vm10, %v6699_v0, %v10391_v38  ;;  %v6836_v20 = vpack.i.bf16 %v9195_v40, %v9192_v3  ;;  %v10538_v40 = vld [vmem:[#allocation20_spill] sm:$0xff] }
 0x39a   : > { %v4098_v50 = vmax.f32 %v4082_v46, 0.0  ;;  %v4099_v16 = vmax.f32 %v4083_v48, 0.0  ;;  %10530 = vst [vmem:[#allocation11_spill] sm:$0xff] %v9218_v44  ;;  %v4576_v46 = vld [vmem:[%s10290_s7] sm:$0xff] }
 0x39c   : > { %v9221_v2 = vmul.f32 %v4098_v50, %v10510_v13  ;;  %v9224_v61 = vmul.f32 %v4099_v16, %v10511_v55  ;;  %v9240_v13 = vld [vmem:[%s10289_s6 + $0x18] sm:$0xff]  ;;  %v6821_v55 = vpack.i.bf16 %v9215_v30, %v9218_v44 }
 0x39d   : > { %6355 = vmatmul.msk.f32.gmra.mxu0 %vm2699_vm13, %v9240_v13 }
 0x39e   : > { %10531 = vst [vmem:[#allocation14_spill] sm:$0xff] %v9221_v2  ;;  %v6816_v24 = vpack.i.bf16 %v9224_v61, %v9221_v2  ;;  %v6831_v7 = vpack.i.bf16 %v9215_v30, %v9224_v61  ;;  %v6826_v39 = vpack.i.bf16 %v9221_v2, %v9218_v44  ;;  %v6688_v58 = vpop.permute.xlu0 %6687  ;;  %v9273_v29 = vpop.permute.xlu1 %6717 }
 0x39f   : > { %10532 = vst [vmem:[#allocation12_spill] sm:$0xff] %v9224_v61  ;;  %v6689_v17 = vunpack.i.l.bf16 %v6688_v58  ;;  %v6690_v28 = vunpack.i.h.bf16 %v6688_v58  ;;  %v10390_v50 = vunpack.i.l.bf16 %v9273_v29  ;;  %v10540_v27 = vunpack.i.l.bf16 %v9273_v29 }
 0x3a0   : > { %6817 = vrot.lane.b32.xlu2 %v6816_v24, %s6871_s12  ;;  %6832 = vrot.lane.b32.xlu1 %v6831_v7, %s6870_s11  ;;  %v10534_v24 = vunpack.i.h.bf16 %v9052_v31 }
 0x3a1   : > { %6827 = vrot.lane.b32.xlu0 %v6826_v39, %s6870_s11  ;;  %v9307_v39 = vsel %vm566_vm9, %v6689_v17, %v6690_v28 }
 0x3a2   : > { %v9302_v7 = vsel %vm566_vm9, %v10534_v24, %v6689_v17 }
 0x3a6   : > { %v9244_v54 = vpop.permute.xlu0 %6692 }
 0x3a7   : > { %v6695_v25 = vunpack.i.h.bf16 %v9244_v54  ;;  %v6694_v35 = vunpack.i.l.bf16 %v9244_v54  ;;  %v10535_v54 = vunpack.i.h.bf16 %v9232_v47 }
 0x3a8   : > { %6822 = vrot.lane.b32.xlu2 %v6821_v55, %s6871_s12  ;;  %6847 = vrot.lane.b32.xlu1 %v10500_v8, %s6870_s11 }
 0x3a9   : > { %6842 = vrot.lane.b32.xlu0 %v6841_v14, %s6870_s11  ;;  %v9261_v18 = vsel %vm657_vm10, %v10533_v10, %v6695_v25  ;;  %v9264_v21 = vsel %vm657_vm10, %v6695_v25, %v6699_v0  ;;  %v9271_v56 = vsel %vm657_vm10, %v6710_v34, %v6694_v35  ;;  %v6720_v34 = vunpack.i.h.bf16 %v9273_v29 }
 0x3aa   : > { %4675 = vmatpush.msra.mxu1 %v9261_v18  ;;  %4697 = vmatpush.msra.mxu2 %v9264_v21  ;;  %v9325_v14 = vsel %vm566_vm9, %v6690_v28, %v10390_v50 }
 0x3ab   : > { %4718 = vmatpush.msra.mxu3 %v9271_v56  ;;  %v9314_v55 = vsel %vm566_vm9, %v6715_v59, %v6720_v34 }
 0x3ac   : > { %4676 = vmatpush.msra.mxu1 %v8845_v15  ;;  %4698 = vmatpush.msra.mxu2 %v8912_v32 }
 0x3ad   : > { %4719 = vmatpush.msra.mxu3 %v9283_v51 }
 0x3ae   : > { %v9292_v48 = vpop.permute.xlu0 %6702  ;;  %4677 = vmatpush.msra.mxu1 %v8824_v12  ;;  %4699 = vmatpush.msra.mxu2 %v8931_v5 }
 0x3af   : > { %v6704_v16 = vunpack.i.l.bf16 %v9292_v48  ;;  %4720 = vmatpush.msra.mxu3 %v8915_v41  ;;  %v10389_v58 = vunpack.i.h.bf16 %v9292_v48  ;;  %v10541_v29 = vunpack.i.h.bf16 %v9292_v48  ;;  %v10542_v48 = vunpack.i.l.bf16 %v9044_v52  ;;  %v10546_v52 = vld [vmem:[#allocation10_spill] sm:$0xff] }
 0x3b0   : > { %6837 = vrot.lane.b32.xlu2 %v6836_v20, %s6870_s11  ;;  %4678 = vmatpush.msra.mxu1 %v9302_v7 }
 0x3b1   : > { %4579 = vperm.xlu0 %6489, %v4576_v46   ;;  %4700 = vmatpush.msra.mxu2 %v9307_v39  ;;  %v9317_v0 = vsel %vm566_vm9, %v6720_v34, %v6704_v16  ;;  %v9335_v59 = vsel %vm566_vm9, %v6704_v16, %v10389_v58  ;;  %v9344_v34 = vpop.permute.xlu2 %6722 }
 0x3b2   : > { %4721 = vmatpush.msra.mxu3 %v8892_v60  ;;  %4679 = vmatpush.msra.mxu1 %v9314_v55  ;;  %v6724_v9 = vunpack.i.l.bf16 %v9344_v34 }
 0x3b3   : > { %4701 = vmatpush.msra.mxu2 %v9317_v0  ;;  %6356 = vmatmul.msk.f32.vlgmr.msra.gmra.mxu1 %vm2699_vm13, %v9210_v42 }
 0x3b4   : > { %4722 = vmatpush.msra.mxu3 %v9325_v14  ;;  %6358 = vmatmul.msk.f32.vlgmr.msra.gmra.mxu2 %vm2699_vm13, %v9210_v42 }
 0x3b6   : > { %4723 = vmatpush.msra.mxu3 %v9335_v59  ;;  %v6733_v25 = vpop.permute.xlu0 %6732 }
 0x3b7   : > { %v6735_v10 = vunpack.i.h.bf16 %v6733_v25  ;;  %v6734_v17 = vunpack.i.l.bf16 %v6733_v25  ;;  %6360 = vmatmul.msk.f32.vlgmr.msra.gmra.mxu3 %vm2699_vm13, %v9210_v42 }
 0x3b9   : > { %v9341_v28 = vsel %vm657_vm10, %v6734_v17, %v6735_v10 }
 0x3ba   : > { %4784 = vmatpush.msrb.mxu2 %v9341_v28 }
 0x3bb   : > { %6357 = vmatmul.msk.f32.gmra.mxu1 %vm2699_vm13, %v9240_v13 }
 0x3bc   : > { %6359 = vmatmul.msk.f32.gmra.mxu2 %vm2699_vm13, %v9240_v13 }
 0x3be   : > { %v6738_v20 = vpop.permute.xlu0 %6737 }
 0x3bf   : > { %v9350_v46 = vpop.permute.xlu1 %6727  ;;  %v6740_v16 = vunpack.i.h.bf16 %v6738_v20  ;;  %v6739_v24 = vunpack.i.l.bf16 %v6738_v20  ;;  %6361 = vmatmul.msk.f32.gmra.mxu3 %vm2699_vm13, %v9240_v13 }
 0x3c0   : > { %v6730_v58 = vunpack.i.h.bf16 %v9350_v46  ;;  %v10394_v50 = vunpack.i.l.bf16 %v9350_v46 }
 0x3c1   : > { %v9361_v38 = vsel %vm657_vm10, %v6694_v35, %v6739_v24  ;;  %v9364_v30 = vsel %vm657_vm10, %v6739_v24, %v6734_v17  ;;  %v9381_v35 = vsel %vm657_vm10, %v10535_v54, %v6740_v16  ;;  %v10536_v24 = vunpack.i.h.bf16 %v9344_v34 }
 0x3c2   : > { %v9367_v20 = vsel %vm657_vm10, %v6730_v58, %v6724_v9  ;;  %v9372_v25 = vsel %vm657_vm10, %v6735_v10, %v10394_v50  ;;  %4740 = vmatpush.msrb.mxu0 %v9361_v38  ;;  %4762 = vmatpush.msrb.mxu1 %v9364_v30  ;;  %v9384_v17 = vsel %vm657_vm10, %v6740_v16, %v6730_v58  ;;  %v9393_v50 = vpop.permute.xlu2 %6747 }
 0x3c3   : > { %4785 = vmatpush.msrb.mxu2 %v9367_v20  ;;  %4806 = vmatpush.msrb.mxu3 %v9372_v25  ;;  %v9389_v10 = vsel %vm657_vm10, %v6724_v9, %v10536_v24  ;;  %v6750_v54 = vunpack.i.h.bf16 %v9393_v50  ;;  %v10409_v24 = vunpack.i.l.bf16 %v9393_v50 }
 0x3c4   : > { %4741 = vmatpush.msrb.mxu0 %v9381_v35  ;;  %4763 = vmatpush.msrb.mxu1 %v9384_v17 }
 0x3c5   : > { %4786 = vmatpush.msrb.mxu2 %v8973_v45  ;;  %4807 = vmatpush.msrb.mxu3 %v9389_v10 }
 0x3c6   : > { %v9397_v47 = vpop.permute.xlu0 %6752  ;;  %4742 = vmatpush.msrb.mxu0 %v8934_v22  ;;  %4764 = vmatpush.msrb.mxu1 %v9002_v33 }
 0x3c7   : > { %v6743_v58 = vpop.permute.xlu1 %6742  ;;  %4787 = vmatpush.msrb.mxu2 %v9008_v37  ;;  %4808 = vmatpush.msrb.mxu3 %v8976_v26  ;;  %v6754_v16 = vunpack.i.l.bf16 %v9397_v47  ;;  %v10539_v2 = vunpack.i.h.bf16 %v9397_v47 }
 0x3c8   : > { %v6745_v57 = vunpack.i.h.bf16 %v6743_v58  ;;  %v6744_v44 = vunpack.i.l.bf16 %v6743_v58  ;;  %4743 = vmatpush.msrb.mxu0 %v8889_v6  ;;  %4765 = vmatpush.msrb.mxu1 %v10537_v19 }
 0x3c9   : > { %4809 = vmatpush.msrb.mxu3 %v10538_v40  ;;  %v9419_v61 = vsel %vm566_vm9, %v6750_v54, %v6754_v16  ;;  %v9424_v58 = vsel %vm566_vm9, %v6754_v16, %v10539_v2 }
 0x3ca   : > { %v9411_v3 = vsel %vm566_vm9, %v6744_v44, %v6745_v57  ;;  %v9416_v9 = vsel %vm566_vm9, %v6745_v57, %v10409_v24  ;;  %v6763_v16 = vpop.permute.xlu2 %6762 }
 0x3cb   : > { %4788 = vmatpush.msrb.mxu2 %v9411_v3  ;;  %4810 = vmatpush.msrb.mxu3 %v9416_v9  ;;  %v6764_v23 = vunpack.i.l.bf16 %v6763_v16 }
 0x3cd   : > { %4789 = vmatpush.msrb.mxu2 %v9419_v61  ;;  %4811 = vmatpush.msrb.mxu3 %v9424_v58 }
 0x3ce   : > { %6366 = vmatmul.msk.f32.vlgmr.msrb.gmra.mxu2 %vm2699_vm13, %v9210_v42  ;;  %6368 = vmatmul.msk.f32.vlgmr.msrb.gmra.mxu3 %vm2699_vm13, %v9210_v42 }
 0x3cf   : > { %4878 = vmatpush.msra.mxu2 %v9141_v53  ;;  %4900 = vmatpush.msra.mxu3 %v9146_v49  ;;  %v6758_v57 = vpop.permute.xlu1 %6757 }
 0x3d0   : > { %v6759_v2 = vunpack.i.l.bf16 %v6758_v57  ;;  %v6760_v24 = vunpack.i.h.bf16 %v6758_v57  ;;  %v6765_v57 = vunpack.i.h.bf16 %v6763_v16 }
 0x3d1   : > { %4879 = vmatpush.msra.mxu2 %v9261_v18  ;;  %4901 = vmatpush.msra.mxu3 %v9264_v21 }
 0x3d2   : > { %v9441_v4 = vsel %vm566_vm9, %v10540_v27, %v6759_v2  ;;  %v9444_v11 = vsel %vm566_vm9, %v6759_v2, %v6744_v44  ;;  %v9455_v27 = vsel %vm566_vm9, %v10541_v29, %v6760_v24  ;;  %v9458_v44 = vsel %vm566_vm9, %v6760_v24, %v6750_v54  ;;  %v10543_v24 = vld [vmem:[#allocation23_spill] sm:$0xff]  ;;  %v10545_v29 = vld [vmem:[#allocation13_spill] sm:$0xff] }
 0x3d3   : > { %4880 = vmatpush.msra.mxu2 %v8845_v15  ;;  %4902 = vmatpush.msra.mxu3 %v8912_v32  ;;  %v4477_v54 = vsel %vm657_vm10, %v6764_v23, %v10542_v48  ;;  %v10544_v2 = vunpack.i.l.bf16 %v9028_v63  ;;  %v10547_v63 = vld [vmem:[#allocation9_spill] sm:$0xff]  ;;  %v9495_v23 = vld [vmem:[%s10289_s6] sm:$0xff] }
 0x3d4   : > { %4744 = vmatpush.msrb.mxu0 %v9441_v4  ;;  %4766 = vmatpush.msrb.mxu1 %v9444_v11 }
 0x3d5   : > { %4881 = vmatpush.msra.mxu2 %v8824_v12  ;;  %4903 = vmatpush.msra.mxu3 %v8931_v5  ;;  %v4460_v16 = vsel %vm657_vm10, %v6765_v57, %v10544_v2  ;;  %v10548_v57 = vunpack.i.l.bf16 %v9052_v31  ;;  %v9530_v31 = vld [vmem:[%s10289_s6 + $0x8] sm:$0xff]  ;;  %v10559_v2 = vld [vmem:[#allocation25_spill] sm:$0xff] }
 0x3d6   : > { %4745 = vmatpush.msrb.mxu0 %v9455_v27  ;;  %4767 = vmatpush.msrb.mxu1 %v9458_v44 }
 0x3d7   : > { %6362 = vmatmul.msk.f32.vlgmr.msrb.gmra.mxu0 %vm2699_vm13, %v9210_v42  ;;  %6364 = vmatmul.msk.f32.vlgmr.msrb.gmra.mxu1 %vm2699_vm13, %v9210_v42 }
 0x3d8   : > { %6367 = vmatmul.msk.f32.gmra.mxu2 %vm2699_vm13, %v9240_v13  ;;  %6369 = vmatmul.msk.f32.gmra.mxu3 %vm2699_vm13, %v9240_v13 }
 0x3d9   : > { %4834 = vmatpush.msra.mxu0 %v4477_v54  ;;  %4856 = vmatpush.msra.mxu1 %v10543_v24  ;;  %v10550_v54 = vld [vmem:[#allocation21_spill] sm:$0xff]  ;;  %v10551_v24 = vunpack.i.l.bf16 %v9168_v43 }
 0x3da   : > { %4882 = vmatpush.msra.mxu2 %v9302_v7  ;;  %4904 = vmatpush.msra.mxu3 %v9307_v39 }
 0x3db   : > { %4835 = vmatpush.msra.mxu0 %v4460_v16  ;;  %4857 = vmatpush.msra.mxu1 %v10545_v29  ;;  %v9550_v43 = vpop.permute.xlu0 %6767  ;;  %v10560_v16 = vld [vmem:[#allocation28_spill] sm:$0xff] }
 0x3dc   : > { %4883 = vmatpush.msra.mxu2 %v9314_v55  ;;  %4905 = vmatpush.msra.mxu3 %v9317_v0 }
 0x3dd   : > { %4836 = vmatpush.msra.mxu0 %v10500_v8  ;;  %4858 = vmatpush.msra.mxu1 %v10546_v52 }
 0x3de   : > { %4966 = vmatpush.msrb.mxu2 %v9364_v30  ;;  %4988 = vmatpush.msrb.mxu3 %v9341_v28 }
 0x3df   : > { %4837 = vmatpush.msra.mxu0 %v10500_v8  ;;  %4859 = vmatpush.msra.mxu1 %v10547_v63 }
 0x3e0   : > { %4967 = vmatpush.msrb.mxu2 %v9384_v17  ;;  %4989 = vmatpush.msrb.mxu3 %v9367_v20 }
 0x3e1   : > { %6363 = vmatmul.msk.f32.gmra.mxu0 %vm2699_vm13, %v9240_v13  ;;  %6365 = vmatmul.msk.f32.gmra.mxu1 %vm2699_vm13, %v9240_v13 }
 0x3e2   : > { %4968 = vmatpush.msrb.mxu2 %v9002_v33  ;;  %4990 = vmatpush.msrb.mxu3 %v8973_v45 }
 0x3e3   : > { %6461 = vmatpush.msk.msra.mxu0 %vm7944_vm14, %v10548_v57  ;;  %4860 = vmatpush.msra.mxu1 %v10550_v54 }
 0x3e4   : > { %6374 = vmatmul.msk.f32.vlgmr.msra.gmra.mxu2 %vm2699_vm13, %v9495_v23  ;;  %6376 = vmatmul.msk.f32.vlgmr.msra.gmra.mxu3 %vm2699_vm13, %v9495_v23 }
 0x3e5   : > { %4969 = vmatpush.msrb.mxu2 %v10537_v19  ;;  %4991 = vmatpush.msrb.mxu3 %v9008_v37 }
 0x3e6   : > { %6463 = vmatpush.msk.msra.mxu0 %vm7944_vm14, %v10551_v24  ;;  %4861 = vmatpush.msra.mxu1 %v9182_v62 }
 0x3e7   : > { %4970 = vmatpush.msrb.mxu2 %v9444_v11  ;;  %4992 = vmatpush.msrb.mxu3 %v9411_v3 }
 0x3e8   : > { %4922 = vmatpush.msrb.mxu0 %v9271_v56  ;;  %4944 = vmatpush.msrb.mxu1 %v9361_v38 }
 0x3e9   : > { %4971 = vmatpush.msrb.mxu2 %v9458_v44  ;;  %4993 = vmatpush.msrb.mxu3 %v9419_v61 }
 0x3ea   : > { %4923 = vmatpush.msrb.mxu0 %v9283_v51  ;;  %4945 = vmatpush.msrb.mxu1 %v9381_v35 }
 0x3eb   : > { %5108 = vmatpush.msra.mxu2 %v9271_v56  ;;  %5130 = vmatpush.msra.mxu3 %v9361_v38 }
 0x3ec   : > { %4924 = vmatpush.msrb.mxu0 %v8915_v41  ;;  %4946 = vmatpush.msrb.mxu1 %v8934_v22 }
 0x3ed   : > { %6370 = vmatmul.msk.f32.vlgmr.msra.gmra.mxu0 %vm2699_vm13, %v9495_v23  ;;  %6372 = vmatmul.msk.f32.vlgmr.msra.gmra.mxu1 %vm2699_vm13, %v9495_v23 }
 0x3ee   : > { %6375 = vmatmul.msk.f32.gmra.mxu2 %vm2699_vm13, %v9530_v31  ;;  %6377 = vmatmul.msk.f32.gmra.mxu3 %vm2699_vm13, %v9530_v31 }
 0x3ef   : > { %5109 = vmatpush.msra.mxu2 %v9283_v51  ;;  %5131 = vmatpush.msra.mxu3 %v9381_v35 }
 0x3f0   : > { %4925 = vmatpush.msrb.mxu0 %v8892_v60  ;;  %4947 = vmatpush.msrb.mxu1 %v8889_v6 }
 0x3f1   : > { %5110 = vmatpush.msra.mxu2 %v8915_v41  ;;  %5132 = vmatpush.msra.mxu3 %v8934_v22  ;;  %v6769_v41 = vunpack.i.l.bf16 %v9550_v43  ;;  %v9561_v22 = vpop.permute.xlu1 %6772 }
 0x3f2   : > { %4926 = vmatpush.msrb.mxu0 %v9325_v14  ;;  %4948 = vmatpush.msrb.mxu1 %v9441_v4 }
 0x3f3   : > { %5111 = vmatpush.msra.mxu2 %v8892_v60  ;;  %5133 = vmatpush.msra.mxu3 %v8889_v6  ;;  %v6770_v6 = vunpack.i.h.bf16 %v9550_v43  ;;  %v9568_v60 = vpop.permute.xlu2 %6787 }
 0x3f4   : > { %4927 = vmatpush.msrb.mxu0 %v9335_v59  ;;  %4949 = vmatpush.msrb.mxu1 %v9455_v27 }
 0x3f5   : > { %5112 = vmatpush.msra.mxu2 %v9325_v14  ;;  %5134 = vmatpush.msra.mxu3 %v9441_v4  ;;  %v10552_v4 = vunpack.i.l.bf16 %v9350_v46  ;;  %v9656_v14 = vld [vmem:[%s10289_s6 + $0x20] sm:$0xff] }
 0x3f6   : > { %5064 = vmatpush.msra.mxu0 %v9141_v53  ;;  %5086 = vmatpush.msra.mxu1 %v9146_v49  ;;  %v10553_v49 = vunpack.i.h.bf16 %v9344_v34  ;;  %10558 = vst [vmem:[#allocation15_spill] sm:$0xff] %v9656_v14 }
 0x3f7   : > { %6371 = vmatmul.msk.f32.gmra.mxu0 %vm2699_vm13, %v9530_v31  ;;  %6373 = vmatmul.msk.f32.gmra.mxu1 %vm2699_vm13, %v9530_v31  ;;  %v9583_v53 = vsel %vm657_vm10, %v10552_v4, %v6769_v41  ;;  %v10561_v4 = vld [vmem:[#allocation24_spill] sm:$0xff] }
 0x3f8   : > { %6382 = vmatmul.msk.f32.vlgmr.msrb.gmra.mxu2 %vm2699_vm13, %v9495_v23  ;;  %6384 = vmatmul.msk.f32.vlgmr.msrb.gmra.mxu3 %vm2699_vm13, %v9495_v23  ;;  %v9594_v62 = vsel %vm657_vm10, %v10553_v49, %v6770_v6 }
 0x3f9   : > { %5065 = vmatpush.msra.mxu0 %v9261_v18  ;;  %5087 = vmatpush.msra.mxu1 %v9264_v21  ;;  %v6774_v18 = vunpack.i.l.bf16 %v9561_v22  ;;  %v10555_v21 = vld [vmem:[#allocation18_spill] sm:$0xff] }
 0x3fa   : > { %5113 = vmatpush.msra.mxu2 %v9335_v59  ;;  %5135 = vmatpush.msra.mxu3 %v9455_v27  ;;  %v9596_v38 = vpop.permute.xlu0 %6777 }
 0x3fb   : > { %5066 = vmatpush.msra.mxu0 %v8845_v15  ;;  %5088 = vmatpush.msra.mxu1 %v8912_v32  ;;  %v10554_v15 = vld [vmem:[#allocation17_spill] sm:$0xff]  ;;  %v9604_v32 = vpop.permute.xlu1 %6782  ;;  %v9611_v56 = vpop.permute.xlu2 %6792  ;;  %v6780_v46 = vunpack.i.h.bf16 %v9596_v38 }
 0x3fc   : > { %5196 = vmatpush.msrb.mxu2 %v9372_v25  ;;  %5218 = vmatpush.msrb.mxu3 %v9583_v53  ;;  %v6784_v34 = vunpack.i.l.bf16 %v9604_v32 }
 0x3fd   : > { %5067 = vmatpush.msra.mxu0 %v8824_v12  ;;  %5089 = vmatpush.msra.mxu1 %v8931_v5  ;;  %v6775_v12 = vunpack.i.h.bf16 %v9561_v22  ;;  %v10556_v5 = vunpack.i.l.bf16 %v9393_v50  ;;  %v9748_v54 = vsel %vm657_vm10, %v6770_v6, %v6780_v46 }
 0x3fe   : > { %5197 = vmatpush.msrb.mxu2 %v9389_v10  ;;  %5219 = vmatpush.msrb.mxu3 %v9594_v62 }
 0x3ff   : > { %5068 = vmatpush.msra.mxu0 %v9302_v7  ;;  %5090 = vmatpush.msra.mxu1 %v9307_v39  ;;  %v9631_v51 = vsel %vm566_vm9, %v10556_v5, %v6774_v18  ;;  %v10423_v7 = vunpack.i.l.bf16 %v9596_v38 }
 0x400   : > { %5198 = vmatpush.msrb.mxu2 %v8976_v26  ;;  %5220 = vmatpush.msrb.mxu3 %v10554_v15 }
 0x401   : > { %6378 = vmatmul.msk.f32.vlgmr.msrb.gmra.mxu0 %vm2699_vm13, %v9495_v23  ;;  %6380 = vmatmul.msk.f32.vlgmr.msrb.gmra.mxu1 %vm2699_vm13, %v9495_v23 }
 0x402   : > { %5199 = vmatpush.msrb.mxu2 %v10538_v40  ;;  %5221 = vmatpush.msrb.mxu3 %v10555_v21 }
 0x403   : > { %6383 = vmatmul.msk.f32.gmra.mxu2 %vm2699_vm13, %v9530_v31  ;;  %6385 = vmatmul.msk.f32.gmra.mxu3 %vm2699_vm13, %v9530_v31  ;;  %v9636_v39 = vpop.permute.xlu0 %6802  ;;  %v9658_v59 = vpop.permute.xlu1 %6797 }
 0x404   : > { %5069 = vmatpush.msra.mxu0 %v9314_v55  ;;  %5091 = vmatpush.msra.mxu1 %v9317_v0  ;;  %v6790_v55 = vunpack.i.h.bf16 %v9568_v60  ;;  %v6789_v0 = vunpack.i.l.bf16 %v9568_v60  ;;  %v10421_v35 = vunpack.i.l.bf16 %v9636_v39  ;;  %v6799_v27 = vunpack.i.l.bf16 %v9658_v59 }
 0x405   : > { %5200 = vmatpush.msrb.mxu2 %v9416_v9  ;;  %5222 = vmatpush.msrb.mxu3 %v9631_v51 }
 0x406   : > { %5152 = vmatpush.msrb.mxu0 %v9364_v30  ;;  %5174 = vmatpush.msrb.mxu1 %v9341_v28  ;;  %v10557_v30 = vunpack.i.h.bf16 %v9397_v47  ;;  %v10422_v28 = vunpack.i.h.bf16 %v9604_v32  ;;  %v9709_v47 = vld [vmem:[%s10289_s6 + $0x28] sm:$0xff]  ;;  %v9734_v63 = vsel %vm657_vm10, %v6769_v41, %v6789_v0 }
 0x407   : > { %5201 = vmatpush.msrb.mxu2 %v9424_v58 }
 0x408   : > { %5153 = vmatpush.msrb.mxu0 %v9384_v17  ;;  %5175 = vmatpush.msrb.mxu1 %v9367_v20  ;;  %v9645_v50 = vsel %vm566_vm9, %v10557_v30, %v6775_v12  ;;  %v9681_v20 = vsel %vm657_vm10, %v6789_v0, %v6790_v55  ;;  %v6794_v17 = vunpack.i.l.bf16 %v9611_v56 }
 0x409   : > { %5223 = vmatpush.msrb.mxu3 %v9645_v50  ;;  %6379 = vmatmul.msk.f32.gmra.mxu0 %vm2699_vm13, %v9530_v31 }
 0x40a   : > { %5154 = vmatpush.msrb.mxu0 %v9002_v33  ;;  %5176 = vmatpush.msrb.mxu1 %v8973_v45  ;;  %v9670_v45 = vsel %vm657_vm10, %v6790_v55, %v10423_v7  ;;  %v9674_v33 = vpop.permute.xlu2 %6817  ;;  %v10562_v55 = vld [vmem:[#allocation22_spill] sm:$0xff] }
 0x40b   : > { %6381 = vmatmul.msk.f32.gmra.mxu1 %vm2699_vm13, %v9530_v31  ;;  %6390 = vmatmul.msk.f32.vlgmr.msra.gmra.mxu2 %vm2699_vm13, %v9656_v14  ;;  %v9725_v52 = vpop.permute.xlu1 %6812  ;;  %v6820_v43 = vunpack.i.h.bf16 %v9674_v33  ;;  %v6819_v6 = vunpack.i.l.bf16 %v9674_v33  ;;  %v10567_v7 = vld [vmem:[#allocation6_spill] sm:$0xff] }
 0x40c   : > { %5155 = vmatpush.msrb.mxu0 %v10537_v19  ;;  %5177 = vmatpush.msrb.mxu1 %v9008_v37  ;;  %v9688_v37 = vsel %vm657_vm10, %v6780_v46, %v6784_v34  ;;  %v9693_v19 = vsel %vm657_vm10, %v6784_v34, %v10422_v28  ;;  %v6814_v5 = vunpack.i.l.bf16 %v9725_v52  ;;  %v9790_v34 = vsel %vm566_vm9, %v6774_v18, %v6794_v17  ;;  %v10566_v28 = vld [vmem:[#allocation5_spill] sm:$0xff] }
 0x40d   : > { %6392 = vmatmul.msk.f32.vlgmr.msra.gmra.mxu3 %vm2699_vm13, %v9656_v14  ;;  %5395 = vmatpush.msra.mxu2 %v9681_v20  ;;  %v9795_v46 = vsel %vm657_vm10, %v6819_v6, %v6820_v43 }
 0x40e   : > { %5417 = vmatpush.msra.mxu3 %v9670_v45  ;;  %5156 = vmatpush.msrb.mxu0 %v9444_v11  ;;  %v9700_v11 = vpop.permute.xlu0 %6807 }
 0x40f   : > { %5178 = vmatpush.msrb.mxu1 %v9411_v3  ;;  %5396 = vmatpush.msra.mxu2 %v9688_v37  ;;  %v6795_v3 = vunpack.i.h.bf16 %v9611_v56  ;;  %v10418_v60 = vunpack.i.l.bf16 %v9700_v11  ;;  %v10420_v56 = vunpack.i.h.bf16 %v9725_v52  ;;  %v6810_v30 = vunpack.i.h.bf16 %v9700_v11 }
 0x410   : > { %5418 = vmatpush.msra.mxu3 %v9693_v19  ;;  %5157 = vmatpush.msrb.mxu0 %v9458_v44  ;;  %v6805_v44 = vunpack.i.h.bf16 %v9636_v39 }
 0x411   : > { %5179 = vmatpush.msrb.mxu1 %v9419_v61  ;;  %5397 = vmatpush.msra.mxu2 %v9153_v36  ;;  %v10419_v61 = vunpack.i.h.bf16 %v9658_v59  ;;  %v9723_v29 = vsel %vm566_vm9, %v6795_v3, %v10421_v35  ;;  %v9739_v57 = vsel %vm566_vm9, %v6794_v17, %v6795_v3  ;;  %v9781_v0 = vsel %vm657_vm10, %v6820_v43, %v10418_v60  ;;  %v10564_v60 = vld [vmem:[#allocation14_spill] sm:$0xff] }
 0x412   : > { %5419 = vmatpush.msra.mxu3 %v9156_v1  ;;  %6386 = vmatmul.msk.f32.vlgmr.msra.gmra.mxu0 %vm2699_vm13, %v9656_v14  ;;  %v9741_v48 = vpop.permute.xlu2 %6822  ;;  %v9753_v24 = vsel %vm566_vm9, %v6805_v44, %v6799_v27  ;;  %v9804_v3 = vsel %vm566_vm9, %v6775_v12, %v6805_v44  ;;  %v9809_v18 = vsel %vm657_vm10, %v6810_v30, %v6814_v5 }
 0x413   : > { %6388 = vmatmul.msk.f32.vlgmr.msra.gmra.mxu1 %vm2699_vm13, %v9656_v14  ;;  %5398 = vmatpush.msra.mxu2 %v10559_v2  ;;  %v9758_v41 = vsel %vm566_vm9, %v6799_v27, %v10419_v61  ;;  %v9797_v33 = vpop.permute.xlu1 %6832  ;;  %v9814_v17 = vsel %vm657_vm10, %v6814_v5, %v10420_v56  ;;  %v6824_v43 = vunpack.i.l.bf16 %v9741_v48  ;;  %v10565_v61 = vld [vmem:[#allocation12_spill] sm:$0xff]  ;;  %v6825_v5 = vunpack.i.h.bf16 %v9741_v48 }
 0x414   : > { %5420 = vmatpush.msra.mxu3 %v10560_v16  ;;  %6391 = vmatmul.msk.f32.gmra.mxu2 %vm2699_vm13, %v9709_v47  ;;  %v10568_v48 = vunpack.i.l.bf16 %v9797_v33 }
 0x415   : > { %6393 = vmatmul.msk.f32.gmra.mxu3 %vm2699_vm13, %v9709_v47  ;;  %5351 = vmatpush.msra.mxu0 %v9583_v53 }
 0x416   : > { %5373 = vmatpush.msra.mxu1 %v9734_v63  ;;  %5399 = vmatpush.msra.mxu2 %v9739_v57  ;;  %v9771_v49 = vpop.permute.xlu0 %6827 }
 0x417   : > { %5421 = vmatpush.msra.mxu3 %v9723_v29  ;;  %5352 = vmatpush.msra.mxu0 %v9594_v62  ;;  %v6830_v12 = vunpack.i.h.bf16 %v9771_v49  ;;  %v6829_v44 = vunpack.i.l.bf16 %v9771_v49  ;;  %v6835_v49 = vunpack.i.h.bf16 %v9797_v33 }
 0x418   : > { %5374 = vmatpush.msra.mxu1 %v9748_v54  ;;  %5400 = vmatpush.msra.mxu2 %v9753_v24 }
 0x419   : > { %5422 = vmatpush.msra.mxu3 %v9758_v41  ;;  %5353 = vmatpush.msra.mxu0 %v10554_v15  ;;  %v9837_v22 = vsel %vm566_vm9, %v6829_v44, %v6830_v12  ;;  %v9842_v56 = vsel %vm566_vm9, %v6830_v12, %v10568_v48  ;;  %v10571_v12 = vunpack.i.h.bf16 %v9604_v32  ;;  %v10574_v32 = vld [vmem:[#allocation27_spill] sm:$0xff] }
 0x41a   : > { %5375 = vmatpush.msra.mxu1 %v10561_v4  ;;  %6387 = vmatmul.msk.f32.gmra.mxu0 %vm2699_vm13, %v9709_v47  ;;  %v9816_v27 = vpop.permute.xlu2 %6837  ;;  %10569 = vst [vmem:[#allocation8_spill] sm:$0xff] %v9842_v56 }
 0x41b   : > { %6389 = vmatmul.msk.f32.gmra.mxu1 %vm2699_vm13, %v9709_v47  ;;  %5354 = vmatpush.msra.mxu0 %v10555_v21  ;;  %10563 = vst [vmem:[#allocation16_spill] sm:$0xff] %v9816_v27  ;;  %v6839_v35 = vunpack.i.l.bf16 %v9816_v27  ;;  %v9863_v48 = vsel %vm657_vm10, %v10571_v12, %v6825_v5  ;;  %v10576_v12 = vunpack.i.l.bf16 %v9636_v39 }
 0x41c   : > { %5376 = vmatpush.msra.mxu1 %v10562_v55  ;;  %6398 = vmatmul.msk.f32.vlgmr.msrb.gmra.mxu2 %vm2699_vm13, %v9656_v14 }
 0x41d   : > { %6400 = vmatmul.msk.f32.vlgmr.msrb.gmra.mxu3 %vm2699_vm13, %v9656_v14  ;;  %5355 = vmatpush.msra.mxu0 %v9631_v51 }
 0x41e   : > { %5377 = vmatpush.msra.mxu1 %v9790_v34  ;;  %5483 = vmatpush.msrb.mxu2 %v9795_v46  ;;  %v6843_v8 = vpop.permute.xlu0 %6842 }
 0x41f   : > { %5505 = vmatpush.msrb.mxu3 %v9781_v0  ;;  %5356 = vmatpush.msra.mxu0 %v9645_v50 }
 0x420   : > { %5378 = vmatpush.msra.mxu1 %v9804_v3  ;;  %5484 = vmatpush.msrb.mxu2 %v9809_v18 }
 0x421   : > { %5506 = vmatpush.msrb.mxu3 %v9814_v17 }
 0x422   : > { %5485 = vmatpush.msrb.mxu2 %v10564_v60  ;;  %6394 = vmatmul.msk.f32.vlgmr.msrb.gmra.mxu0 %vm2699_vm13, %v9656_v14 }
 0x423   : > { %5507 = vmatpush.msrb.mxu3 %v10565_v61  ;;  %6396 = vmatmul.msk.f32.vlgmr.msrb.gmra.mxu1 %vm2699_vm13, %v9656_v14  ;;  %v10570_v14 = vunpack.i.l.bf16 %v9596_v38  ;;  %v9866_v38 = vsel %vm657_vm10, %v6825_v5, %v6810_v30  ;;  %v10575_v30 = vld [vmem:[#allocation11_spill] sm:$0xff]  ;;  %v6845_v5 = vunpack.i.h.bf16 %v6843_v8 }
 0x424   : > { %5486 = vmatpush.msrb.mxu2 %v10566_v28 }
 0x425   : > { %5508 = vmatpush.msrb.mxu3 %v10567_v7  ;;  %6399 = vmatmul.msk.f32.gmra.mxu2 %vm2699_vm13, %v9709_v47  ;;  %v9851_v61 = vsel %vm657_vm10, %v10570_v14, %v6824_v43  ;;  %v9854_v7 = vsel %vm657_vm10, %v6824_v43, %v6819_v6  ;;  %v6844_v14 = vunpack.i.l.bf16 %v6843_v8  ;;  %v9871_v6 = vsel %vm566_vm9, %v6835_v49, %v6839_v35 }
 0x426   : > { %6401 = vmatmul.msk.f32.gmra.mxu3 %vm2699_vm13, %v9709_v47  ;;  %5439 = vmatpush.msrb.mxu0 %v9851_v61  ;;  %v10572_v43 = vunpack.i.h.bf16 %v9816_v27  ;;  %v10578_v27 = vld [vmem:[#allocation7_spill] sm:$0xff]  ;;  %v10579_v8 = vunpack.i.h.bf16 %v9658_v59  ;;  %v9924_v59 = vpop.f32.mrf.mxu0 }
 0x427   : > { %5461 = vmatpush.msrb.mxu1 %v9854_v7  ;;  %5487 = vmatpush.msrb.mxu2 %v9837_v22 }
 0x428   : > { %5509 = vmatpush.msrb.mxu3 %v9842_v56  ;;  %5440 = vmatpush.msrb.mxu0 %v9863_v48  ;;  %v9876_v56 = vsel %vm566_vm9, %v6839_v35, %v10572_v43  ;;  %v9889_v35 = vsel %vm566_vm9, %v10576_v12, %v6844_v14  ;;  %v9892_v43 = vsel %vm566_vm9, %v6844_v14, %v6829_v44 }
 0x429   : > { %5462 = vmatpush.msrb.mxu1 %v9866_v38  ;;  %10573 = vst [vmem:[#allocation19_spill] sm:$0xff] %v9876_v56  ;;  %5488 = vmatpush.msrb.mxu2 %v9871_v6  ;;  %v9907_v39 = vsel %vm566_vm9, %v10579_v8, %v6845_v5  ;;  %v9910_v44 = vsel %vm566_vm9, %v6845_v5, %v6835_v49 }
 0x42a   : > { %5510 = vmatpush.msrb.mxu3 %v9876_v56  ;;  %5441 = vmatpush.msrb.mxu0 %v10574_v32  ;;  %v10577_v56 = vld [vmem:[#allocation26_spill] sm:$0xff] }
 0x42b   : > { %5463 = vmatpush.msrb.mxu1 %v10575_v30  ;;  %6395 = vmatmul.msk.f32.gmra.mxu0 %vm2699_vm13, %v9709_v47 }
 0x42c   : > { %6397 = vmatmul.msk.f32.gmra.mxu1 %vm2699_vm13, %v9709_v47  ;;  %5442 = vmatpush.msrb.mxu0 %v10577_v56 }
 0x42d   : > { %5464 = vmatpush.msrb.mxu1 %v10578_v27  ;;  %6406 = vmatmul.msk.f32.vlgmr.msra.gmra.mxu2 %vm2699_vm13, %v9210_v42 }
 0x42e   : > { %6408 = vmatmul.msk.f32.vlgmr.msra.gmra.mxu3 %vm2699_vm13, %v9210_v42  ;;  %5443 = vmatpush.msrb.mxu0 %v9889_v35 }
 0x42f   : > { %5465 = vmatpush.msrb.mxu1 %v9892_v43  ;;  %5571 = vmatpush.msra.mxu2 %v9734_v63 }
 0x430   : > { %5593 = vmatpush.msra.mxu3 %v9681_v20  ;;  %5444 = vmatpush.msrb.mxu0 %v9907_v39  ;;  %v9926_v49 = vpop.f32.mrf.mxu1 }
 0x431   : > { %5466 = vmatpush.msrb.mxu1 %v9910_v44  ;;  %5572 = vmatpush.msra.mxu2 %v9748_v54 }
 0x432   : > { %5594 = vmatpush.msra.mxu3 %v9688_v37 }
 0x433   : > { %5573 = vmatpush.msra.mxu2 %v10561_v4  ;;  %6402 = vmatmul.msk.f32.vlgmr.msra.gmra.mxu0 %vm2699_vm13, %v9210_v42 }
 0x434   : > { %5595 = vmatpush.msra.mxu3 %v9153_v36  ;;  %6404 = vmatmul.msk.f32.vlgmr.msra.gmra.mxu1 %vm2699_vm13, %v9210_v42 }
 0x435   : > { %5574 = vmatpush.msra.mxu2 %v10562_v55  ;;  %5527 = vmatpush.msra.mxu0 %v9372_v25  ;;  %v4662_v25 = vpop.f32.mrf.mxu0 }
 0x436   : > { %5596 = vmatpush.msra.mxu3 %v10559_v2  ;;  %6407 = vmatmul.msk.f32.gmra.mxu2 %vm2699_vm13, %v9240_v13 }
 0x437   : > { %6409 = vmatmul.msk.f32.gmra.mxu3 %vm2699_vm13, %v9240_v13  ;;  %5549 = vmatpush.msra.mxu1 %v9583_v53  ;;  %v9934_v14 = vpop.f32.mrf.mxu2 }
 0x438   : > { %5575 = vmatpush.msra.mxu2 %v9790_v34  ;;  %5597 = vmatpush.msra.mxu3 %v9739_v57 }
 0x439   : > { %5528 = vmatpush.msra.mxu0 %v9389_v10  ;;  %5550 = vmatpush.msra.mxu1 %v9594_v62  ;;  %v4684_v10 = vpop.f32.mrf.mxu1 }
 0x43a   : > { %5576 = vmatpush.msra.mxu2 %v9804_v3  ;;  %5598 = vmatpush.msra.mxu3 %v9753_v24  ;;  %v9942_v5 = vpop.f32.mrf.mxu3  ;;  %v6858_v10 = vld [vmem:[%s6936_s10 + $0x8] sm:$0xff] }
 0x43b   : > { %5529 = vmatpush.msra.mxu0 %v8976_v26  ;;  %5551 = vmatpush.msra.mxu1 %v10554_v15 }
 0x43c   : > { %6403 = vmatmul.msk.f32.gmra.mxu0 %vm2699_vm13, %v9240_v13  ;;  %6405 = vmatmul.msk.f32.gmra.mxu1 %vm2699_vm13, %v9240_v13 }
 0x43d   : > { %5530 = vmatpush.msra.mxu0 %v10538_v40  ;;  %5552 = vmatpush.msra.mxu1 %v10555_v21  ;;  %v6848_v21 = vpop.permute.xlu1 %6847 }
 0x43e   : > { %6414 = vmatmul.msk.f32.vlgmr.msrb.gmra.mxu2 %vm2699_vm13, %v9210_v42 }
 0x43f   : > { %6416 = vmatmul.msk.f32.vlgmr.msrb.gmra.mxu3 %vm2699_vm13, %v9210_v42  ;;  %5531 = vmatpush.msra.mxu0 %v9416_v9  ;;  %v4706_v26 = vpop.f32.mrf.mxu2 }
 0x440   : > { %5553 = vmatpush.msra.mxu1 %v9631_v51  ;;  %5659 = vmatpush.msrb.mxu2 %v9854_v7  ;;  %v10581_v51 = vunpack.i.h.bf16 %v9725_v52  ;;  %v10586_v52 = vld [vmem:[#allocation8_spill] sm:$0xff]  ;;  %v312_v26 = vmul.f32 %v6858_v10, %v6858_v10 }
 0x441   : > { %5681 = vmatpush.msrb.mxu3 %v9795_v46  ;;  %5532 = vmatpush.msra.mxu0 %v9424_v58 }
 0x442   : > { %5554 = vmatpush.msra.mxu1 %v9645_v50  ;;  %5660 = vmatpush.msrb.mxu2 %v9866_v38  ;;  %v4728_v40 = vpop.f32.mrf.mxu3  ;;  %v6849_v50 = vunpack.i.l.bf16 %v6848_v21 }
 0x443   : > { %5682 = vmatpush.msrb.mxu3 %v9809_v18 }
 0x444   : > { %5661 = vmatpush.msrb.mxu2 %v10575_v30  ;;  %6410 = vmatmul.msk.f32.vlgmr.msrb.gmra.mxu0 %vm2699_vm13, %v9210_v42 }
 0x445   : > { %5683 = vmatpush.msrb.mxu3 %v10564_v60  ;;  %6412 = vmatmul.msk.f32.vlgmr.msrb.gmra.mxu1 %vm2699_vm13, %v9210_v42 }
 0x446   : > { %5662 = vmatpush.msrb.mxu2 %v10578_v27  ;;  %5615 = vmatpush.msrb.mxu0 %v9670_v45 }
 0x447   : > { %5684 = vmatpush.msrb.mxu3 %v10566_v28  ;;  %6415 = vmatmul.msk.f32.gmra.mxu2 %vm2699_vm13, %v9240_v13 }
 0x448   : > { %6417 = vmatmul.msk.f32.gmra.mxu3 %vm2699_vm13, %v9240_v13  ;;  %5637 = vmatpush.msrb.mxu1 %v9851_v61 }
 0x449   : > { %5663 = vmatpush.msrb.mxu2 %v9892_v43  ;;  %5685 = vmatpush.msrb.mxu3 %v9837_v22 }
 0x44a   : > { %5616 = vmatpush.msrb.mxu0 %v9693_v19  ;;  %5638 = vmatpush.msrb.mxu1 %v9863_v48 }
 0x44b   : > { %5664 = vmatpush.msrb.mxu2 %v9910_v44  ;;  %5686 = vmatpush.msrb.mxu3 %v9871_v6 }
 0x44c   : > { %5617 = vmatpush.msrb.mxu0 %v9156_v1  ;;  %5639 = vmatpush.msrb.mxu1 %v10574_v32 }
 0x44d   : > { %6411 = vmatmul.msk.f32.gmra.mxu0 %vm2699_vm13, %v9240_v13  ;;  %6413 = vmatmul.msk.f32.gmra.mxu1 %vm2699_vm13, %v9240_v13 }
 0x44e   : > { %5618 = vmatpush.msrb.mxu0 %v10560_v16  ;;  %5640 = vmatpush.msrb.mxu1 %v10577_v56 }
 0x44f   : > { %6422 = vmatmul.msk.f32.vlgmr.msra.gmra.mxu2 %vm2699_vm13, %v9495_v23 }
 0x450   : > { %6424 = vmatmul.msk.f32.vlgmr.msra.gmra.mxu3 %vm2699_vm13, %v9495_v23  ;;  %5619 = vmatpush.msrb.mxu0 %v9723_v29 }
 0x451   : > { %5641 = vmatpush.msrb.mxu1 %v9889_v35  ;;  %5795 = vmatpush.msra.mxu2 %v9670_v45  ;;  %v10000_v42 = vpop.f32.mrf.mxu2  ;;  %v10002_v13 = vpop.f32.mrf.mxu3  ;;  %v10582_v45 = vld [vmem:[#allocation12_spill] sm:$0xff] }
 0x452   : > { %5817 = vmatpush.msra.mxu3 %v9851_v61  ;;  %5620 = vmatpush.msrb.mxu0 %v9758_v41  ;;  %v10584_v61 = vld [vmem:[#allocation6_spill] sm:$0xff] }
 0x453   : > { %5642 = vmatpush.msrb.mxu1 %v9907_v39  ;;  %5796 = vmatpush.msra.mxu2 %v9693_v19 }
 0x454   : > { %5818 = vmatpush.msra.mxu3 %v9863_v48  ;;  %v10010_v9 = vpop.f32.mrf.mxu0  ;;  %v10012_v58 = vpop.f32.mrf.mxu1 }
 0x455   : > { %5797 = vmatpush.msra.mxu2 %v9156_v1  ;;  %6418 = vmatmul.msk.f32.vlgmr.msra.gmra.mxu0 %vm2699_vm13, %v9495_v23 }
 0x456   : > { %5819 = vmatpush.msra.mxu3 %v10574_v32  ;;  %6420 = vmatmul.msk.f32.vlgmr.msra.gmra.mxu1 %vm2699_vm13, %v9495_v23 }
 0x457   : > { %5798 = vmatpush.msra.mxu2 %v10560_v16  ;;  %5751 = vmatpush.msra.mxu0 %v9734_v63  ;;  %v10587_v63 = vld [vmem:[#allocation16_spill] sm:$0xff] }
 0x458   : > { %5820 = vmatpush.msra.mxu3 %v10577_v56  ;;  %6423 = vmatmul.msk.f32.gmra.mxu2 %vm2699_vm13, %v9530_v31 }
 0x459   : > { %6425 = vmatmul.msk.f32.gmra.mxu3 %vm2699_vm13, %v9530_v31  ;;  %5773 = vmatpush.msra.mxu1 %v9681_v20  ;;  %v10583_v20 = vmov 0.0  }
 0x45a   : > { %5799 = vmatpush.msra.mxu2 %v9723_v29  ;;  %5821 = vmatpush.msra.mxu3 %v9889_v35  ;;  %v10143_v35 = vpop.permute.xlu0 %4579 }
 0x45b   : > { %5752 = vmatpush.msra.mxu0 %v9748_v54  ;;  %5774 = vmatpush.msra.mxu1 %v9688_v37  ;;  %v4794_v1 = vpop.f32.mrf.mxu2  ;;  %v4816_v53 = vpop.f32.mrf.mxu3 }
 0x45c   : > { %5800 = vmatpush.msra.mxu2 %v9758_v41  ;;  %5822 = vmatpush.msra.mxu3 %v9907_v39  ;;  %v6859_v1 = vld [vmem:[%s6936_s10 + $0x10] sm:$0xff] }
 0x45d   : > { %5753 = vmatpush.msra.mxu0 %v10561_v4  ;;  %5775 = vmatpush.msra.mxu1 %v9153_v36  ;;  %v10580_v36 = vunpack.i.l.bf16 %v9700_v11  ;;  %v6850_v11 = vunpack.i.h.bf16 %v6848_v21  ;;  %v313_v53 = vmul.f32 %v6859_v1, %v6859_v1 }
 0x45e   : > { %6419 = vmatmul.msk.f32.gmra.mxu0 %vm2699_vm13, %v9530_v31  ;;  %6421 = vmatmul.msk.f32.gmra.mxu1 %vm2699_vm13, %v9530_v31  ;;  %v4750_v62 = vpop.f32.mrf.mxu0  ;;  %v4772_v15 = vpop.f32.mrf.mxu1 }
 0x45f   : > { %5754 = vmatpush.msra.mxu0 %v10562_v55  ;;  %5776 = vmatpush.msra.mxu1 %v10559_v2  ;;  %v10585_v2 = vunpack.i.l.bf16 %v9797_v33  ;;  %v317_v15 = vsel %vm315_vm3, %v312_v26, 0.0 }
 0x460   : > { %6430 = vmatmul.msk.f32.vlgmr.msrb.gmra.mxu2 %vm2699_vm13, %v9495_v23 }
 0x461   : > { %6432 = vmatmul.msk.f32.vlgmr.msrb.gmra.mxu3 %vm2699_vm13, %v9495_v23  ;;  %5755 = vmatpush.msra.mxu0 %v9790_v34 }
 0x462   : > { %5777 = vmatpush.msra.mxu1 %v9739_v57  ;;  %5883 = vmatpush.msrb.mxu2 %v9781_v0  ;;  %v10588_v57 = vunpack.i.h.bf16 %v10587_v63 }
 0x463   : > { %6464 = vmatpush.msk.msrb.mxu3 %vm657_vm10, %v10580_v36  ;;  %5756 = vmatpush.msra.mxu0 %v9804_v3 }
 0x464   : > { %5778 = vmatpush.msra.mxu1 %v9753_v24  ;;  %5884 = vmatpush.msrb.mxu2 %v9814_v17  ;;  %v4296_v54 = vsel %vm566_vm9, %v10588_v57, %v6850_v11  ;;  %v10590_v24 = vld [vmem:[#allocation15_spill] sm:$0xff]  ;;  %v319_v11 = vsel %vm315_vm3, %v313_v53, 0.0 }
 0x465   : > { %6465 = vmatpush.msk.msrb.mxu3 %vm657_vm10, %v10581_v51 }
 0x466   : > { %5885 = vmatpush.msrb.mxu2 %v10582_v45  ;;  %6426 = vmatmul.msk.f32.vlgmr.msrb.gmra.mxu0 %vm2699_vm13, %v9495_v23 }
 0x467   : > { %5907 = vmatpush.msrb.mxu3 %v10583_v20  ;;  %6428 = vmatmul.msk.f32.vlgmr.msrb.gmra.mxu1 %vm2699_vm13, %v9495_v23  ;;  %v4885_v37 = vpop.f32.mrf.mxu2  ;;  %v4907_v19 = vpop.f32.mrf.mxu3  ;;  %v4313_v23 = vsel %vm566_vm9, %v10585_v2, %v6849_v50 }
 0x468   : > { %5886 = vmatpush.msrb.mxu2 %v10584_v61  ;;  %5839 = vmatpush.msrb.mxu0 %v9854_v7  ;;  %v10589_v7 = vld [vmem:[#allocation19_spill] sm:$0xff]  ;;  %v4908_v17 = vadd.f32 %v4907_v19, %v9942_v5 }
 0x469   : > { %5908 = vmatpush.msrb.mxu3 %v10583_v20  ;;  %6431 = vmatmul.msk.f32.gmra.mxu2 %vm2699_vm13, %v9530_v31  ;;  %v6857_v5 = vld [vmem:[%s6936_s10] sm:$0xff] }
 0x46a   : > { %6433 = vmatmul.msk.f32.gmra.mxu3 %vm2699_vm13, %v9530_v31  ;;  %5861 = vmatpush.msrb.mxu1 %v9795_v46  ;;  %v4841_v16 = vpop.f32.mrf.mxu0  ;;  %v4863_v29 = vpop.f32.mrf.mxu1  ;;  %v311_v25 = vmul.f32 %v6857_v5, %v6857_v5 }
 0x46b   : > { %5887 = vmatpush.msrb.mxu2 %v10586_v52  ;;  %5909 = vmatpush.msrb.mxu3 %v4313_v23 }
 0x46c   : > { %5840 = vmatpush.msrb.mxu0 %v9866_v38  ;;  %5862 = vmatpush.msrb.mxu1 %v9809_v18  ;;  %v4886_v18 = vadd.f32 %v4885_v37, %v9934_v14  ;;  %v316_v62 = vsel %vm315_vm3, %v311_v25, 0.0  ;;  %v6860_v37 = vld [vmem:[%s6936_s10 + $0x18] sm:$0xff] }
 0x46d   : > { %5888 = vmatpush.msrb.mxu2 %v10589_v7  ;;  %5910 = vmatpush.msrb.mxu3 %v4296_v54  ;;  %v318_v50 = vadd.f32 %v317_v15, %v316_v62  ;;  %v314_v19 = vmul.f32 %v6860_v37, %v6860_v37 }
 0x46e   : > { %5841 = vmatpush.msrb.mxu0 %v10575_v30  ;;  %5863 = vmatpush.msrb.mxu1 %v10564_v60 }
 0x46f   : > { %6427 = vmatmul.msk.f32.gmra.mxu0 %vm2699_vm13, %v9530_v31  ;;  %6429 = vmatmul.msk.f32.gmra.mxu1 %vm2699_vm13, %v9530_v31  ;;  %v320_v61 = vadd.f32 %v319_v11, %v318_v50  ;;  %v321_v2 = vsel %vm315_vm3, %v314_v19, 0.0 }
 0x470   : > { %5842 = vmatpush.msrb.mxu0 %v10578_v27  ;;  %5864 = vmatpush.msrb.mxu1 %v10566_v28  ;;  %v4842_v27 = vadd.f32 %v4841_v16, %v9924_v59 }
 0x471   : > { %6438 = vmatmul.msk.f32.vlgmr.msra.gmra.mxu2 %vm2699_vm13, %v10590_v24  ;;  %v4888_v41 = vpop.f32.mrf.mxu2  ;;  %v4910_v4 = vpop.f32.mrf.mxu3  ;;  %v322_v23 = vadd.f32 %v321_v2, %v320_v61 }
 0x472   : > { %6440 = vmatmul.msk.f32.vlgmr.msra.gmra.mxu3 %vm2699_vm13, %v10590_v24  ;;  %5843 = vmatpush.msrb.mxu0 %v9892_v43 }
 0x473   : > { %5865 = vmatpush.msrb.mxu1 %v9837_v22  ;;  %v4864_v22 = vadd.f32 %v4863_v29, %v9926_v49  ;;  %323 = vadd.xlane.f32.xlu2 %v322_v23 }
 0x474   : > { %5844 = vmatpush.msrb.mxu0 %v9910_v44  ;;  %v4844_v31 = vpop.f32.mrf.mxu0  ;;  %v4866_v60 = vpop.f32.mrf.mxu1 }
 0x475   : > { %5866 = vmatpush.msrb.mxu1 %v9871_v6 }
 0x477   : > { %6434 = vmatmul.msk.f32.vlgmr.msra.gmra.mxu0 %vm2699_vm13, %v10590_v24  ;;  %6436 = vmatmul.msk.f32.vlgmr.msra.gmra.mxu1 %vm2699_vm13, %v10590_v24 }
 0x479   : > { %6439 = vmatmul.msk.f32.gmra.mxu2 %vm2699_vm13, %v9709_v47 }
 0x47a   : > { %6441 = vmatmul.msk.f32.gmra.mxu3 %vm2699_vm13, %v9709_v47 }
 0x47b   : > { %v10104_v28 = vpop.f32.mrf.mxu2  ;;  %v10106_v56 = vpop.f32.mrf.mxu3 }
 0x47c   : > { %v4974_v16 = vadd.f32 %v10104_v28, %v10000_v42  ;;  %v4996_v29 = vadd.f32 %v10106_v56, %v10002_v13 }
 0x47e   : > { %v10112_v55 = vpop.f32.mrf.mxu0  ;;  %v10114_v0 = vpop.f32.mrf.mxu1 }
 0x47f   : > { %6435 = vmatmul.msk.f32.gmra.mxu0 %vm2699_vm13, %v9709_v47  ;;  %6437 = vmatmul.msk.f32.gmra.mxu1 %vm2699_vm13, %v9709_v47  ;;  %v4930_v52 = vadd.f32 %v10112_v55, %v10010_v9  ;;  %v4952_v63 = vadd.f32 %v10114_v0, %v10012_v58 }
 0x481   : > { %6446 = vmatmul.msk.f32.vlgmr.msrb.gmra.mxu2 %vm2699_vm13, %v10590_v24 }
 0x482   : > { %6448 = vmatmul.msk.f32.vlgmr.msrb.gmra.mxu3 %vm2699_vm13, %v10590_v24 }
 0x486   : > { %v4976_v34 = vpop.f32.mrf.mxu2  ;;  %v4998_v46 = vpop.f32.mrf.mxu3 }
 0x487   : > { %6442 = vmatmul.msk.f32.vlgmr.msrb.gmra.mxu0 %vm2699_vm13, %v10590_v24  ;;  %6444 = vmatmul.msk.f32.vlgmr.msrb.gmra.mxu1 %vm2699_vm13, %v10590_v24  ;;  %v4932_v33 = vpop.f32.mrf.mxu0 }
 0x488   : > { %v4954_v3 = vpop.f32.mrf.mxu1 }
 0x489   : > { %6447 = vmatmul.msk.f32.gmra.mxu2 %vm2699_vm13, %v9709_v47 }
 0x48a   : > { %6449 = vmatmul.msk.f32.gmra.mxu3 %vm2699_vm13, %v9709_v47 }
 0x48e   : > { %v5115_v48 = vpop.f32.mrf.mxu2 }
 0x48f   : > { %6443 = vmatmul.msk.f32.gmra.mxu0 %vm2699_vm13, %v9709_v47  ;;  %6445 = vmatmul.msk.f32.gmra.mxu1 %vm2699_vm13, %v9709_v47  ;;  %v5232_v6 = vadd.f32 %v5115_v48, %v4886_v18  ;;  %v5071_v30 = vpop.f32.mrf.mxu0 }
 0x490   : > { %v5137_v38 = vpop.f32.mrf.mxu3  ;;  %v5093_v12 = vpop.f32.mrf.mxu1  ;;  %v5230_v43 = vadd.f32 %v5071_v30, %v4842_v27 }
 0x491   : > { %v5233_v32 = vadd.f32 %v5137_v38, %v4908_v17  ;;  %v5231_v47 = vadd.f32 %v5093_v12, %v4864_v22  ;;  %v5240_v8 = vadd.f32 %v5232_v6, %v10143_v35 }
 0x492   : > { %v5238_v44 = vadd.f32 %v5230_v43, %v10143_v35 }
 0x493   : > { %v5241_v39 = vadd.f32 %v5233_v32, %v10143_v35  ;;  %v5239_v59 = vadd.f32 %v5231_v47, %v10143_v35  ;;  %v5258_v49 = vrot.slane %v5240_v8, 1  ;;  %5260 = vst.msk [vmem:[%s10141_s13 + $0x2] sm:$0x1] %vm5249_vm15, %v5240_v8 }
 0x494   : > { %v5247_v40 = vrot.slane %v5238_v44, 1  ;;  %5250 = vst.msk [vmem:[%s10141_s13] sm:$0x1] %vm5249_vm15, %v5238_v44 }
 0x495   : > { %v5263_v14 = vrot.slane %v5241_v39, 1  ;;  %5265 = vst.msk [vmem:[%s10141_s13 + $0x3] sm:$0x1] %vm5249_vm15, %v5241_v39  ;;  %v5253_v36 = vrot.slane %v5239_v59, 1 }
 0x496   : > { %5261 = vst.msk [vmem:[%s10141_s13 + $0x12] sm:$0x1] %vm5249_vm15, %v5258_v49 }
 0x497   : > { %5266 = vst.msk [vmem:[%s10141_s13 + $0x13] sm:$0x1] %vm5249_vm15, %v5263_v14  ;;  %v5118_v21 = vpop.f32.mrf.mxu2  ;;  %v5074_v45 = vpop.f32.mrf.mxu0 }
 0x498   : > { %v5140_v51 = vpop.f32.mrf.mxu3  ;;  %v5096_v20 = vpop.f32.mrf.mxu1  ;;  %5251 = vst.msk [vmem:[%s10141_s13 + $0x10] sm:$0x1] %vm5249_vm15, %v5247_v40 }
 0x499   : > { %5255 = vst.msk [vmem:[%s10141_s13 + $0x1] sm:$0x1] %vm5249_vm15, %v5239_v59 }
 0x49a   : > { %5256 = vst.msk [vmem:[%s10141_s13 + $0x11] sm:$0x1] %vm5249_vm15, %v5253_v36 }
 0x49f   : > { %v5203_v57 = vpop.f32.mrf.mxu2  ;;  %v5159_v41 = vpop.f32.mrf.mxu0 }
 0x4a0   : > { %v5225_v54 = vpop.f32.mrf.mxu3  ;;  %v5236_v7 = vadd.f32 %v5203_v57, %v4974_v16  ;;  %v5181_v42 = vpop.f32.mrf.mxu1  ;;  %v5234_v4 = vadd.f32 %v5159_v41, %v4930_v52 }
 0x4a1   : > { %v5237_v24 = vadd.f32 %v5225_v54, %v4996_v29  ;;  %v5235_v31 = vadd.f32 %v5181_v42, %v4952_v63 }
 0x4a2   : > { %v5244_v13 = vadd.f32 %v5236_v7, %v10143_v35  ;;  %v5242_v60 = vadd.f32 %v5234_v4, %v10143_v35 }
 0x4a3   : > { %v5245_v9 = vadd.f32 %v5237_v24, %v10143_v35  ;;  %v5243_v58 = vadd.f32 %v5235_v31, %v10143_v35 }
 0x4a4   : > { %v5278_v28 = vrot.slane %v5244_v13, 1  ;;  %5280 = vst.msk [vmem:[%s10141_s13 + $0x6] sm:$0x1] %vm5249_vm15, %v5244_v13  ;;  %v5268_v55 = vrot.slane %v5242_v60, 1 }
 0x4a5   : > { %v5283_v56 = vrot.slane %v5245_v9, 1  ;;  %5285 = vst.msk [vmem:[%s10141_s13 + $0x7] sm:$0x1] %vm5249_vm15, %v5245_v9  ;;  %v5273_v0 = vrot.slane %v5243_v58, 1 }
 0x4a6   : > { %5281 = vst.msk [vmem:[%s10141_s13 + $0x16] sm:$0x1] %vm5249_vm15, %v5278_v28 }
 0x4a7   : > { %5286 = vst.msk [vmem:[%s10141_s13 + $0x17] sm:$0x1] %vm5249_vm15, %v5283_v56 }
 0x4a8   : > { %5270 = vst.msk [vmem:[%s10141_s13 + $0x4] sm:$0x1] %vm5249_vm15, %v5242_v60  ;;  %v5206_v34 = vpop.f32.mrf.mxu2  ;;  %v5162_v33 = vpop.f32.mrf.mxu0 }
 0x4a9   : > { %v5228_v46 = vpop.f32.mrf.mxu3  ;;  %5271 = vst.msk [vmem:[%s10141_s13 + $0x14] sm:$0x1] %vm5249_vm15, %v5268_v55  ;;  %v5184_v3 = vpop.f32.mrf.mxu1 }
 0x4aa   : > { %5275 = vst.msk [vmem:[%s10141_s13 + $0x5] sm:$0x1] %vm5249_vm15, %v5243_v58 }
 0x4ab   : > { %5276 = vst.msk [vmem:[%s10141_s13 + $0x15] sm:$0x1] %vm5249_vm15, %v5273_v0 }
 0x4b0   : > { %v5402_v18 = vpop.f32.mrf.mxu2  ;;  %v5358_v27 = vpop.f32.mrf.mxu0 }
 0x4b1   : > { %v5424_v17 = vpop.f32.mrf.mxu3  ;;  %v5380_v22 = vpop.f32.mrf.mxu1 }
 0x4b9   : > { %v5405_v48 = vpop.f32.mrf.mxu2  ;;  %v5361_v6 = vpop.f32.mrf.mxu0 }
 0x4ba   : > { %v5427_v38 = vpop.f32.mrf.mxu3  ;;  %v5383_v32 = vpop.f32.mrf.mxu1 }
 0x4c1   : > { %v5490_v30 = vpop.f32.mrf.mxu2  ;;  %v5446_v43 = vpop.f32.mrf.mxu0 }
 0x4c2   : > { %v5512_v12 = vpop.f32.mrf.mxu3  ;;  %v5468_v47 = vpop.f32.mrf.mxu1 }
 0x4ca   : > { %v5493_v8 = vpop.f32.mrf.mxu2  ;;  %v5449_v44 = vpop.f32.mrf.mxu0 }
 0x4cb   : > { %v5515_v39 = vpop.f32.mrf.mxu3  ;;  %v5471_v59 = vpop.f32.mrf.mxu1 }
 0x4d2   : > { %v5578_v49 = vpop.f32.mrf.mxu2  ;;  %v5534_v5 = vpop.f32.mrf.mxu0 }
 0x4d3   : > { %v5600_v14 = vpop.f32.mrf.mxu3  ;;  %v5556_v25 = vpop.f32.mrf.mxu1  ;;  %v5579_v20 = vadd.f32 %v5578_v49, %v5402_v18  ;;  %v5535_v19 = vadd.f32 %v5534_v5, %v5358_v27  ;;  %v10242_v5 = vld [vmem:[%s10141_s13] sm:$0xff] }
 0x4d4   : > { %v5601_v37 = vadd.f32 %v5600_v14, %v5424_v17  ;;  %v5557_v11 = vadd.f32 %v5556_v25, %v5380_v22 }
 0x4db   : > { %v5581_v10 = vpop.f32.mrf.mxu2  ;;  %v5537_v40 = vpop.f32.mrf.mxu0 }
 0x4dc   : > { %v5603_v26 = vpop.f32.mrf.mxu3  ;;  %v5559_v1 = vpop.f32.mrf.mxu1  ;;  %v10245_v10 = vld [vmem:[%s10141_s13 + $0x10] sm:$0xff] }
 0x4dd   : > { %v5977_v26 = vmul.f32 %v10242_v5, %v10242_v5 }
 0x4e3   : > { %v5666_v53 = vpop.f32.mrf.mxu2  ;;  %v5622_v15 = vpop.f32.mrf.mxu0 }
 0x4e4   : > { %v5688_v62 = vpop.f32.mrf.mxu3  ;;  %v5644_v36 = vpop.f32.mrf.mxu1  ;;  %v5667_v56 = vadd.f32 %v5666_v53, %v5490_v30  ;;  %v5623_v0 = vadd.f32 %v5622_v15, %v5446_v43  ;;  %v5979_v15 = vmul.f32 %v10245_v10, %v10245_v10 }
 0x4e5   : > { %v5689_v55 = vadd.f32 %v5688_v62, %v5512_v12  ;;  %v5645_v34 = vadd.f32 %v5644_v36, %v5468_v47 }
 0x4e6   : > { %v324_v49 = vpop.xlane.xlu2 %323 }
 0x4e7   : > { %v325_v14 = vrot.slane %v324_v49, 4 }
 0x4e9   : > { %v326_v25 = vadd.f32 %v325_v14, %v324_v49 }
 0x4eb   : > { %v327_v40 = vrot.slane %v326_v25, 2 }
 0x4ec   : > { %v5669_v21 = vpop.f32.mrf.mxu2  ;;  %v5625_v50 = vpop.f32.mrf.mxu0 }
 0x4ed   : > { %v5691_v51 = vpop.f32.mrf.mxu3  ;;  %v5647_v45 = vpop.f32.mrf.mxu1  ;;  %v328_v36 = vadd.f32 %v327_v40, %v326_v25 }
 0x4ee   : > { %v5981_v51 = vsel %vm315_vm3, %v5977_v26, 0.0 }
 0x4ef   : > { %v329_v45 = vrot.slane %v328_v36, 1 }
 0x4f4   : > { %v5802_v61 = vpop.f32.mrf.mxu2  ;;  %v5758_v29 = vpop.f32.mrf.mxu0 }
 0x4f5   : > { %v5824_v2 = vpop.f32.mrf.mxu3  ;;  %v5919_v23 = vadd.f32 %v5802_v61, %v5579_v20  ;;  %v5780_v52 = vpop.f32.mrf.mxu1  ;;  %v5917_v63 = vadd.f32 %v5758_v29, %v5535_v19  ;;  %v330_v19 = vadd.f32 %v329_v45, %v328_v36 }
 0x4f6   : > { %v5920_v16 = vadd.f32 %v5824_v2, %v5601_v37  ;;  %v5918_v57 = vadd.f32 %v5780_v52, %v5557_v11  ;;  %v5984_v37 = vsel %vm315_vm3, %v5979_v15, 0.0 }
 0x4f7   : > { %v5927_v54 = vadd.f32 %v5919_v23, %v10143_v35  ;;  %v5925_v24 = vadd.f32 %v5917_v63, %v10143_v35  ;;  %6466 = vpush %v330_v19 }
 0x4f8   : > { %v5928_v7 = vadd.f32 %v5920_v16, %v10143_v35  ;;  %v5926_v41 = vadd.f32 %v5918_v57, %v10143_v35 }
 0x4f9   : > { %v5944_v42 = vrot.slane %v5927_v54, 1  ;;  %5946 = vst.msk [vmem:[%s10141_s13 + $0xa] sm:$0x1] %vm5249_vm15, %v5927_v54  ;;  %v5934_v31 = vrot.slane %v5925_v24, 1 }
 0x4fa   : > { %v5949_v4 = vrot.slane %v5928_v7, 1  ;;  %5951 = vst.msk [vmem:[%s10141_s13 + $0xb] sm:$0x1] %vm5249_vm15, %v5928_v7  ;;  %v5939_v13 = vrot.slane %v5926_v41, 1 }
 0x4fb   : > { %5947 = vst.msk [vmem:[%s10141_s13 + $0x1a] sm:$0x1] %vm5249_vm15, %v5944_v42 }
 0x4fc   : > { %5952 = vst.msk [vmem:[%s10141_s13 + $0x1b] sm:$0x1] %vm5249_vm15, %v5949_v4  ;;  %v5805_v9 = vpop.f32.mrf.mxu2  ;;  %v5761_v58 = vpop.f32.mrf.mxu0 }
 0x4fd   : > { %v5827_v60 = vpop.f32.mrf.mxu3  ;;  %5936 = vst.msk [vmem:[%s10141_s13 + $0x8] sm:$0x1] %vm5249_vm15, %v5925_v24  ;;  %v5783_v28 = vpop.f32.mrf.mxu1 }
 0x4fe   : > { %5937 = vst.msk [vmem:[%s10141_s13 + $0x18] sm:$0x1] %vm5249_vm15, %v5934_v31 }
 0x4ff   : > { %5941 = vst.msk [vmem:[%s10141_s13 + $0x9] sm:$0x1] %vm5249_vm15, %v5926_v41 }
 0x500   : > { %5942 = vst.msk [vmem:[%s10141_s13 + $0x19] sm:$0x1] %vm5249_vm15, %v5939_v13 }
 0x504   : > { %v5890_v46 = vpop.f32.mrf.mxu2  ;;  %v5846_v17 = vpop.f32.mrf.mxu0 }
 0x505   : > { %v5912_v33 = vpop.f32.mrf.mxu3  ;;  %v5923_v3 = vadd.f32 %v5890_v46, %v5667_v56  ;;  %v5868_v27 = vpop.f32.mrf.mxu1  ;;  %v5921_v22 = vadd.f32 %v5846_v17, %v5623_v0 }
 0x506   : > { %v5924_v18 = vadd.f32 %v5912_v33, %v5689_v55  ;;  %v5922_v48 = vadd.f32 %v5868_v27, %v5645_v34 }
 0x507   : > { %v5931_v38 = vadd.f32 %v5923_v3, %v10143_v35  ;;  %v5929_v32 = vadd.f32 %v5921_v22, %v10143_v35 }
 0x508   : > { %v5932_v6 = vadd.f32 %v5924_v18, %v10143_v35  ;;  %v5930_v30 = vadd.f32 %v5922_v48, %v10143_v35 }
 0x509   : > { %v5964_v12 = vrot.slane %v5931_v38, 1  ;;  %5966 = vst.msk [vmem:[%s10141_s13 + $0xe] sm:$0x1] %vm5249_vm15, %v5931_v38  ;;  %v5954_v47 = vrot.slane %v5929_v32, 1 }
 0x50a   : > { %v5969_v43 = vrot.slane %v5932_v6, 1  ;;  %5971 = vst.msk [vmem:[%s10141_s13 + $0xf] sm:$0x1] %vm5249_vm15, %v5932_v6  ;;  %v5959_v8 = vrot.slane %v5930_v30, 1 }
 0x50b   : > { %5967 = vst.msk [vmem:[%s10141_s13 + $0x1e] sm:$0x1] %vm5249_vm15, %v5964_v12 }
 0x50c   : > { %5972 = vst.msk [vmem:[%s10141_s13 + $0x1f] sm:$0x1] %vm5249_vm15, %v5969_v43  ;;  %v5893_v39 = vpop.f32.mrf.mxu2  ;;  %v5849_v35 = vpop.f32.mrf.mxu0 }
 0x50d   : > { %v5915_v44 = vpop.f32.mrf.mxu3  ;;  %5956 = vst.msk [vmem:[%s10141_s13 + $0xc] sm:$0x1] %vm5249_vm15, %v5929_v32  ;;  %v5871_v59 = vpop.f32.mrf.mxu1 }
 0x50e   : > { %5957 = vst.msk [vmem:[%s10141_s13 + $0x1c] sm:$0x1] %vm5249_vm15, %v5954_v47 }
 0x50f   : > { %5961 = vst.msk [vmem:[%s10141_s13 + $0xd] sm:$0x1] %vm5249_vm15, %v5930_v30 }
 0x510   : > { %5962 = vst.msk [vmem:[%s10141_s13 + $0x1d] sm:$0x1] %vm5249_vm15, %v5959_v8 }
 0x516   : > { %v10250_v1 = vld [vmem:[%s10141_s13 + $0x8] sm:$0xff] }
 0x517   : > { %v10253_v53 = vld [vmem:[%s10141_s13 + $0x18] sm:$0xff]  ;;  %v5978_v62 = vmul.f32 %v10250_v1, %v10250_v1 }
 0x518   : > { %v5980_v21 = vmul.f32 %v10253_v53, %v10253_v53 }
 0x519   : > { %v5982_v50 = vsel %vm315_vm3, %v5978_v62, 0.0 }
 0x51a   : > { %v5983_v20 = vadd.f32 %v5982_v50, %v5981_v51  ;;  %v5986_v61 = vsel %vm315_vm3, %v5980_v21, 0.0 }
 0x51c   : > { %v5985_v11 = vadd.f32 %v5984_v37, %v5983_v20 }
 0x51e   : > { %v5987_v2 = vadd.f32 %v5986_v61, %v5985_v11 }
 0x520   : > { %5988 = vadd.xlane.f32.xlu1 %v5987_v2 }
 0x528   : > { %s6467_s28 = spop %6466 }
 0x529   : > { %v332_v23 = vstv %s6467_s28 }
 0x52a   : > { %6851 = vrsqrt.f32 %v332_v23  ;;  %vm340_vm0 = vcmp.eq.f32.partialorder %v332_v23, inf  ;;  %v343_v24 = vand.u32 2147483648, %v332_v23  ;;  %vm342_vm1 = vcmp.eq.f32.partialorder %v332_v23, 0.0 }
 0x530   : > { %v6852_v16 = vpop.eup %6851 }
 0x531   : > { %v334_v29 = vmul.f32 %v6852_v16, %v332_v23 }
 0x533   : > { %v335_v52 = vmul.f32 %v6852_v16, %v334_v29 }
 0x535   : > { %v336_v63 = vmul.f32 0.5, %v335_v52 }
 0x537   : > { %v337_v57 = vsub.f32 1.5, %v336_v63 }
 0x539   : > { %v338_v54 = vmul.f32 %v6852_v16, %v337_v57 }
 0x53b   : > { %v339_v7 = vmul.f32 %v338_v54, %v332_v23 }
 0x53d   : > { %v341_v41 = vsel %vm340_vm0, %v332_v23, %v339_v7 }
 0x53e   : > { %v344_v42 = vsel %vm342_vm1, %v343_v24, %v341_v41 }
 0x53f   : > { %6468 = vpush %v344_v42 }
 0x570   : > { %s10265_s29 = spop %6468 }
 0x593   : > { %v5989_v4 = vpop.xlane.xlu1 %5988 }
 0x594   : > { %v5990_v31 = vrot.slane %v5989_v4, 4 }
 0x596   : > { %v5991_v13 = vadd.f32 %v5990_v31, %v5989_v4 }
 0x598   : > { %v5992_v9 = vrot.slane %v5991_v13, 2 }
 0x59a   : > { %v5993_v60 = vadd.f32 %v5992_v9, %v5991_v13 }
 0x59c   : > { %v5994_v58 = vrot.slane %v5993_v60, 1 }
 0x59e   : > { %v5995_v28 = vadd.f32 %v5994_v58, %v5993_v60 }
 0x5a0   : > { %6470 = vpush %v5995_v28 }
 0x5d1   : > { %s6471_s10 = spop %6470 }
 0x5d2   : > { %v5997_v56 = vstv %s6471_s10 }
 0x5d3   : > { %6853 = vrsqrt.f32 %v5997_v56  ;;  %vm6005_vm2 = vcmp.eq.f32.partialorder %v5997_v56, inf  ;;  %v6008_v17 = vand.u32 2147483648, %v5997_v56  ;;  %vm6007_vm4 = vcmp.eq.f32.partialorder %v5997_v56, 0.0 }
 0x5d9   : > { %v6854_v55 = vpop.eup %6853 }
 0x5da   : > { %v5999_v0 = vmul.f32 %v6854_v55, %v5997_v56 }
 0x5dc   : > { %v6000_v34 = vmul.f32 %v6854_v55, %v5999_v0 }
 0x5de   : > { %v6001_v46 = vmul.f32 0.5, %v6000_v34 }
 0x5e0   : > { %v6002_v33 = vsub.f32 1.5, %v6001_v46 }
 0x5e2   : > { %v6003_v3 = vmul.f32 %v6854_v55, %v6002_v33 }
 0x5e4   : > { %v6004_v18 = vmul.f32 %v6003_v3, %v5997_v56 }
 0x5e6   : > { %v6006_v27 = vsel %vm6005_vm2, %v5997_v56, %v6004_v18 }
 0x5e7   : > { %v6009_v22 = vsel %vm6007_vm4, %v6008_v17, %v6006_v27 }
 0x5e8   : > { %6472 = vpush %v6009_v22 }
 0x619   : > { %s6473_s14 = spop %6472 }
 0x61a   : > { %s6011_s15 = sadd.f32 1e-08, %s6473_s14 }
 0x61c   : > { %v6012_v48 = vstv %s6011_s15 }
 0x61d   : > { %6855 = vrcp.f32 %v6012_v48  ;;  %v6024_v30 = vand.u32 2147483648, %v6012_v48  ;;  %v6022_v43 = vand.u32 2147483647, %v6012_v48  ;;  %vm6018_vm6 = vweird.f32 %v6012_v48 }
 0x61f   : > { %v6025_v8 = vor.u32 1.1754944e-38, %v6024_v30  ;;  %vm6023_vm8 = vcmp.eq.f32.partialorder %v6022_v43, 8.507059e+37 }
 0x623   : > { %v6856_v38 = vpop.eup %6855 }
 0x624   : > { %v6014_v6 = vmul.f32 %v6856_v38, %v6012_v48  ;;  %vm6019_vm5 = vweird.f32 %v6856_v38 }
 0x625   : > { %vm6020_vm7 = vmor %vm6018_vm6, %vm6019_vm5 }
 0x626   : > { %v6015_v32 = vsub.f32 1.0, %v6014_v6 }
 0x628   : > { %v6016_v12 = vmul.f32 %v6856_v38, %v6015_v32 }
 0x62a   : > { %v6017_v47 = vadd.f32 %v6856_v38, %v6016_v12 }
 0x62c   : > { %v6021_v39 = vsel %vm6020_vm7, %v6856_v38, %v6017_v47 }
 0x62d   : > { %v6026_v44 = vsel %vm6023_vm8, %v6025_v8, %v6021_v39 }
 0x62e   : > { %6474 = vpush %v6026_v44 }
 0x65f   : > { %s6475_s16 = spop %6474 }
 0x660   : > { %s6028_s17 = smul.f32 %s6475_s16, %s10265_s29 }
 0x662   : > { %v6029_v35 = vstv %s6028_s17 }
 0x663   : > { %v6030_v59 = vmul.f32 %v6029_v35, %v10242_v5  ;;  %v6031_v49 = vmul.f32 %v6029_v35, %v10250_v1  ;;  %v6032_v14 = vmul.f32 %v6029_v35, %v10245_v10  ;;  %v6033_v25 = vmul.f32 %v6029_v35, %v10253_v53 }
 0x665   : > { %6034 = vst.msk [vmem:[%s10141_s13] sm:$0xff] %vm315_vm3, %v6030_v59 }
 0x666   : > { %6035 = vst.msk [vmem:[%s10141_s13 + $0x8] sm:$0xff] %vm315_vm3, %v6031_v49 }
 0x667   : > { %6036 = vst.msk [vmem:[%s10141_s13 + $0x10] sm:$0xff] %vm315_vm3, %v6032_v14 }
 0x668   : > { %6037 = vst.msk [vmem:[%s10141_s13 + $0x18] sm:$0xff] %vm315_vm3, %v6033_v25 }
 0x669 PF: > { %s18_s27 = sadd.s32 1, %s6867_s27  }
 0x66a   : > { %p15_p4 = scmp.ge.s32.totalorder %s18_s27, 4  }
 0x66c   :  { %17 = sbr.rel (!%p15_p4) target bundleno = 1 (0x1), region = 88 }

</bundles_post_ra>
